<compile_context>
chip_gen: v7x
topology: tpu7x:2x2x1
jax: 0.10.0
libtpu: 0.0.40
codegen_flags: <defaults>
</compile_context>

<pallas_src>
import jax
import jax.numpy as jnp
from jax.experimental import pallas as pl
from jax.experimental.pallas import tpu as pltpu


# --------------------------------------------------------------------------
# Fused autoencoder kernel (single grid step, everything resident in VMEM)
# --------------------------------------------------------------------------
def _make_rae_kernel(B, T, F, H, L, n_layers):
    """Builds the fused forward kernel.

    Ref order:
      x2d (B, T*F),
      enc rnn1 layers [(wih_T, whh_T, bias)] * n_layers,
      enc rnn2 layers [(wih_T, whh_T, bias)] * n_layers,
      enc_fc_wT (T*L, L), enc_fc_b (1, L),
      dec_fc_wT (L, T*L), dec_fc_b (1, T*L),
      dec rnn1 layers * n_layers,
      dec rnn2 layers * n_layers,
      dec_out_wT (H, F), dec_out_b (1, F),
      out_ref (B, T*F)
    """

    def lstm_stack(xs, layer_refs, hidden):
        # xs: Python list of T arrays, each (B, f_in). Fully unrolled.
        for (wih_ref, whh_ref, b_ref) in layer_refs:
            wih = wih_ref[...]
            whh = whh_ref[...]
            b = b_ref[...]
            # Hoisted input projection + bias: independent of the recurrence,
            # so these matmuls pipeline on the MXU off the serial chain.
            projs = [
                jnp.dot(x_t, wih, preferred_element_type=jnp.float32) + b
                for x_t in xs
            ]
            h = jnp.zeros((B, hidden), jnp.float32)
            c = jnp.zeros((B, hidden), jnp.float32)
            outs = []
            for t in range(T):
                # Only h @ W_hh remains on the critical path.
                gates = projs[t] + jnp.dot(
                    h, whh, preferred_element_type=jnp.float32)
                # Full-vreg EUP activations, then lane slices.
                # PyTorch gate order: [i, f, g, o].
                sg = jax.nn.sigmoid(gates)
                th = jnp.tanh(gates)
                i_g = sg[:, 0 * hidden:1 * hidden]
                f_g = sg[:, 1 * hidden:2 * hidden]
                g_g = th[:, 2 * hidden:3 * hidden]
                o_g = sg[:, 3 * hidden:4 * hidden]
                c = f_g * c + i_g * g_g
                h = o_g * jnp.tanh(c)
                outs.append(h)
            xs = outs
        return xs

    def kernel(*refs):
        it = iter(refs)
        x_ref = next(it)
        enc1 = [(next(it), next(it), next(it)) for _ in range(n_layers)]
        enc2 = [(next(it), next(it), next(it)) for _ in range(n_layers)]
        efc_w_ref, efc_b_ref = next(it), next(it)
        dfc_w_ref, dfc_b_ref = next(it), next(it)
        dec1 = [(next(it), next(it), next(it)) for _ in range(n_layers)]
        dec2 = [(next(it), next(it), next(it)) for _ in range(n_layers)]
        dow_ref, dob_ref = next(it), next(it)
        out_ref = next(it)

        # ---------------- Encoder ----------------
        x2d = x_ref[...]                                        # (B, T*F)
        xs = [x2d[:, t * F:(t + 1) * F] for t in range(T)]       # T x (B, F)
        h1 = lstm_stack(xs, enc1, H)                             # T x (B, H)
        # dropout: identity (inference)
        h2 = lstm_stack(h1, enc2, L)                             # T x (B, L)
        # dropout: identity (inference)

        # Encoder fc: fc(concat_t h2_t) == lane-concat(h2) @ W^T + b.
        h2_flat = jnp.concatenate(h2, axis=1)                    # (B, T*L)
        lat = (jnp.dot(h2_flat, efc_w_ref[...],
                       preferred_element_type=jnp.float32)
               + efc_b_ref[...])                                 # (B, L)

        # ---------------- Decoder ----------------
        seq = (jnp.dot(lat, dfc_w_ref[...],
                       preferred_element_type=jnp.float32)
               + dfc_b_ref[...])                                 # (B, T*L)
        xs_d = [seq[:, t * L:(t + 1) * L] for t in range(T)]     # T x (B, L)
        d1 = lstm_stack(xs_d, dec1, H)                           # T x (B, H)
        # dropout: identity (inference)
        d2 = lstm_stack(d1, dec2, H)                             # T x (B, H)
        # dropout: identity (inference)

        # Output layer per timestep, written once as a lane-dense slab.
        dow = dow_ref[...]                                       # (H, F)
        dob = dob_ref[...]                                       # (1, F)
        y = jnp.concatenate(
            [jnp.dot(d2[t], dow, preferred_element_type=jnp.float32) + dob
             for t in range(T)], axis=1)                         # (B, T*F)
        out_ref[...] = y.astype(out_ref.dtype)

    return kernel


# --------------------------------------------------------------------------
# Host-side wrapper: one pallas_call for the whole forward
# --------------------------------------------------------------------------
def rae_forward(x, params):
    """x: (B, seq_len, features) batch_first. Returns (B, seq_len, features)."""
    B, T, F = x.shape
    enc1 = params["enc_rnn1"]
    enc2 = params["enc_rnn2"]
    efc = params["enc_fc"]
    dfc = params["dec_fc"]
    dec1 = params["dec_rnn1"]
    dec2 = params["dec_rnn2"]
    dout = params["dec_out"]

    H = enc1[0][1].shape[0]      # whh_T: (H, 4H)
    L = enc2[0][1].shape[0]
    n_layers = len(enc1)

    flat = [x.reshape(B, T * F).astype(jnp.float32)]
    for layer in list(enc1) + list(enc2):
        flat += list(layer)
    flat += [efc[0], efc[1], dfc[0], dfc[1]]
    for layer in list(dec1) + list(dec2):
        flat += list(layer)
    flat += [dout[0], dout[1]]

    # Full-array blocks (block == array shape, so no (8,128) constraint),
    # single grid step -> weights are DMA'd into VMEM exactly once.
    in_specs = [pl.BlockSpec(a.shape, lambda i, nd=a.ndim: (0,) * nd)
                for a in flat]

    out2d = pl.pallas_call(
        _make_rae_kernel(B, T, F, H, L, n_layers),
        out_shape=jax.ShapeDtypeStruct((B, T * F), jnp.float32),
        grid=(1,),
        in_specs=in_specs,
        out_specs=pl.BlockSpec((B, T * F), lambda i: (0, 0)),
        compiler_params=pltpu.CompilerParams(
            dimension_semantics=("arbitrary",)),
    )(*flat)
    return out2d.reshape(B, T, F)


# --------------------------------------------------------------------------
# Parameter construction (mirrors PyTorch LSTM/Linear shapes, pre-transposed)
# --------------------------------------------------------------------------
def init_lstm_params(key, input_size, hidden_size, num_layers):
    """List of (w_ih^T, w_hh^T, b_ih+b_hh) per stacked layer."""
    k = 1.0 / jnp.sqrt(jnp.float32(hidden_size))
    params = []
    for layer in range(num_layers):
        in_sz = input_size if layer == 0 else hidden_size
        key, k1, k2, k3, k4 = jax.random.split(key, 5)
        w_ih = jax.random.uniform(k1, (4 * hidden_size, in_sz), jnp.float32, -k, k)
        w_hh = jax.random.uniform(k2, (4 * hidden_size, hidden_size), jnp.float32, -k, k)
        b_ih = jax.random.uniform(k3, (4 * hidden_size,), jnp.float32, -k, k)
        b_hh = jax.random.uniform(k4, (4 * hidden_size,), jnp.float32, -k, k)
        params.append((w_ih.T, w_hh.T, (b_ih + b_hh)[None, :]))
    return params, key


def init_linear_params(key, in_features, out_features):
    k = 1.0 / jnp.sqrt(jnp.float32(in_features))
    key, k1, k2 = jax.random.split(key, 3)
    w = jax.random.uniform(k1, (out_features, in_features), jnp.float32, -k, k)
    b = jax.random.uniform(k2, (out_features,), jnp.float32, -k, k)
    return (w.T, b[None, :]), key


# --------------------------------------------------------------------------
# Pure-JAX reference (same math, no Pallas) for correctness checking
# --------------------------------------------------------------------------
def _lstm_ref(x, layers):
    B, T, _ = x.shape
    for (wih_t, whh_t, b) in layers:
        Hh = whh_t.shape[0]
        h = jnp.zeros((B, Hh), jnp.float32)
        c = jnp.zeros((B, Hh), jnp.float32)
        outs = []
        for t in range(T):
            g = x[:, t, :] @ wih_t + h @ whh_t + b
            i = jax.nn.sigmoid(g[:, :Hh])
            f = jax.nn.sigmoid(g[:, Hh:2 * Hh])
            gg = jnp.tanh(g[:, 2 * Hh:3 * Hh])
            o = jax.nn.sigmoid(g[:, 3 * Hh:])
            c = f * c + i * gg
            h = o * jnp.tanh(c)
            outs.append(h)
        x = jnp.stack(outs, axis=1)
    return x


def rae_reference(x, params):
    B, T, F = x.shape
    y = _lstm_ref(x, params["enc_rnn1"])
    y = _lstm_ref(y, params["enc_rnn2"])
    L = y.shape[-1]
    lat = y.reshape(B, T * L) @ params["enc_fc"][0] + params["enc_fc"][1]
    seq = (lat @ params["dec_fc"][0] + params["dec_fc"][1]).reshape(B, T, L)
    z = _lstm_ref(seq, params["dec_rnn1"])
    z = _lstm_ref(z, params["dec_rnn2"])
    return z @ params["dec_out"][0] + params["dec_out"][1]


if __name__ == "__main__":
    config = dict(seq_len=8, features=4, latent=16, hidden=32,
                  num_layers=1, dropout=0.1)
    B = 2
    T, F = config["seq_len"], config["features"]
    L, H = config["latent"], config["hidden"]
    NL = config["num_layers"]

    key = jax.random.PRNGKey(0)
    key, xk = jax.random.split(key)
    x = jax.random.normal(xk, (B, T, F), dtype=jnp.float32)

    enc_rnn1, key = init_lstm_params(key, F, H, NL)
    enc_rnn2, key = init_lstm_params(key, H, L, NL)
    enc_fc, key = init_linear_params(key, T * L, L)
    dec_fc, key = init_linear_params(key, L, T * L)
    dec_rnn1, key = init_lstm_params(key, L, H, NL)
    dec_rnn2, key = init_lstm_params(key, H, H, NL)
    dec_out, key = init_linear_params(key, H, F)

    params = dict(enc_rnn1=enc_rnn1, enc_rnn2=enc_rnn2, enc_fc=enc_fc,
                  dec_fc=dec_fc, dec_rnn1=dec_rnn1, dec_rnn2=dec_rnn2,
                  dec_out=dec_out)

    out = jax.jit(rae_forward)(x, params)
    out = jax.block_until_ready(out)
    assert out.shape == (B, T, F), out.shape

    ref = rae_reference(x, params)
    assert bool(jnp.allclose(out, ref, atol=1e-3, rtol=1e-3)), \
        float(jnp.max(jnp.abs(out - ref)))

    print("KERNEL_OK")
</pallas_src>

<mosaic_0001>
module attributes {stable_mosaic.version = 11 : i64} {
  func.func @kernel(%arg0: i32, %arg1: memref<2x32xf32, #tpu.memory_space<vmem>>, %arg2: memref<4x128xf32, #tpu.memory_space<vmem>>, %arg3: memref<32x128xf32, #tpu.memory_space<vmem>>, %arg4: memref<1x128xf32, #tpu.memory_space<vmem>>, %arg5: memref<32x64xf32, #tpu.memory_space<vmem>>, %arg6: memref<16x64xf32, #tpu.memory_space<vmem>>, %arg7: memref<1x64xf32, #tpu.memory_space<vmem>>, %arg8: memref<128x16xf32, #tpu.memory_space<vmem>>, %arg9: memref<1x16xf32, #tpu.memory_space<vmem>>, %arg10: memref<16x128xf32, #tpu.memory_space<vmem>>, %arg11: memref<1x128xf32, #tpu.memory_space<vmem>>, %arg12: memref<16x128xf32, #tpu.memory_space<vmem>>, %arg13: memref<32x128xf32, #tpu.memory_space<vmem>>, %arg14: memref<1x128xf32, #tpu.memory_space<vmem>>, %arg15: memref<32x128xf32, #tpu.memory_space<vmem>>, %arg16: memref<32x128xf32, #tpu.memory_space<vmem>>, %arg17: memref<1x128xf32, #tpu.memory_space<vmem>>, %arg18: memref<32x4xf32, #tpu.memory_space<vmem>>, %arg19: memref<1x4xf32, #tpu.memory_space<vmem>>, %arg20: memref<2x32xf32, #tpu.memory_space<vmem>>) attributes {dimension_semantics = [#tpu.dimension_semantics<arbitrary>], iteration_bounds = array<i64: 1>, scalar_prefetch = 0 : i64, scratch_operands = 0 : i64, tpu.core_type = #tpu.core_type<tc>, window_params = [{pipeline_mode = #tpu.pipeline_mode<synchronous>, transform_indices = @transform_0, window_bounds = array<i64: 2, 32>}, {pipeline_mode = #tpu.pipeline_mode<synchronous>, transform_indices = @transform_1, window_bounds = array<i64: 4, 128>}, {pipeline_mode = #tpu.pipeline_mode<synchronous>, transform_indices = @transform_2, window_bounds = array<i64: 32, 128>}, {pipeline_mode = #tpu.pipeline_mode<synchronous>, transform_indices = @transform_3, window_bounds = array<i64: 1, 128>}, {pipeline_mode = #tpu.pipeline_mode<synchronous>, transform_indices = @transform_4, window_bounds = array<i64: 32, 64>}, {pipeline_mode = #tpu.pipeline_mode<synchronous>, transform_indices = @transform_5, window_bounds = array<i64: 16, 64>}, {pipeline_mode = #tpu.pipeline_mode<synchronous>, transform_indices = @transform_6, window_bounds = array<i64: 1, 64>}, {pipeline_mode = #tpu.pipeline_mode<synchronous>, transform_indices = @transform_7, window_bounds = array<i64: 128, 16>}, {pipeline_mode = #tpu.pipeline_mode<synchronous>, transform_indices = @transform_8, window_bounds = array<i64: 1, 16>}, {pipeline_mode = #tpu.pipeline_mode<synchronous>, transform_indices = @transform_9, window_bounds = array<i64: 16, 128>}, {pipeline_mode = #tpu.pipeline_mode<synchronous>, transform_indices = @transform_10, window_bounds = array<i64: 1, 128>}, {pipeline_mode = #tpu.pipeline_mode<synchronous>, transform_indices = @transform_11, window_bounds = array<i64: 16, 128>}, {pipeline_mode = #tpu.pipeline_mode<synchronous>, transform_indices = @transform_12, window_bounds = array<i64: 32, 128>}, {pipeline_mode = #tpu.pipeline_mode<synchronous>, transform_indices = @transform_13, window_bounds = array<i64: 1, 128>}, {pipeline_mode = #tpu.pipeline_mode<synchronous>, transform_indices = @transform_14, window_bounds = array<i64: 32, 128>}, {pipeline_mode = #tpu.pipeline_mode<synchronous>, transform_indices = @transform_15, window_bounds = array<i64: 32, 128>}, {pipeline_mode = #tpu.pipeline_mode<synchronous>, transform_indices = @transform_16, window_bounds = array<i64: 1, 128>}, {pipeline_mode = #tpu.pipeline_mode<synchronous>, transform_indices = @transform_17, window_bounds = array<i64: 32, 4>}, {pipeline_mode = #tpu.pipeline_mode<synchronous>, transform_indices = @transform_18, window_bounds = array<i64: 1, 4>}, {pipeline_mode = #tpu.pipeline_mode<synchronous>, transform_indices = @transform_19, window_bounds = array<i64: 2, 32>}]} {
    %c0 = arith.constant 0 : index
    %c0_0 = arith.constant 0 : index
    %0 = vector.load %arg1[%c0, %c0_0] : memref<2x32xf32, #tpu.memory_space<vmem>>, vector<2x32xf32>
    %1 = vector.extract_strided_slice %0 {offsets = [0, 0], sizes = [2, 4], strides = [1, 1]} : vector<2x32xf32> to vector<2x4xf32>
    %2 = vector.extract_strided_slice %0 {offsets = [0, 4], sizes = [2, 4], strides = [1, 1]} : vector<2x32xf32> to vector<2x4xf32>
    %3 = vector.extract_strided_slice %0 {offsets = [0, 8], sizes = [2, 4], strides = [1, 1]} : vector<2x32xf32> to vector<2x4xf32>
    %4 = vector.extract_strided_slice %0 {offsets = [0, 12], sizes = [2, 4], strides = [1, 1]} : vector<2x32xf32> to vector<2x4xf32>
    %5 = vector.extract_strided_slice %0 {offsets = [0, 16], sizes = [2, 4], strides = [1, 1]} : vector<2x32xf32> to vector<2x4xf32>
    %6 = vector.extract_strided_slice %0 {offsets = [0, 20], sizes = [2, 4], strides = [1, 1]} : vector<2x32xf32> to vector<2x4xf32>
    %7 = vector.extract_strided_slice %0 {offsets = [0, 24], sizes = [2, 4], strides = [1, 1]} : vector<2x32xf32> to vector<2x4xf32>
    %8 = vector.extract_strided_slice %0 {offsets = [0, 28], sizes = [2, 4], strides = [1, 1]} : vector<2x32xf32> to vector<2x4xf32>
    %c0_1 = arith.constant 0 : index
    %c0_2 = arith.constant 0 : index
    %9 = vector.load %arg2[%c0_1, %c0_2] : memref<4x128xf32, #tpu.memory_space<vmem>>, vector<4x128xf32>
    %c0_3 = arith.constant 0 : index
    %c0_4 = arith.constant 0 : index
    %10 = vector.load %arg3[%c0_3, %c0_4] : memref<32x128xf32, #tpu.memory_space<vmem>>, vector<32x128xf32>
    %c0_5 = arith.constant 0 : index
    %c0_6 = arith.constant 0 : index
    %11 = vector.load %arg4[%c0_5, %c0_6] : memref<1x128xf32, #tpu.memory_space<vmem>>, vector<1x128xf32>
    %cst = arith.constant dense<0.000000e+00> : vector<2x128xf32>
    %12 = tpu.matmul %1, %9, %cst {dimension_numbers = #tpu.dot_dimension_numbers<[1], [0], [0], [1], [0, 0, 1, 1], [], []>} : vector<2x4xf32>, vector<4x128xf32>, vector<2x128xf32> -> vector<2x128xf32>
    %13 = vector.broadcast %11 : vector<1x128xf32> to vector<2x128xf32>
    %14 = arith.addf %12, %13 : vector<2x128xf32>
    %cst_7 = arith.constant dense<0.000000e+00> : vector<2x128xf32>
    %15 = tpu.matmul %2, %9, %cst_7 {dimension_numbers = #tpu.dot_dimension_numbers<[1], [0], [0], [1], [0, 0, 1, 1], [], []>} : vector<2x4xf32>, vector<4x128xf32>, vector<2x128xf32> -> vector<2x128xf32>
    %16 = vector.broadcast %11 : vector<1x128xf32> to vector<2x128xf32>
    %17 = arith.addf %15, %16 : vector<2x128xf32>
    %cst_8 = arith.constant dense<0.000000e+00> : vector<2x128xf32>
    %18 = tpu.matmul %3, %9, %cst_8 {dimension_numbers = #tpu.dot_dimension_numbers<[1], [0], [0], [1], [0, 0, 1, 1], [], []>} : vector<2x4xf32>, vector<4x128xf32>, vector<2x128xf32> -> vector<2x128xf32>
    %19 = vector.broadcast %11 : vector<1x128xf32> to vector<2x128xf32>
    %20 = arith.addf %18, %19 : vector<2x128xf32>
    %cst_9 = arith.constant dense<0.000000e+00> : vector<2x128xf32>
    %21 = tpu.matmul %4, %9, %cst_9 {dimension_numbers = #tpu.dot_dimension_numbers<[1], [0], [0], [1], [0, 0, 1, 1], [], []>} : vector<2x4xf32>, vector<4x128xf32>, vector<2x128xf32> -> vector<2x128xf32>
    %22 = vector.broadcast %11 : vector<1x128xf32> to vector<2x128xf32>
    %23 = arith.addf %21, %22 : vector<2x128xf32>
    %cst_10 = arith.constant dense<0.000000e+00> : vector<2x128xf32>
    %24 = tpu.matmul %5, %9, %cst_10 {dimension_numbers = #tpu.dot_dimension_numbers<[1], [0], [0], [1], [0, 0, 1, 1], [], []>} : vector<2x4xf32>, vector<4x128xf32>, vector<2x128xf32> -> vector<2x128xf32>
    %25 = vector.broadcast %11 : vector<1x128xf32> to vector<2x128xf32>
    %26 = arith.addf %24, %25 : vector<2x128xf32>
    %cst_11 = arith.constant dense<0.000000e+00> : vector<2x128xf32>
    %27 = tpu.matmul %6, %9, %cst_11 {dimension_numbers = #tpu.dot_dimension_numbers<[1], [0], [0], [1], [0, 0, 1, 1], [], []>} : vector<2x4xf32>, vector<4x128xf32>, vector<2x128xf32> -> vector<2x128xf32>
    %28 = vector.broadcast %11 : vector<1x128xf32> to vector<2x128xf32>
    %29 = arith.addf %27, %28 : vector<2x128xf32>
    %cst_12 = arith.constant dense<0.000000e+00> : vector<2x128xf32>
    %30 = tpu.matmul %7, %9, %cst_12 {dimension_numbers = #tpu.dot_dimension_numbers<[1], [0], [0], [1], [0, 0, 1, 1], [], []>} : vector<2x4xf32>, vector<4x128xf32>, vector<2x128xf32> -> vector<2x128xf32>
    %31 = vector.broadcast %11 : vector<1x128xf32> to vector<2x128xf32>
    %32 = arith.addf %30, %31 : vector<2x128xf32>
    %cst_13 = arith.constant dense<0.000000e+00> : vector<2x128xf32>
    %33 = tpu.matmul %8, %9, %cst_13 {dimension_numbers = #tpu.dot_dimension_numbers<[1], [0], [0], [1], [0, 0, 1, 1], [], []>} : vector<2x4xf32>, vector<4x128xf32>, vector<2x128xf32> -> vector<2x128xf32>
    %34 = vector.broadcast %11 : vector<1x128xf32> to vector<2x128xf32>
    %35 = arith.addf %33, %34 : vector<2x128xf32>
    %cst_14 = arith.constant 0.000000e+00 : f32
    %36 = vector.broadcast %cst_14 : f32 to vector<2x32xf32>
    %cst_15 = arith.constant 0.000000e+00 : f32
    %37 = vector.broadcast %cst_15 : f32 to vector<2x32xf32>
    %cst_16 = arith.constant dense<0.000000e+00> : vector<2x128xf32>
    %38 = tpu.matmul %36, %10, %cst_16 {dimension_numbers = #tpu.dot_dimension_numbers<[1], [0], [0], [1], [0, 0, 1, 1], [], []>} : vector<2x32xf32>, vector<32x128xf32>, vector<2x128xf32> -> vector<2x128xf32>
    %39 = arith.addf %14, %38 : vector<2x128xf32>
    %40 = arith.negf %39 : vector<2x128xf32>
    %41 = math.exp %40 : vector<2x128xf32>
    %cst_17 = arith.constant 1.000000e+00 : f32
    %42 = vector.broadcast %cst_17 : f32 to vector<2x128xf32>
    %43 = arith.addf %42, %41 : vector<2x128xf32>
    %44 = arith.divf %42, %43 : vector<2x128xf32>
    %45 = math.tanh %39 : vector<2x128xf32>
    %46 = vector.extract_strided_slice %44 {offsets = [0, 0], sizes = [2, 32], strides = [1, 1]} : vector<2x128xf32> to vector<2x32xf32>
    %47 = vector.extract_strided_slice %44 {offsets = [0, 32], sizes = [2, 32], strides = [1, 1]} : vector<2x128xf32> to vector<2x32xf32>
    %48 = vector.extract_strided_slice %45 {offsets = [0, 64], sizes = [2, 32], strides = [1, 1]} : vector<2x128xf32> to vector<2x32xf32>
    %49 = vector.extract_strided_slice %44 {offsets = [0, 96], sizes = [2, 32], strides = [1, 1]} : vector<2x128xf32> to vector<2x32xf32>
    %50 = arith.mulf %47, %37 : vector<2x32xf32>
    %51 = arith.mulf %46, %48 : vector<2x32xf32>
    %52 = arith.addf %50, %51 : vector<2x32xf32>
    %53 = math.tanh %52 : vector<2x32xf32>
    %54 = arith.mulf %49, %53 : vector<2x32xf32>
    %cst_18 = arith.constant dense<0.000000e+00> : vector<2x128xf32>
    %55 = tpu.matmul %54, %10, %cst_18 {dimension_numbers = #tpu.dot_dimension_numbers<[1], [0], [0], [1], [0, 0, 1, 1], [], []>} : vector<2x32xf32>, vector<32x128xf32>, vector<2x128xf32> -> vector<2x128xf32>
    %56 = arith.addf %17, %55 : vector<2x128xf32>
    %57 = arith.negf %56 : vector<2x128xf32>
    %58 = math.exp %57 : vector<2x128xf32>
    %cst_19 = arith.constant 1.000000e+00 : f32
    %59 = vector.broadcast %cst_19 : f32 to vector<2x128xf32>
    %60 = arith.addf %59, %58 : vector<2x128xf32>
    %61 = arith.divf %59, %60 : vector<2x128xf32>
    %62 = math.tanh %56 : vector<2x128xf32>
    %63 = vector.extract_strided_slice %61 {offsets = [0, 0], sizes = [2, 32], strides = [1, 1]} : vector<2x128xf32> to vector<2x32xf32>
    %64 = vector.extract_strided_slice %61 {offsets = [0, 32], sizes = [2, 32], strides = [1, 1]} : vector<2x128xf32> to vector<2x32xf32>
    %65 = vector.extract_strided_slice %62 {offsets = [0, 64], sizes = [2, 32], strides = [1, 1]} : vector<2x128xf32> to vector<2x32xf32>
    %66 = vector.extract_strided_slice %61 {offsets = [0, 96], sizes = [2, 32], strides = [1, 1]} : vector<2x128xf32> to vector<2x32xf32>
    %67 = arith.mulf %64, %52 : vector<2x32xf32>
    %68 = arith.mulf %63, %65 : vector<2x32xf32>
    %69 = arith.addf %67, %68 : vector<2x32xf32>
    %70 = math.tanh %69 : vector<2x32xf32>
    %71 = arith.mulf %66, %70 : vector<2x32xf32>
    %cst_20 = arith.constant dense<0.000000e+00> : vector<2x128xf32>
    %72 = tpu.matmul %71, %10, %cst_20 {dimension_numbers = #tpu.dot_dimension_numbers<[1], [0], [0], [1], [0, 0, 1, 1], [], []>} : vector<2x32xf32>, vector<32x128xf32>, vector<2x128xf32> -> vector<2x128xf32>
    %73 = arith.addf %20, %72 : vector<2x128xf32>
    %74 = arith.negf %73 : vector<2x128xf32>
    %75 = math.exp %74 : vector<2x128xf32>
    %cst_21 = arith.constant 1.000000e+00 : f32
    %76 = vector.broadcast %cst_21 : f32 to vector<2x128xf32>
    %77 = arith.addf %76, %75 : vector<2x128xf32>
    %78 = arith.divf %76, %77 : vector<2x128xf32>
    %79 = math.tanh %73 : vector<2x128xf32>
    %80 = vector.extract_strided_slice %78 {offsets = [0, 0], sizes = [2, 32], strides = [1, 1]} : vector<2x128xf32> to vector<2x32xf32>
    %81 = vector.extract_strided_slice %78 {offsets = [0, 32], sizes = [2, 32], strides = [1, 1]} : vector<2x128xf32> to vector<2x32xf32>
    %82 = vector.extract_strided_slice %79 {offsets = [0, 64], sizes = [2, 32], strides = [1, 1]} : vector<2x128xf32> to vector<2x32xf32>
    %83 = vector.extract_strided_slice %78 {offsets = [0, 96], sizes = [2, 32], strides = [1, 1]} : vector<2x128xf32> to vector<2x32xf32>
    %84 = arith.mulf %81, %69 : vector<2x32xf32>
    %85 = arith.mulf %80, %82 : vector<2x32xf32>
    %86 = arith.addf %84, %85 : vector<2x32xf32>
    %87 = math.tanh %86 : vector<2x32xf32>
    %88 = arith.mulf %83, %87 : vector<2x32xf32>
    %cst_22 = arith.constant dense<0.000000e+00> : vector<2x128xf32>
    %89 = tpu.matmul %88, %10, %cst_22 {dimension_numbers = #tpu.dot_dimension_numbers<[1], [0], [0], [1], [0, 0, 1, 1], [], []>} : vector<2x32xf32>, vector<32x128xf32>, vector<2x128xf32> -> vector<2x128xf32>
    %90 = arith.addf %23, %89 : vector<2x128xf32>
    %91 = arith.negf %90 : vector<2x128xf32>
    %92 = math.exp %91 : vector<2x128xf32>
    %cst_23 = arith.constant 1.000000e+00 : f32
    %93 = vector.broadcast %cst_23 : f32 to vector<2x128xf32>
    %94 = arith.addf %93, %92 : vector<2x128xf32>
    %95 = arith.divf %93, %94 : vector<2x128xf32>
    %96 = math.tanh %90 : vector<2x128xf32>
    %97 = vector.extract_strided_slice %95 {offsets = [0, 0], sizes = [2, 32], strides = [1, 1]} : vector<2x128xf32> to vector<2x32xf32>
    %98 = vector.extract_strided_slice %95 {offsets = [0, 32], sizes = [2, 32], strides = [1, 1]} : vector<2x128xf32> to vector<2x32xf32>
    %99 = vector.extract_strided_slice %96 {offsets = [0, 64], sizes = [2, 32], strides = [1, 1]} : vector<2x128xf32> to vector<2x32xf32>
    %100 = vector.extract_strided_slice %95 {offsets = [0, 96], sizes = [2, 32], strides = [1, 1]} : vector<2x128xf32> to vector<2x32xf32>
    %101 = arith.mulf %98, %86 : vector<2x32xf32>
    %102 = arith.mulf %97, %99 : vector<2x32xf32>
    %103 = arith.addf %101, %102 : vector<2x32xf32>
    %104 = math.tanh %103 : vector<2x32xf32>
    %105 = arith.mulf %100, %104 : vector<2x32xf32>
    %cst_24 = arith.constant dense<0.000000e+00> : vector<2x128xf32>
    %106 = tpu.matmul %105, %10, %cst_24 {dimension_numbers = #tpu.dot_dimension_numbers<[1], [0], [0], [1], [0, 0, 1, 1], [], []>} : vector<2x32xf32>, vector<32x128xf32>, vector<2x128xf32> -> vector<2x128xf32>
    %107 = arith.addf %26, %106 : vector<2x128xf32>
    %108 = arith.negf %107 : vector<2x128xf32>
    %109 = math.exp %108 : vector<2x128xf32>
    %cst_25 = arith.constant 1.000000e+00 : f32
    %110 = vector.broadcast %cst_25 : f32 to vector<2x128xf32>
    %111 = arith.addf %110, %109 : vector<2x128xf32>
    %112 = arith.divf %110, %111 : vector<2x128xf32>
    %113 = math.tanh %107 : vector<2x128xf32>
    %114 = vector.extract_strided_slice %112 {offsets = [0, 0], sizes = [2, 32], strides = [1, 1]} : vector<2x128xf32> to vector<2x32xf32>
    %115 = vector.extract_strided_slice %112 {offsets = [0, 32], sizes = [2, 32], strides = [1, 1]} : vector<2x128xf32> to vector<2x32xf32>
    %116 = vector.extract_strided_slice %113 {offsets = [0, 64], sizes = [2, 32], strides = [1, 1]} : vector<2x128xf32> to vector<2x32xf32>
    %117 = vector.extract_strided_slice %112 {offsets = [0, 96], sizes = [2, 32], strides = [1, 1]} : vector<2x128xf32> to vector<2x32xf32>
    %118 = arith.mulf %115, %103 : vector<2x32xf32>
    %119 = arith.mulf %114, %116 : vector<2x32xf32>
    %120 = arith.addf %118, %119 : vector<2x32xf32>
    %121 = math.tanh %120 : vector<2x32xf32>
    %122 = arith.mulf %117, %121 : vector<2x32xf32>
    %cst_26 = arith.constant dense<0.000000e+00> : vector<2x128xf32>
    %123 = tpu.matmul %122, %10, %cst_26 {dimension_numbers = #tpu.dot_dimension_numbers<[1], [0], [0], [1], [0, 0, 1, 1], [], []>} : vector<2x32xf32>, vector<32x128xf32>, vector<2x128xf32> -> vector<2x128xf32>
    %124 = arith.addf %29, %123 : vector<2x128xf32>
    %125 = arith.negf %124 : vector<2x128xf32>
    %126 = math.exp %125 : vector<2x128xf32>
    %cst_27 = arith.constant 1.000000e+00 : f32
    %127 = vector.broadcast %cst_27 : f32 to vector<2x128xf32>
    %128 = arith.addf %127, %126 : vector<2x128xf32>
    %129 = arith.divf %127, %128 : vector<2x128xf32>
    %130 = math.tanh %124 : vector<2x128xf32>
    %131 = vector.extract_strided_slice %129 {offsets = [0, 0], sizes = [2, 32], strides = [1, 1]} : vector<2x128xf32> to vector<2x32xf32>
    %132 = vector.extract_strided_slice %129 {offsets = [0, 32], sizes = [2, 32], strides = [1, 1]} : vector<2x128xf32> to vector<2x32xf32>
    %133 = vector.extract_strided_slice %130 {offsets = [0, 64], sizes = [2, 32], strides = [1, 1]} : vector<2x128xf32> to vector<2x32xf32>
    %134 = vector.extract_strided_slice %129 {offsets = [0, 96], sizes = [2, 32], strides = [1, 1]} : vector<2x128xf32> to vector<2x32xf32>
    %135 = arith.mulf %132, %120 : vector<2x32xf32>
    %136 = arith.mulf %131, %133 : vector<2x32xf32>
    %137 = arith.addf %135, %136 : vector<2x32xf32>
    %138 = math.tanh %137 : vector<2x32xf32>
    %139 = arith.mulf %134, %138 : vector<2x32xf32>
    %cst_28 = arith.constant dense<0.000000e+00> : vector<2x128xf32>
    %140 = tpu.matmul %139, %10, %cst_28 {dimension_numbers = #tpu.dot_dimension_numbers<[1], [0], [0], [1], [0, 0, 1, 1], [], []>} : vector<2x32xf32>, vector<32x128xf32>, vector<2x128xf32> -> vector<2x128xf32>
    %141 = arith.addf %32, %140 : vector<2x128xf32>
    %142 = arith.negf %141 : vector<2x128xf32>
    %143 = math.exp %142 : vector<2x128xf32>
    %cst_29 = arith.constant 1.000000e+00 : f32
    %144 = vector.broadcast %cst_29 : f32 to vector<2x128xf32>
    %145 = arith.addf %144, %143 : vector<2x128xf32>
    %146 = arith.divf %144, %145 : vector<2x128xf32>
    %147 = math.tanh %141 : vector<2x128xf32>
    %148 = vector.extract_strided_slice %146 {offsets = [0, 0], sizes = [2, 32], strides = [1, 1]} : vector<2x128xf32> to vector<2x32xf32>
    %149 = vector.extract_strided_slice %146 {offsets = [0, 32], sizes = [2, 32], strides = [1, 1]} : vector<2x128xf32> to vector<2x32xf32>
    %150 = vector.extract_strided_slice %147 {offsets = [0, 64], sizes = [2, 32], strides = [1, 1]} : vector<2x128xf32> to vector<2x32xf32>
    %151 = vector.extract_strided_slice %146 {offsets = [0, 96], sizes = [2, 32], strides = [1, 1]} : vector<2x128xf32> to vector<2x32xf32>
    %152 = arith.mulf %149, %137 : vector<2x32xf32>
    %153 = arith.mulf %148, %150 : vector<2x32xf32>
    %154 = arith.addf %152, %153 : vector<2x32xf32>
    %155 = math.tanh %154 : vector<2x32xf32>
    %156 = arith.mulf %151, %155 : vector<2x32xf32>
    %cst_30 = arith.constant dense<0.000000e+00> : vector<2x128xf32>
    %157 = tpu.matmul %156, %10, %cst_30 {dimension_numbers = #tpu.dot_dimension_numbers<[1], [0], [0], [1], [0, 0, 1, 1], [], []>} : vector<2x32xf32>, vector<32x128xf32>, vector<2x128xf32> -> vector<2x128xf32>
    %158 = arith.addf %35, %157 : vector<2x128xf32>
    %159 = arith.negf %158 : vector<2x128xf32>
    %160 = math.exp %159 : vector<2x128xf32>
    %cst_31 = arith.constant 1.000000e+00 : f32
    %161 = vector.broadcast %cst_31 : f32 to vector<2x128xf32>
    %162 = arith.addf %161, %160 : vector<2x128xf32>
    %163 = arith.divf %161, %162 : vector<2x128xf32>
    %164 = math.tanh %158 : vector<2x128xf32>
    %165 = vector.extract_strided_slice %163 {offsets = [0, 0], sizes = [2, 32], strides = [1, 1]} : vector<2x128xf32> to vector<2x32xf32>
    %166 = vector.extract_strided_slice %163 {offsets = [0, 32], sizes = [2, 32], strides = [1, 1]} : vector<2x128xf32> to vector<2x32xf32>
    %167 = vector.extract_strided_slice %164 {offsets = [0, 64], sizes = [2, 32], strides = [1, 1]} : vector<2x128xf32> to vector<2x32xf32>
    %168 = vector.extract_strided_slice %163 {offsets = [0, 96], sizes = [2, 32], strides = [1, 1]} : vector<2x128xf32> to vector<2x32xf32>
    %169 = arith.mulf %166, %154 : vector<2x32xf32>
    %170 = arith.mulf %165, %167 : vector<2x32xf32>
    %171 = arith.addf %169, %170 : vector<2x32xf32>
    %172 = math.tanh %171 : vector<2x32xf32>
    %173 = arith.mulf %168, %172 : vector<2x32xf32>
    %c0_32 = arith.constant 0 : index
    %c0_33 = arith.constant 0 : index
    %174 = vector.load %arg5[%c0_32, %c0_33] : memref<32x64xf32, #tpu.memory_space<vmem>>, vector<32x64xf32>
    %c0_34 = arith.constant 0 : index
    %c0_35 = arith.constant 0 : index
    %175 = vector.load %arg6[%c0_34, %c0_35] : memref<16x64xf32, #tpu.memory_space<vmem>>, vector<16x64xf32>
    %c0_36 = arith.constant 0 : index
    %c0_37 = arith.constant 0 : index
    %176 = vector.load %arg7[%c0_36, %c0_37] : memref<1x64xf32, #tpu.memory_space<vmem>>, vector<1x64xf32>
    %cst_38 = arith.constant dense<0.000000e+00> : vector<2x64xf32>
    %177 = tpu.matmul %54, %174, %cst_38 {dimension_numbers = #tpu.dot_dimension_numbers<[1], [0], [0], [1], [0, 0, 1, 1], [], []>} : vector<2x32xf32>, vector<32x64xf32>, vector<2x64xf32> -> vector<2x64xf32>
    %178 = vector.broadcast %176 : vector<1x64xf32> to vector<2x64xf32>
    %179 = arith.addf %177, %178 : vector<2x64xf32>
    %cst_39 = arith.constant dense<0.000000e+00> : vector<2x64xf32>
    %180 = tpu.matmul %71, %174, %cst_39 {dimension_numbers = #tpu.dot_dimension_numbers<[1], [0], [0], [1], [0, 0, 1, 1], [], []>} : vector<2x32xf32>, vector<32x64xf32>, vector<2x64xf32> -> vector<2x64xf32>
    %181 = vector.broadcast %176 : vector<1x64xf32> to vector<2x64xf32>
    %182 = arith.addf %180, %181 : vector<2x64xf32>
    %cst_40 = arith.constant dense<0.000000e+00> : vector<2x64xf32>
    %183 = tpu.matmul %88, %174, %cst_40 {dimension_numbers = #tpu.dot_dimension_numbers<[1], [0], [0], [1], [0, 0, 1, 1], [], []>} : vector<2x32xf32>, vector<32x64xf32>, vector<2x64xf32> -> vector<2x64xf32>
    %184 = vector.broadcast %176 : vector<1x64xf32> to vector<2x64xf32>
    %185 = arith.addf %183, %184 : vector<2x64xf32>
    %cst_41 = arith.constant dense<0.000000e+00> : vector<2x64xf32>
    %186 = tpu.matmul %105, %174, %cst_41 {dimension_numbers = #tpu.dot_dimension_numbers<[1], [0], [0], [1], [0, 0, 1, 1], [], []>} : vector<2x32xf32>, vector<32x64xf32>, vector<2x64xf32> -> vector<2x64xf32>
    %187 = vector.broadcast %176 : vector<1x64xf32> to vector<2x64xf32>
    %188 = arith.addf %186, %187 : vector<2x64xf32>
    %cst_42 = arith.constant dense<0.000000e+00> : vector<2x64xf32>
    %189 = tpu.matmul %122, %174, %cst_42 {dimension_numbers = #tpu.dot_dimension_numbers<[1], [0], [0], [1], [0, 0, 1, 1], [], []>} : vector<2x32xf32>, vector<32x64xf32>, vector<2x64xf32> -> vector<2x64xf32>
    %190 = vector.broadcast %176 : vector<1x64xf32> to vector<2x64xf32>
    %191 = arith.addf %189, %190 : vector<2x64xf32>
    %cst_43 = arith.constant dense<0.000000e+00> : vector<2x64xf32>
    %192 = tpu.matmul %139, %174, %cst_43 {dimension_numbers = #tpu.dot_dimension_numbers<[1], [0], [0], [1], [0, 0, 1, 1], [], []>} : vector<2x32xf32>, vector<32x64xf32>, vector<2x64xf32> -> vector<2x64xf32>
    %193 = vector.broadcast %176 : vector<1x64xf32> to vector<2x64xf32>
    %194 = arith.addf %192, %193 : vector<2x64xf32>
    %cst_44 = arith.constant dense<0.000000e+00> : vector<2x64xf32>
    %195 = tpu.matmul %156, %174, %cst_44 {dimension_numbers = #tpu.dot_dimension_numbers<[1], [0], [0], [1], [0, 0, 1, 1], [], []>} : vector<2x32xf32>, vector<32x64xf32>, vector<2x64xf32> -> vector<2x64xf32>
    %196 = vector.broadcast %176 : vector<1x64xf32> to vector<2x64xf32>
    %197 = arith.addf %195, %196 : vector<2x64xf32>
    %cst_45 = arith.constant dense<0.000000e+00> : vector<2x64xf32>
    %198 = tpu.matmul %173, %174, %cst_45 {dimension_numbers = #tpu.dot_dimension_numbers<[1], [0], [0], [1], [0, 0, 1, 1], [], []>} : vector<2x32xf32>, vector<32x64xf32>, vector<2x64xf32> -> vector<2x64xf32>
    %199 = vector.broadcast %176 : vector<1x64xf32> to vector<2x64xf32>
    %200 = arith.addf %198, %199 : vector<2x64xf32>
    %cst_46 = arith.constant 0.000000e+00 : f32
    %201 = vector.broadcast %cst_46 : f32 to vector<2x16xf32>
    %cst_47 = arith.constant 0.000000e+00 : f32
    %202 = vector.broadcast %cst_47 : f32 to vector<2x16xf32>
    %cst_48 = arith.constant dense<0.000000e+00> : vector<2x64xf32>
    %203 = tpu.matmul %201, %175, %cst_48 {dimension_numbers = #tpu.dot_dimension_numbers<[1], [0], [0], [1], [0, 0, 1, 1], [], []>} : vector<2x16xf32>, vector<16x64xf32>, vector<2x64xf32> -> vector<2x64xf32>
    %204 = arith.addf %179, %203 : vector<2x64xf32>
    %205 = arith.negf %204 : vector<2x64xf32>
    %206 = math.exp %205 : vector<2x64xf32>
    %cst_49 = arith.constant 1.000000e+00 : f32
    %207 = vector.broadcast %cst_49 : f32 to vector<2x64xf32>
    %208 = arith.addf %207, %206 : vector<2x64xf32>
    %209 = arith.divf %207, %208 : vector<2x64xf32>
    %210 = math.tanh %204 : vector<2x64xf32>
    %211 = vector.extract_strided_slice %209 {offsets = [0, 0], sizes = [2, 16], strides = [1, 1]} : vector<2x64xf32> to vector<2x16xf32>
    %212 = vector.extract_strided_slice %209 {offsets = [0, 16], sizes = [2, 16], strides = [1, 1]} : vector<2x64xf32> to vector<2x16xf32>
    %213 = vector.extract_strided_slice %210 {offsets = [0, 32], sizes = [2, 16], strides = [1, 1]} : vector<2x64xf32> to vector<2x16xf32>
    %214 = vector.extract_strided_slice %209 {offsets = [0, 48], sizes = [2, 16], strides = [1, 1]} : vector<2x64xf32> to vector<2x16xf32>
    %215 = arith.mulf %212, %202 : vector<2x16xf32>
    %216 = arith.mulf %211, %213 : vector<2x16xf32>
    %217 = arith.addf %215, %216 : vector<2x16xf32>
    %218 = math.tanh %217 : vector<2x16xf32>
    %219 = arith.mulf %214, %218 : vector<2x16xf32>
    %cst_50 = arith.constant dense<0.000000e+00> : vector<2x64xf32>
    %220 = tpu.matmul %219, %175, %cst_50 {dimension_numbers = #tpu.dot_dimension_numbers<[1], [0], [0], [1], [0, 0, 1, 1], [], []>} : vector<2x16xf32>, vector<16x64xf32>, vector<2x64xf32> -> vector<2x64xf32>
    %221 = arith.addf %182, %220 : vector<2x64xf32>
    %222 = arith.negf %221 : vector<2x64xf32>
    %223 = math.exp %222 : vector<2x64xf32>
    %cst_51 = arith.constant 1.000000e+00 : f32
    %224 = vector.broadcast %cst_51 : f32 to vector<2x64xf32>
    %225 = arith.addf %224, %223 : vector<2x64xf32>
    %226 = arith.divf %224, %225 : vector<2x64xf32>
    %227 = math.tanh %221 : vector<2x64xf32>
    %228 = vector.extract_strided_slice %226 {offsets = [0, 0], sizes = [2, 16], strides = [1, 1]} : vector<2x64xf32> to vector<2x16xf32>
    %229 = vector.extract_strided_slice %226 {offsets = [0, 16], sizes = [2, 16], strides = [1, 1]} : vector<2x64xf32> to vector<2x16xf32>
    %230 = vector.extract_strided_slice %227 {offsets = [0, 32], sizes = [2, 16], strides = [1, 1]} : vector<2x64xf32> to vector<2x16xf32>
    %231 = vector.extract_strided_slice %226 {offsets = [0, 48], sizes = [2, 16], strides = [1, 1]} : vector<2x64xf32> to vector<2x16xf32>
    %232 = arith.mulf %229, %217 : vector<2x16xf32>
    %233 = arith.mulf %228, %230 : vector<2x16xf32>
    %234 = arith.addf %232, %233 : vector<2x16xf32>
    %235 = math.tanh %234 : vector<2x16xf32>
    %236 = arith.mulf %231, %235 : vector<2x16xf32>
    %cst_52 = arith.constant dense<0.000000e+00> : vector<2x64xf32>
    %237 = tpu.matmul %236, %175, %cst_52 {dimension_numbers = #tpu.dot_dimension_numbers<[1], [0], [0], [1], [0, 0, 1, 1], [], []>} : vector<2x16xf32>, vector<16x64xf32>, vector<2x64xf32> -> vector<2x64xf32>
    %238 = arith.addf %185, %237 : vector<2x64xf32>
    %239 = arith.negf %238 : vector<2x64xf32>
    %240 = math.exp %239 : vector<2x64xf32>
    %cst_53 = arith.constant 1.000000e+00 : f32
    %241 = vector.broadcast %cst_53 : f32 to vector<2x64xf32>
    %242 = arith.addf %241, %240 : vector<2x64xf32>
    %243 = arith.divf %241, %242 : vector<2x64xf32>
    %244 = math.tanh %238 : vector<2x64xf32>
    %245 = vector.extract_strided_slice %243 {offsets = [0, 0], sizes = [2, 16], strides = [1, 1]} : vector<2x64xf32> to vector<2x16xf32>
    %246 = vector.extract_strided_slice %243 {offsets = [0, 16], sizes = [2, 16], strides = [1, 1]} : vector<2x64xf32> to vector<2x16xf32>
    %247 = vector.extract_strided_slice %244 {offsets = [0, 32], sizes = [2, 16], strides = [1, 1]} : vector<2x64xf32> to vector<2x16xf32>
    %248 = vector.extract_strided_slice %243 {offsets = [0, 48], sizes = [2, 16], strides = [1, 1]} : vector<2x64xf32> to vector<2x16xf32>
    %249 = arith.mulf %246, %234 : vector<2x16xf32>
    %250 = arith.mulf %245, %247 : vector<2x16xf32>
    %251 = arith.addf %249, %250 : vector<2x16xf32>
    %252 = math.tanh %251 : vector<2x16xf32>
    %253 = arith.mulf %248, %252 : vector<2x16xf32>
    %cst_54 = arith.constant dense<0.000000e+00> : vector<2x64xf32>
    %254 = tpu.matmul %253, %175, %cst_54 {dimension_numbers = #tpu.dot_dimension_numbers<[1], [0], [0], [1], [0, 0, 1, 1], [], []>} : vector<2x16xf32>, vector<16x64xf32>, vector<2x64xf32> -> vector<2x64xf32>
    %255 = arith.addf %188, %254 : vector<2x64xf32>
    %256 = arith.negf %255 : vector<2x64xf32>
    %257 = math.exp %256 : vector<2x64xf32>
    %cst_55 = arith.constant 1.000000e+00 : f32
    %258 = vector.broadcast %cst_55 : f32 to vector<2x64xf32>
    %259 = arith.addf %258, %257 : vector<2x64xf32>
    %260 = arith.divf %258, %259 : vector<2x64xf32>
    %261 = math.tanh %255 : vector<2x64xf32>
    %262 = vector.extract_strided_slice %260 {offsets = [0, 0], sizes = [2, 16], strides = [1, 1]} : vector<2x64xf32> to vector<2x16xf32>
    %263 = vector.extract_strided_slice %260 {offsets = [0, 16], sizes = [2, 16], strides = [1, 1]} : vector<2x64xf32> to vector<2x16xf32>
    %264 = vector.extract_strided_slice %261 {offsets = [0, 32], sizes = [2, 16], strides = [1, 1]} : vector<2x64xf32> to vector<2x16xf32>
    %265 = vector.extract_strided_slice %260 {offsets = [0, 48], sizes = [2, 16], strides = [1, 1]} : vector<2x64xf32> to vector<2x16xf32>
    %266 = arith.mulf %263, %251 : vector<2x16xf32>
    %267 = arith.mulf %262, %264 : vector<2x16xf32>
    %268 = arith.addf %266, %267 : vector<2x16xf32>
    %269 = math.tanh %268 : vector<2x16xf32>
    %270 = arith.mulf %265, %269 : vector<2x16xf32>
    %cst_56 = arith.constant dense<0.000000e+00> : vector<2x64xf32>
    %271 = tpu.matmul %270, %175, %cst_56 {dimension_numbers = #tpu.dot_dimension_numbers<[1], [0], [0], [1], [0, 0, 1, 1], [], []>} : vector<2x16xf32>, vector<16x64xf32>, vector<2x64xf32> -> vector<2x64xf32>
    %272 = arith.addf %191, %271 : vector<2x64xf32>
    %273 = arith.negf %272 : vector<2x64xf32>
    %274 = math.exp %273 : vector<2x64xf32>
    %cst_57 = arith.constant 1.000000e+00 : f32
    %275 = vector.broadcast %cst_57 : f32 to vector<2x64xf32>
    %276 = arith.addf %275, %274 : vector<2x64xf32>
    %277 = arith.divf %275, %276 : vector<2x64xf32>
    %278 = math.tanh %272 : vector<2x64xf32>
    %279 = vector.extract_strided_slice %277 {offsets = [0, 0], sizes = [2, 16], strides = [1, 1]} : vector<2x64xf32> to vector<2x16xf32>
    %280 = vector.extract_strided_slice %277 {offsets = [0, 16], sizes = [2, 16], strides = [1, 1]} : vector<2x64xf32> to vector<2x16xf32>
    %281 = vector.extract_strided_slice %278 {offsets = [0, 32], sizes = [2, 16], strides = [1, 1]} : vector<2x64xf32> to vector<2x16xf32>
    %282 = vector.extract_strided_slice %277 {offsets = [0, 48], sizes = [2, 16], strides = [1, 1]} : vector<2x64xf32> to vector<2x16xf32>
    %283 = arith.mulf %280, %268 : vector<2x16xf32>
    %284 = arith.mulf %279, %281 : vector<2x16xf32>
    %285 = arith.addf %283, %284 : vector<2x16xf32>
    %286 = math.tanh %285 : vector<2x16xf32>
    %287 = arith.mulf %282, %286 : vector<2x16xf32>
    %cst_58 = arith.constant dense<0.000000e+00> : vector<2x64xf32>
    %288 = tpu.matmul %287, %175, %cst_58 {dimension_numbers = #tpu.dot_dimension_numbers<[1], [0], [0], [1], [0, 0, 1, 1], [], []>} : vector<2x16xf32>, vector<16x64xf32>, vector<2x64xf32> -> vector<2x64xf32>
    %289 = arith.addf %194, %288 : vector<2x64xf32>
    %290 = arith.negf %289 : vector<2x64xf32>
    %291 = math.exp %290 : vector<2x64xf32>
    %cst_59 = arith.constant 1.000000e+00 : f32
    %292 = vector.broadcast %cst_59 : f32 to vector<2x64xf32>
    %293 = arith.addf %292, %291 : vector<2x64xf32>
    %294 = arith.divf %292, %293 : vector<2x64xf32>
    %295 = math.tanh %289 : vector<2x64xf32>
    %296 = vector.extract_strided_slice %294 {offsets = [0, 0], sizes = [2, 16], strides = [1, 1]} : vector<2x64xf32> to vector<2x16xf32>
    %297 = vector.extract_strided_slice %294 {offsets = [0, 16], sizes = [2, 16], strides = [1, 1]} : vector<2x64xf32> to vector<2x16xf32>
    %298 = vector.extract_strided_slice %295 {offsets = [0, 32], sizes = [2, 16], strides = [1, 1]} : vector<2x64xf32> to vector<2x16xf32>
    %299 = vector.extract_strided_slice %294 {offsets = [0, 48], sizes = [2, 16], strides = [1, 1]} : vector<2x64xf32> to vector<2x16xf32>
    %300 = arith.mulf %297, %285 : vector<2x16xf32>
    %301 = arith.mulf %296, %298 : vector<2x16xf32>
    %302 = arith.addf %300, %301 : vector<2x16xf32>
    %303 = math.tanh %302 : vector<2x16xf32>
    %304 = arith.mulf %299, %303 : vector<2x16xf32>
    %cst_60 = arith.constant dense<0.000000e+00> : vector<2x64xf32>
    %305 = tpu.matmul %304, %175, %cst_60 {dimension_numbers = #tpu.dot_dimension_numbers<[1], [0], [0], [1], [0, 0, 1, 1], [], []>} : vector<2x16xf32>, vector<16x64xf32>, vector<2x64xf32> -> vector<2x64xf32>
    %306 = arith.addf %197, %305 : vector<2x64xf32>
    %307 = arith.negf %306 : vector<2x64xf32>
    %308 = math.exp %307 : vector<2x64xf32>
    %cst_61 = arith.constant 1.000000e+00 : f32
    %309 = vector.broadcast %cst_61 : f32 to vector<2x64xf32>
    %310 = arith.addf %309, %308 : vector<2x64xf32>
    %311 = arith.divf %309, %310 : vector<2x64xf32>
    %312 = math.tanh %306 : vector<2x64xf32>
    %313 = vector.extract_strided_slice %311 {offsets = [0, 0], sizes = [2, 16], strides = [1, 1]} : vector<2x64xf32> to vector<2x16xf32>
    %314 = vector.extract_strided_slice %311 {offsets = [0, 16], sizes = [2, 16], strides = [1, 1]} : vector<2x64xf32> to vector<2x16xf32>
    %315 = vector.extract_strided_slice %312 {offsets = [0, 32], sizes = [2, 16], strides = [1, 1]} : vector<2x64xf32> to vector<2x16xf32>
    %316 = vector.extract_strided_slice %311 {offsets = [0, 48], sizes = [2, 16], strides = [1, 1]} : vector<2x64xf32> to vector<2x16xf32>
    %317 = arith.mulf %314, %302 : vector<2x16xf32>
    %318 = arith.mulf %313, %315 : vector<2x16xf32>
    %319 = arith.addf %317, %318 : vector<2x16xf32>
    %320 = math.tanh %319 : vector<2x16xf32>
    %321 = arith.mulf %316, %320 : vector<2x16xf32>
    %cst_62 = arith.constant dense<0.000000e+00> : vector<2x64xf32>
    %322 = tpu.matmul %321, %175, %cst_62 {dimension_numbers = #tpu.dot_dimension_numbers<[1], [0], [0], [1], [0, 0, 1, 1], [], []>} : vector<2x16xf32>, vector<16x64xf32>, vector<2x64xf32> -> vector<2x64xf32>
    %323 = arith.addf %200, %322 : vector<2x64xf32>
    %324 = arith.negf %323 : vector<2x64xf32>
    %325 = math.exp %324 : vector<2x64xf32>
    %cst_63 = arith.constant 1.000000e+00 : f32
    %326 = vector.broadcast %cst_63 : f32 to vector<2x64xf32>
    %327 = arith.addf %326, %325 : vector<2x64xf32>
    %328 = arith.divf %326, %327 : vector<2x64xf32>
    %329 = math.tanh %323 : vector<2x64xf32>
    %330 = vector.extract_strided_slice %328 {offsets = [0, 0], sizes = [2, 16], strides = [1, 1]} : vector<2x64xf32> to vector<2x16xf32>
    %331 = vector.extract_strided_slice %328 {offsets = [0, 16], sizes = [2, 16], strides = [1, 1]} : vector<2x64xf32> to vector<2x16xf32>
    %332 = vector.extract_strided_slice %329 {offsets = [0, 32], sizes = [2, 16], strides = [1, 1]} : vector<2x64xf32> to vector<2x16xf32>
    %333 = vector.extract_strided_slice %328 {offsets = [0, 48], sizes = [2, 16], strides = [1, 1]} : vector<2x64xf32> to vector<2x16xf32>
    %334 = arith.mulf %331, %319 : vector<2x16xf32>
    %335 = arith.mulf %330, %332 : vector<2x16xf32>
    %336 = arith.addf %334, %335 : vector<2x16xf32>
    %337 = math.tanh %336 : vector<2x16xf32>
    %338 = arith.mulf %333, %337 : vector<2x16xf32>
    %339 = tpu.concatenate %219, %236, %253, %270, %287, %304, %321, %338 in 1 : vector<2x16xf32>, vector<2x16xf32>, vector<2x16xf32>, vector<2x16xf32>, vector<2x16xf32>, vector<2x16xf32>, vector<2x16xf32>, vector<2x16xf32> -> vector<2x128xf32>
    %c0_64 = arith.constant 0 : index
    %c0_65 = arith.constant 0 : index
    %340 = vector.load %arg8[%c0_64, %c0_65] : memref<128x16xf32, #tpu.memory_space<vmem>>, vector<128x16xf32>
    %cst_66 = arith.constant dense<0.000000e+00> : vector<2x16xf32>
    %341 = tpu.matmul %339, %340, %cst_66 {dimension_numbers = #tpu.dot_dimension_numbers<[1], [0], [0], [1], [0, 0, 1, 1], [], []>} : vector<2x128xf32>, vector<128x16xf32>, vector<2x16xf32> -> vector<2x16xf32>
    %c0_67 = arith.constant 0 : index
    %c0_68 = arith.constant 0 : index
    %342 = vector.load %arg9[%c0_67, %c0_68] : memref<1x16xf32, #tpu.memory_space<vmem>>, vector<1x16xf32>
    %343 = vector.broadcast %342 : vector<1x16xf32> to vector<2x16xf32>
    %344 = arith.addf %341, %343 : vector<2x16xf32>
    %c0_69 = arith.constant 0 : index
    %c0_70 = arith.constant 0 : index
    %345 = vector.load %arg10[%c0_69, %c0_70] : memref<16x128xf32, #tpu.memory_space<vmem>>, vector<16x128xf32>
    %cst_71 = arith.constant dense<0.000000e+00> : vector<2x128xf32>
    %346 = tpu.matmul %344, %345, %cst_71 {dimension_numbers = #tpu.dot_dimension_numbers<[1], [0], [0], [1], [0, 0, 1, 1], [], []>} : vector<2x16xf32>, vector<16x128xf32>, vector<2x128xf32> -> vector<2x128xf32>
    %c0_72 = arith.constant 0 : index
    %c0_73 = arith.constant 0 : index
    %347 = vector.load %arg11[%c0_72, %c0_73] : memref<1x128xf32, #tpu.memory_space<vmem>>, vector<1x128xf32>
    %348 = vector.broadcast %347 : vector<1x128xf32> to vector<2x128xf32>
    %349 = arith.addf %346, %348 : vector<2x128xf32>
    %350 = vector.extract_strided_slice %349 {offsets = [0, 0], sizes = [2, 16], strides = [1, 1]} : vector<2x128xf32> to vector<2x16xf32>
    %351 = vector.extract_strided_slice %349 {offsets = [0, 16], sizes = [2, 16], strides = [1, 1]} : vector<2x128xf32> to vector<2x16xf32>
    %352 = vector.extract_strided_slice %349 {offsets = [0, 32], sizes = [2, 16], strides = [1, 1]} : vector<2x128xf32> to vector<2x16xf32>
    %353 = vector.extract_strided_slice %349 {offsets = [0, 48], sizes = [2, 16], strides = [1, 1]} : vector<2x128xf32> to vector<2x16xf32>
    %354 = vector.extract_strided_slice %349 {offsets = [0, 64], sizes = [2, 16], strides = [1, 1]} : vector<2x128xf32> to vector<2x16xf32>
    %355 = vector.extract_strided_slice %349 {offsets = [0, 80], sizes = [2, 16], strides = [1, 1]} : vector<2x128xf32> to vector<2x16xf32>
    %356 = vector.extract_strided_slice %349 {offsets = [0, 96], sizes = [2, 16], strides = [1, 1]} : vector<2x128xf32> to vector<2x16xf32>
    %357 = vector.extract_strided_slice %349 {offsets = [0, 112], sizes = [2, 16], strides = [1, 1]} : vector<2x128xf32> to vector<2x16xf32>
    %c0_74 = arith.constant 0 : index
    %c0_75 = arith.constant 0 : index
    %358 = vector.load %arg12[%c0_74, %c0_75] : memref<16x128xf32, #tpu.memory_space<vmem>>, vector<16x128xf32>
    %c0_76 = arith.constant 0 : index
    %c0_77 = arith.constant 0 : index
    %359 = vector.load %arg13[%c0_76, %c0_77] : memref<32x128xf32, #tpu.memory_space<vmem>>, vector<32x128xf32>
    %c0_78 = arith.constant 0 : index
    %c0_79 = arith.constant 0 : index
    %360 = vector.load %arg14[%c0_78, %c0_79] : memref<1x128xf32, #tpu.memory_space<vmem>>, vector<1x128xf32>
    %cst_80 = arith.constant dense<0.000000e+00> : vector<2x128xf32>
    %361 = tpu.matmul %350, %358, %cst_80 {dimension_numbers = #tpu.dot_dimension_numbers<[1], [0], [0], [1], [0, 0, 1, 1], [], []>} : vector<2x16xf32>, vector<16x128xf32>, vector<2x128xf32> -> vector<2x128xf32>
    %362 = vector.broadcast %360 : vector<1x128xf32> to vector<2x128xf32>
    %363 = arith.addf %361, %362 : vector<2x128xf32>
    %cst_81 = arith.constant dense<0.000000e+00> : vector<2x128xf32>
    %364 = tpu.matmul %351, %358, %cst_81 {dimension_numbers = #tpu.dot_dimension_numbers<[1], [0], [0], [1], [0, 0, 1, 1], [], []>} : vector<2x16xf32>, vector<16x128xf32>, vector<2x128xf32> -> vector<2x128xf32>
    %365 = vector.broadcast %360 : vector<1x128xf32> to vector<2x128xf32>
    %366 = arith.addf %364, %365 : vector<2x128xf32>
    %cst_82 = arith.constant dense<0.000000e+00> : vector<2x128xf32>
    %367 = tpu.matmul %352, %358, %cst_82 {dimension_numbers = #tpu.dot_dimension_numbers<[1], [0], [0], [1], [0, 0, 1, 1], [], []>} : vector<2x16xf32>, vector<16x128xf32>, vector<2x128xf32> -> vector<2x128xf32>
    %368 = vector.broadcast %360 : vector<1x128xf32> to vector<2x128xf32>
    %369 = arith.addf %367, %368 : vector<2x128xf32>
    %cst_83 = arith.constant dense<0.000000e+00> : vector<2x128xf32>
    %370 = tpu.matmul %353, %358, %cst_83 {dimension_numbers = #tpu.dot_dimension_numbers<[1], [0], [0], [1], [0, 0, 1, 1], [], []>} : vector<2x16xf32>, vector<16x128xf32>, vector<2x128xf32> -> vector<2x128xf32>
    %371 = vector.broadcast %360 : vector<1x128xf32> to vector<2x128xf32>
    %372 = arith.addf %370, %371 : vector<2x128xf32>
    %cst_84 = arith.constant dense<0.000000e+00> : vector<2x128xf32>
    %373 = tpu.matmul %354, %358, %cst_84 {dimension_numbers = #tpu.dot_dimension_numbers<[1], [0], [0], [1], [0, 0, 1, 1], [], []>} : vector<2x16xf32>, vector<16x128xf32>, vector<2x128xf32> -> vector<2x128xf32>
    %374 = vector.broadcast %360 : vector<1x128xf32> to vector<2x128xf32>
    %375 = arith.addf %373, %374 : vector<2x128xf32>
    %cst_85 = arith.constant dense<0.000000e+00> : vector<2x128xf32>
    %376 = tpu.matmul %355, %358, %cst_85 {dimension_numbers = #tpu.dot_dimension_numbers<[1], [0], [0], [1], [0, 0, 1, 1], [], []>} : vector<2x16xf32>, vector<16x128xf32>, vector<2x128xf32> -> vector<2x128xf32>
    %377 = vector.broadcast %360 : vector<1x128xf32> to vector<2x128xf32>
    %378 = arith.addf %376, %377 : vector<2x128xf32>
    %cst_86 = arith.constant dense<0.000000e+00> : vector<2x128xf32>
    %379 = tpu.matmul %356, %358, %cst_86 {dimension_numbers = #tpu.dot_dimension_numbers<[1], [0], [0], [1], [0, 0, 1, 1], [], []>} : vector<2x16xf32>, vector<16x128xf32>, vector<2x128xf32> -> vector<2x128xf32>
    %380 = vector.broadcast %360 : vector<1x128xf32> to vector<2x128xf32>
    %381 = arith.addf %379, %380 : vector<2x128xf32>
    %cst_87 = arith.constant dense<0.000000e+00> : vector<2x128xf32>
    %382 = tpu.matmul %357, %358, %cst_87 {dimension_numbers = #tpu.dot_dimension_numbers<[1], [0], [0], [1], [0, 0, 1, 1], [], []>} : vector<2x16xf32>, vector<16x128xf32>, vector<2x128xf32> -> vector<2x128xf32>
    %383 = vector.broadcast %360 : vector<1x128xf32> to vector<2x128xf32>
    %384 = arith.addf %382, %383 : vector<2x128xf32>
    %cst_88 = arith.constant 0.000000e+00 : f32
    %385 = vector.broadcast %cst_88 : f32 to vector<2x32xf32>
    %cst_89 = arith.constant 0.000000e+00 : f32
    %386 = vector.broadcast %cst_89 : f32 to vector<2x32xf32>
    %cst_90 = arith.constant dense<0.000000e+00> : vector<2x128xf32>
    %387 = tpu.matmul %385, %359, %cst_90 {dimension_numbers = #tpu.dot_dimension_numbers<[1], [0], [0], [1], [0, 0, 1, 1], [], []>} : vector<2x32xf32>, vector<32x128xf32>, vector<2x128xf32> -> vector<2x128xf32>
    %388 = arith.addf %363, %387 : vector<2x128xf32>
    %389 = arith.negf %388 : vector<2x128xf32>
    %390 = math.exp %389 : vector<2x128xf32>
    %cst_91 = arith.constant 1.000000e+00 : f32
    %391 = vector.broadcast %cst_91 : f32 to vector<2x128xf32>
    %392 = arith.addf %391, %390 : vector<2x128xf32>
    %393 = arith.divf %391, %392 : vector<2x128xf32>
    %394 = math.tanh %388 : vector<2x128xf32>
    %395 = vector.extract_strided_slice %393 {offsets = [0, 0], sizes = [2, 32], strides = [1, 1]} : vector<2x128xf32> to vector<2x32xf32>
    %396 = vector.extract_strided_slice %393 {offsets = [0, 32], sizes = [2, 32], strides = [1, 1]} : vector<2x128xf32> to vector<2x32xf32>
    %397 = vector.extract_strided_slice %394 {offsets = [0, 64], sizes = [2, 32], strides = [1, 1]} : vector<2x128xf32> to vector<2x32xf32>
    %398 = vector.extract_strided_slice %393 {offsets = [0, 96], sizes = [2, 32], strides = [1, 1]} : vector<2x128xf32> to vector<2x32xf32>
    %399 = arith.mulf %396, %386 : vector<2x32xf32>
    %400 = arith.mulf %395, %397 : vector<2x32xf32>
    %401 = arith.addf %399, %400 : vector<2x32xf32>
    %402 = math.tanh %401 : vector<2x32xf32>
    %403 = arith.mulf %398, %402 : vector<2x32xf32>
    %cst_92 = arith.constant dense<0.000000e+00> : vector<2x128xf32>
    %404 = tpu.matmul %403, %359, %cst_92 {dimension_numbers = #tpu.dot_dimension_numbers<[1], [0], [0], [1], [0, 0, 1, 1], [], []>} : vector<2x32xf32>, vector<32x128xf32>, vector<2x128xf32> -> vector<2x128xf32>
    %405 = arith.addf %366, %404 : vector<2x128xf32>
    %406 = arith.negf %405 : vector<2x128xf32>
    %407 = math.exp %406 : vector<2x128xf32>
    %cst_93 = arith.constant 1.000000e+00 : f32
    %408 = vector.broadcast %cst_93 : f32 to vector<2x128xf32>
    %409 = arith.addf %408, %407 : vector<2x128xf32>
    %410 = arith.divf %408, %409 : vector<2x128xf32>
    %411 = math.tanh %405 : vector<2x128xf32>
    %412 = vector.extract_strided_slice %410 {offsets = [0, 0], sizes = [2, 32], strides = [1, 1]} : vector<2x128xf32> to vector<2x32xf32>
    %413 = vector.extract_strided_slice %410 {offsets = [0, 32], sizes = [2, 32], strides = [1, 1]} : vector<2x128xf32> to vector<2x32xf32>
    %414 = vector.extract_strided_slice %411 {offsets = [0, 64], sizes = [2, 32], strides = [1, 1]} : vector<2x128xf32> to vector<2x32xf32>
    %415 = vector.extract_strided_slice %410 {offsets = [0, 96], sizes = [2, 32], strides = [1, 1]} : vector<2x128xf32> to vector<2x32xf32>
    %416 = arith.mulf %413, %401 : vector<2x32xf32>
    %417 = arith.mulf %412, %414 : vector<2x32xf32>
    %418 = arith.addf %416, %417 : vector<2x32xf32>
    %419 = math.tanh %418 : vector<2x32xf32>
    %420 = arith.mulf %415, %419 : vector<2x32xf32>
    %cst_94 = arith.constant dense<0.000000e+00> : vector<2x128xf32>
    %421 = tpu.matmul %420, %359, %cst_94 {dimension_numbers = #tpu.dot_dimension_numbers<[1], [0], [0], [1], [0, 0, 1, 1], [], []>} : vector<2x32xf32>, vector<32x128xf32>, vector<2x128xf32> -> vector<2x128xf32>
    %422 = arith.addf %369, %421 : vector<2x128xf32>
    %423 = arith.negf %422 : vector<2x128xf32>
    %424 = math.exp %423 : vector<2x128xf32>
    %cst_95 = arith.constant 1.000000e+00 : f32
    %425 = vector.broadcast %cst_95 : f32 to vector<2x128xf32>
    %426 = arith.addf %425, %424 : vector<2x128xf32>
    %427 = arith.divf %425, %426 : vector<2x128xf32>
    %428 = math.tanh %422 : vector<2x128xf32>
    %429 = vector.extract_strided_slice %427 {offsets = [0, 0], sizes = [2, 32], strides = [1, 1]} : vector<2x128xf32> to vector<2x32xf32>
    %430 = vector.extract_strided_slice %427 {offsets = [0, 32], sizes = [2, 32], strides = [1, 1]} : vector<2x128xf32> to vector<2x32xf32>
    %431 = vector.extract_strided_slice %428 {offsets = [0, 64], sizes = [2, 32], strides = [1, 1]} : vector<2x128xf32> to vector<2x32xf32>
    %432 = vector.extract_strided_slice %427 {offsets = [0, 96], sizes = [2, 32], strides = [1, 1]} : vector<2x128xf32> to vector<2x32xf32>
    %433 = arith.mulf %430, %418 : vector<2x32xf32>
    %434 = arith.mulf %429, %431 : vector<2x32xf32>
    %435 = arith.addf %433, %434 : vector<2x32xf32>
    %436 = math.tanh %435 : vector<2x32xf32>
    %437 = arith.mulf %432, %436 : vector<2x32xf32>
    %cst_96 = arith.constant dense<0.000000e+00> : vector<2x128xf32>
    %438 = tpu.matmul %437, %359, %cst_96 {dimension_numbers = #tpu.dot_dimension_numbers<[1], [0], [0], [1], [0, 0, 1, 1], [], []>} : vector<2x32xf32>, vector<32x128xf32>, vector<2x128xf32> -> vector<2x128xf32>
    %439 = arith.addf %372, %438 : vector<2x128xf32>
    %440 = arith.negf %439 : vector<2x128xf32>
    %441 = math.exp %440 : vector<2x128xf32>
    %cst_97 = arith.constant 1.000000e+00 : f32
    %442 = vector.broadcast %cst_97 : f32 to vector<2x128xf32>
    %443 = arith.addf %442, %441 : vector<2x128xf32>
    %444 = arith.divf %442, %443 : vector<2x128xf32>
    %445 = math.tanh %439 : vector<2x128xf32>
    %446 = vector.extract_strided_slice %444 {offsets = [0, 0], sizes = [2, 32], strides = [1, 1]} : vector<2x128xf32> to vector<2x32xf32>
    %447 = vector.extract_strided_slice %444 {offsets = [0, 32], sizes = [2, 32], strides = [1, 1]} : vector<2x128xf32> to vector<2x32xf32>
    %448 = vector.extract_strided_slice %445 {offsets = [0, 64], sizes = [2, 32], strides = [1, 1]} : vector<2x128xf32> to vector<2x32xf32>
    %449 = vector.extract_strided_slice %444 {offsets = [0, 96], sizes = [2, 32], strides = [1, 1]} : vector<2x128xf32> to vector<2x32xf32>
    %450 = arith.mulf %447, %435 : vector<2x32xf32>
    %451 = arith.mulf %446, %448 : vector<2x32xf32>
    %452 = arith.addf %450, %451 : vector<2x32xf32>
    %453 = math.tanh %452 : vector<2x32xf32>
    %454 = arith.mulf %449, %453 : vector<2x32xf32>
    %cst_98 = arith.constant dense<0.000000e+00> : vector<2x128xf32>
    %455 = tpu.matmul %454, %359, %cst_98 {dimension_numbers = #tpu.dot_dimension_numbers<[1], [0], [0], [1], [0, 0, 1, 1], [], []>} : vector<2x32xf32>, vector<32x128xf32>, vector<2x128xf32> -> vector<2x128xf32>
    %456 = arith.addf %375, %455 : vector<2x128xf32>
    %457 = arith.negf %456 : vector<2x128xf32>
    %458 = math.exp %457 : vector<2x128xf32>
    %cst_99 = arith.constant 1.000000e+00 : f32
    %459 = vector.broadcast %cst_99 : f32 to vector<2x128xf32>
    %460 = arith.addf %459, %458 : vector<2x128xf32>
    %461 = arith.divf %459, %460 : vector<2x128xf32>
    %462 = math.tanh %456 : vector<2x128xf32>
    %463 = vector.extract_strided_slice %461 {offsets = [0, 0], sizes = [2, 32], strides = [1, 1]} : vector<2x128xf32> to vector<2x32xf32>
    %464 = vector.extract_strided_slice %461 {offsets = [0, 32], sizes = [2, 32], strides = [1, 1]} : vector<2x128xf32> to vector<2x32xf32>
    %465 = vector.extract_strided_slice %462 {offsets = [0, 64], sizes = [2, 32], strides = [1, 1]} : vector<2x128xf32> to vector<2x32xf32>
    %466 = vector.extract_strided_slice %461 {offsets = [0, 96], sizes = [2, 32], strides = [1, 1]} : vector<2x128xf32> to vector<2x32xf32>
    %467 = arith.mulf %464, %452 : vector<2x32xf32>
    %468 = arith.mulf %463, %465 : vector<2x32xf32>
    %469 = arith.addf %467, %468 : vector<2x32xf32>
    %470 = math.tanh %469 : vector<2x32xf32>
    %471 = arith.mulf %466, %470 : vector<2x32xf32>
    %cst_100 = arith.constant dense<0.000000e+00> : vector<2x128xf32>
    %472 = tpu.matmul %471, %359, %cst_100 {dimension_numbers = #tpu.dot_dimension_numbers<[1], [0], [0], [1], [0, 0, 1, 1], [], []>} : vector<2x32xf32>, vector<32x128xf32>, vector<2x128xf32> -> vector<2x128xf32>
    %473 = arith.addf %378, %472 : vector<2x128xf32>
    %474 = arith.negf %473 : vector<2x128xf32>
    %475 = math.exp %474 : vector<2x128xf32>
    %cst_101 = arith.constant 1.000000e+00 : f32
    %476 = vector.broadcast %cst_101 : f32 to vector<2x128xf32>
    %477 = arith.addf %476, %475 : vector<2x128xf32>
    %478 = arith.divf %476, %477 : vector<2x128xf32>
    %479 = math.tanh %473 : vector<2x128xf32>
    %480 = vector.extract_strided_slice %478 {offsets = [0, 0], sizes = [2, 32], strides = [1, 1]} : vector<2x128xf32> to vector<2x32xf32>
    %481 = vector.extract_strided_slice %478 {offsets = [0, 32], sizes = [2, 32], strides = [1, 1]} : vector<2x128xf32> to vector<2x32xf32>
    %482 = vector.extract_strided_slice %479 {offsets = [0, 64], sizes = [2, 32], strides = [1, 1]} : vector<2x128xf32> to vector<2x32xf32>
    %483 = vector.extract_strided_slice %478 {offsets = [0, 96], sizes = [2, 32], strides = [1, 1]} : vector<2x128xf32> to vector<2x32xf32>
    %484 = arith.mulf %481, %469 : vector<2x32xf32>
    %485 = arith.mulf %480, %482 : vector<2x32xf32>
    %486 = arith.addf %484, %485 : vector<2x32xf32>
    %487 = math.tanh %486 : vector<2x32xf32>
    %488 = arith.mulf %483, %487 : vector<2x32xf32>
    %cst_102 = arith.constant dense<0.000000e+00> : vector<2x128xf32>
    %489 = tpu.matmul %488, %359, %cst_102 {dimension_numbers = #tpu.dot_dimension_numbers<[1], [0], [0], [1], [0, 0, 1, 1], [], []>} : vector<2x32xf32>, vector<32x128xf32>, vector<2x128xf32> -> vector<2x128xf32>
    %490 = arith.addf %381, %489 : vector<2x128xf32>
    %491 = arith.negf %490 : vector<2x128xf32>
    %492 = math.exp %491 : vector<2x128xf32>
    %cst_103 = arith.constant 1.000000e+00 : f32
    %493 = vector.broadcast %cst_103 : f32 to vector<2x128xf32>
    %494 = arith.addf %493, %492 : vector<2x128xf32>
    %495 = arith.divf %493, %494 : vector<2x128xf32>
    %496 = math.tanh %490 : vector<2x128xf32>
    %497 = vector.extract_strided_slice %495 {offsets = [0, 0], sizes = [2, 32], strides = [1, 1]} : vector<2x128xf32> to vector<2x32xf32>
    %498 = vector.extract_strided_slice %495 {offsets = [0, 32], sizes = [2, 32], strides = [1, 1]} : vector<2x128xf32> to vector<2x32xf32>
    %499 = vector.extract_strided_slice %496 {offsets = [0, 64], sizes = [2, 32], strides = [1, 1]} : vector<2x128xf32> to vector<2x32xf32>
    %500 = vector.extract_strided_slice %495 {offsets = [0, 96], sizes = [2, 32], strides = [1, 1]} : vector<2x128xf32> to vector<2x32xf32>
    %501 = arith.mulf %498, %486 : vector<2x32xf32>
    %502 = arith.mulf %497, %499 : vector<2x32xf32>
    %503 = arith.addf %501, %502 : vector<2x32xf32>
    %504 = math.tanh %503 : vector<2x32xf32>
    %505 = arith.mulf %500, %504 : vector<2x32xf32>
    %cst_104 = arith.constant dense<0.000000e+00> : vector<2x128xf32>
    %506 = tpu.matmul %505, %359, %cst_104 {dimension_numbers = #tpu.dot_dimension_numbers<[1], [0], [0], [1], [0, 0, 1, 1], [], []>} : vector<2x32xf32>, vector<32x128xf32>, vector<2x128xf32> -> vector<2x128xf32>
    %507 = arith.addf %384, %506 : vector<2x128xf32>
    %508 = arith.negf %507 : vector<2x128xf32>
    %509 = math.exp %508 : vector<2x128xf32>
    %cst_105 = arith.constant 1.000000e+00 : f32
    %510 = vector.broadcast %cst_105 : f32 to vector<2x128xf32>
    %511 = arith.addf %510, %509 : vector<2x128xf32>
    %512 = arith.divf %510, %511 : vector<2x128xf32>
    %513 = math.tanh %507 : vector<2x128xf32>
    %514 = vector.extract_strided_slice %512 {offsets = [0, 0], sizes = [2, 32], strides = [1, 1]} : vector<2x128xf32> to vector<2x32xf32>
    %515 = vector.extract_strided_slice %512 {offsets = [0, 32], sizes = [2, 32], strides = [1, 1]} : vector<2x128xf32> to vector<2x32xf32>
    %516 = vector.extract_strided_slice %513 {offsets = [0, 64], sizes = [2, 32], strides = [1, 1]} : vector<2x128xf32> to vector<2x32xf32>
    %517 = vector.extract_strided_slice %512 {offsets = [0, 96], sizes = [2, 32], strides = [1, 1]} : vector<2x128xf32> to vector<2x32xf32>
    %518 = arith.mulf %515, %503 : vector<2x32xf32>
    %519 = arith.mulf %514, %516 : vector<2x32xf32>
    %520 = arith.addf %518, %519 : vector<2x32xf32>
    %521 = math.tanh %520 : vector<2x32xf32>
    %522 = arith.mulf %517, %521 : vector<2x32xf32>
    %c0_106 = arith.constant 0 : index
    %c0_107 = arith.constant 0 : index
    %523 = vector.load %arg15[%c0_106, %c0_107] : memref<32x128xf32, #tpu.memory_space<vmem>>, vector<32x128xf32>
    %c0_108 = arith.constant 0 : index
    %c0_109 = arith.constant 0 : index
    %524 = vector.load %arg16[%c0_108, %c0_109] : memref<32x128xf32, #tpu.memory_space<vmem>>, vector<32x128xf32>
    %c0_110 = arith.constant 0 : index
    %c0_111 = arith.constant 0 : index
    %525 = vector.load %arg17[%c0_110, %c0_111] : memref<1x128xf32, #tpu.memory_space<vmem>>, vector<1x128xf32>
    %cst_112 = arith.constant dense<0.000000e+00> : vector<2x128xf32>
    %526 = tpu.matmul %403, %523, %cst_112 {dimension_numbers = #tpu.dot_dimension_numbers<[1], [0], [0], [1], [0, 0, 1, 1], [], []>} : vector<2x32xf32>, vector<32x128xf32>, vector<2x128xf32> -> vector<2x128xf32>
    %527 = vector.broadcast %525 : vector<1x128xf32> to vector<2x128xf32>
    %528 = arith.addf %526, %527 : vector<2x128xf32>
    %cst_113 = arith.constant dense<0.000000e+00> : vector<2x128xf32>
    %529 = tpu.matmul %420, %523, %cst_113 {dimension_numbers = #tpu.dot_dimension_numbers<[1], [0], [0], [1], [0, 0, 1, 1], [], []>} : vector<2x32xf32>, vector<32x128xf32>, vector<2x128xf32> -> vector<2x128xf32>
    %530 = vector.broadcast %525 : vector<1x128xf32> to vector<2x128xf32>
    %531 = arith.addf %529, %530 : vector<2x128xf32>
    %cst_114 = arith.constant dense<0.000000e+00> : vector<2x128xf32>
    %532 = tpu.matmul %437, %523, %cst_114 {dimension_numbers = #tpu.dot_dimension_numbers<[1], [0], [0], [1], [0, 0, 1, 1], [], []>} : vector<2x32xf32>, vector<32x128xf32>, vector<2x128xf32> -> vector<2x128xf32>
    %533 = vector.broadcast %525 : vector<1x128xf32> to vector<2x128xf32>
    %534 = arith.addf %532, %533 : vector<2x128xf32>
    %cst_115 = arith.constant dense<0.000000e+00> : vector<2x128xf32>
    %535 = tpu.matmul %454, %523, %cst_115 {dimension_numbers = #tpu.dot_dimension_numbers<[1], [0], [0], [1], [0, 0, 1, 1], [], []>} : vector<2x32xf32>, vector<32x128xf32>, vector<2x128xf32> -> vector<2x128xf32>
    %536 = vector.broadcast %525 : vector<1x128xf32> to vector<2x128xf32>
    %537 = arith.addf %535, %536 : vector<2x128xf32>
    %cst_116 = arith.constant dense<0.000000e+00> : vector<2x128xf32>
    %538 = tpu.matmul %471, %523, %cst_116 {dimension_numbers = #tpu.dot_dimension_numbers<[1], [0], [0], [1], [0, 0, 1, 1], [], []>} : vector<2x32xf32>, vector<32x128xf32>, vector<2x128xf32> -> vector<2x128xf32>
    %539 = vector.broadcast %525 : vector<1x128xf32> to vector<2x128xf32>
    %540 = arith.addf %538, %539 : vector<2x128xf32>
    %cst_117 = arith.constant dense<0.000000e+00> : vector<2x128xf32>
    %541 = tpu.matmul %488, %523, %cst_117 {dimension_numbers = #tpu.dot_dimension_numbers<[1], [0], [0], [1], [0, 0, 1, 1], [], []>} : vector<2x32xf32>, vector<32x128xf32>, vector<2x128xf32> -> vector<2x128xf32>
    %542 = vector.broadcast %525 : vector<1x128xf32> to vector<2x128xf32>
    %543 = arith.addf %541, %542 : vector<2x128xf32>
    %cst_118 = arith.constant dense<0.000000e+00> : vector<2x128xf32>
    %544 = tpu.matmul %505, %523, %cst_118 {dimension_numbers = #tpu.dot_dimension_numbers<[1], [0], [0], [1], [0, 0, 1, 1], [], []>} : vector<2x32xf32>, vector<32x128xf32>, vector<2x128xf32> -> vector<2x128xf32>
    %545 = vector.broadcast %525 : vector<1x128xf32> to vector<2x128xf32>
    %546 = arith.addf %544, %545 : vector<2x128xf32>
    %cst_119 = arith.constant dense<0.000000e+00> : vector<2x128xf32>
    %547 = tpu.matmul %522, %523, %cst_119 {dimension_numbers = #tpu.dot_dimension_numbers<[1], [0], [0], [1], [0, 0, 1, 1], [], []>} : vector<2x32xf32>, vector<32x128xf32>, vector<2x128xf32> -> vector<2x128xf32>
    %548 = vector.broadcast %525 : vector<1x128xf32> to vector<2x128xf32>
    %549 = arith.addf %547, %548 : vector<2x128xf32>
    %cst_120 = arith.constant 0.000000e+00 : f32
    %550 = vector.broadcast %cst_120 : f32 to vector<2x32xf32>
    %cst_121 = arith.constant 0.000000e+00 : f32
    %551 = vector.broadcast %cst_121 : f32 to vector<2x32xf32>
    %cst_122 = arith.constant dense<0.000000e+00> : vector<2x128xf32>
    %552 = tpu.matmul %550, %524, %cst_122 {dimension_numbers = #tpu.dot_dimension_numbers<[1], [0], [0], [1], [0, 0, 1, 1], [], []>} : vector<2x32xf32>, vector<32x128xf32>, vector<2x128xf32> -> vector<2x128xf32>
    %553 = arith.addf %528, %552 : vector<2x128xf32>
    %554 = arith.negf %553 : vector<2x128xf32>
    %555 = math.exp %554 : vector<2x128xf32>
    %cst_123 = arith.constant 1.000000e+00 : f32
    %556 = vector.broadcast %cst_123 : f32 to vector<2x128xf32>
    %557 = arith.addf %556, %555 : vector<2x128xf32>
    %558 = arith.divf %556, %557 : vector<2x128xf32>
    %559 = math.tanh %553 : vector<2x128xf32>
    %560 = vector.extract_strided_slice %558 {offsets = [0, 0], sizes = [2, 32], strides = [1, 1]} : vector<2x128xf32> to vector<2x32xf32>
    %561 = vector.extract_strided_slice %558 {offsets = [0, 32], sizes = [2, 32], strides = [1, 1]} : vector<2x128xf32> to vector<2x32xf32>
    %562 = vector.extract_strided_slice %559 {offsets = [0, 64], sizes = [2, 32], strides = [1, 1]} : vector<2x128xf32> to vector<2x32xf32>
    %563 = vector.extract_strided_slice %558 {offsets = [0, 96], sizes = [2, 32], strides = [1, 1]} : vector<2x128xf32> to vector<2x32xf32>
    %564 = arith.mulf %561, %551 : vector<2x32xf32>
    %565 = arith.mulf %560, %562 : vector<2x32xf32>
    %566 = arith.addf %564, %565 : vector<2x32xf32>
    %567 = math.tanh %566 : vector<2x32xf32>
    %568 = arith.mulf %563, %567 : vector<2x32xf32>
    %cst_124 = arith.constant dense<0.000000e+00> : vector<2x128xf32>
    %569 = tpu.matmul %568, %524, %cst_124 {dimension_numbers = #tpu.dot_dimension_numbers<[1], [0], [0], [1], [0, 0, 1, 1], [], []>} : vector<2x32xf32>, vector<32x128xf32>, vector<2x128xf32> -> vector<2x128xf32>
    %570 = arith.addf %531, %569 : vector<2x128xf32>
    %571 = arith.negf %570 : vector<2x128xf32>
    %572 = math.exp %571 : vector<2x128xf32>
    %cst_125 = arith.constant 1.000000e+00 : f32
    %573 = vector.broadcast %cst_125 : f32 to vector<2x128xf32>
    %574 = arith.addf %573, %572 : vector<2x128xf32>
    %575 = arith.divf %573, %574 : vector<2x128xf32>
    %576 = math.tanh %570 : vector<2x128xf32>
    %577 = vector.extract_strided_slice %575 {offsets = [0, 0], sizes = [2, 32], strides = [1, 1]} : vector<2x128xf32> to vector<2x32xf32>
    %578 = vector.extract_strided_slice %575 {offsets = [0, 32], sizes = [2, 32], strides = [1, 1]} : vector<2x128xf32> to vector<2x32xf32>
    %579 = vector.extract_strided_slice %576 {offsets = [0, 64], sizes = [2, 32], strides = [1, 1]} : vector<2x128xf32> to vector<2x32xf32>
    %580 = vector.extract_strided_slice %575 {offsets = [0, 96], sizes = [2, 32], strides = [1, 1]} : vector<2x128xf32> to vector<2x32xf32>
    %581 = arith.mulf %578, %566 : vector<2x32xf32>
    %582 = arith.mulf %577, %579 : vector<2x32xf32>
    %583 = arith.addf %581, %582 : vector<2x32xf32>
    %584 = math.tanh %583 : vector<2x32xf32>
    %585 = arith.mulf %580, %584 : vector<2x32xf32>
    %cst_126 = arith.constant dense<0.000000e+00> : vector<2x128xf32>
    %586 = tpu.matmul %585, %524, %cst_126 {dimension_numbers = #tpu.dot_dimension_numbers<[1], [0], [0], [1], [0, 0, 1, 1], [], []>} : vector<2x32xf32>, vector<32x128xf32>, vector<2x128xf32> -> vector<2x128xf32>
    %587 = arith.addf %534, %586 : vector<2x128xf32>
    %588 = arith.negf %587 : vector<2x128xf32>
    %589 = math.exp %588 : vector<2x128xf32>
    %cst_127 = arith.constant 1.000000e+00 : f32
    %590 = vector.broadcast %cst_127 : f32 to vector<2x128xf32>
    %591 = arith.addf %590, %589 : vector<2x128xf32>
    %592 = arith.divf %590, %591 : vector<2x128xf32>
    %593 = math.tanh %587 : vector<2x128xf32>
    %594 = vector.extract_strided_slice %592 {offsets = [0, 0], sizes = [2, 32], strides = [1, 1]} : vector<2x128xf32> to vector<2x32xf32>
    %595 = vector.extract_strided_slice %592 {offsets = [0, 32], sizes = [2, 32], strides = [1, 1]} : vector<2x128xf32> to vector<2x32xf32>
    %596 = vector.extract_strided_slice %593 {offsets = [0, 64], sizes = [2, 32], strides = [1, 1]} : vector<2x128xf32> to vector<2x32xf32>
    %597 = vector.extract_strided_slice %592 {offsets = [0, 96], sizes = [2, 32], strides = [1, 1]} : vector<2x128xf32> to vector<2x32xf32>
    %598 = arith.mulf %595, %583 : vector<2x32xf32>
    %599 = arith.mulf %594, %596 : vector<2x32xf32>
    %600 = arith.addf %598, %599 : vector<2x32xf32>
    %601 = math.tanh %600 : vector<2x32xf32>
    %602 = arith.mulf %597, %601 : vector<2x32xf32>
    %cst_128 = arith.constant dense<0.000000e+00> : vector<2x128xf32>
    %603 = tpu.matmul %602, %524, %cst_128 {dimension_numbers = #tpu.dot_dimension_numbers<[1], [0], [0], [1], [0, 0, 1, 1], [], []>} : vector<2x32xf32>, vector<32x128xf32>, vector<2x128xf32> -> vector<2x128xf32>
    %604 = arith.addf %537, %603 : vector<2x128xf32>
    %605 = arith.negf %604 : vector<2x128xf32>
    %606 = math.exp %605 : vector<2x128xf32>
    %cst_129 = arith.constant 1.000000e+00 : f32
    %607 = vector.broadcast %cst_129 : f32 to vector<2x128xf32>
    %608 = arith.addf %607, %606 : vector<2x128xf32>
    %609 = arith.divf %607, %608 : vector<2x128xf32>
    %610 = math.tanh %604 : vector<2x128xf32>
    %611 = vector.extract_strided_slice %609 {offsets = [0, 0], sizes = [2, 32], strides = [1, 1]} : vector<2x128xf32> to vector<2x32xf32>
    %612 = vector.extract_strided_slice %609 {offsets = [0, 32], sizes = [2, 32], strides = [1, 1]} : vector<2x128xf32> to vector<2x32xf32>
    %613 = vector.extract_strided_slice %610 {offsets = [0, 64], sizes = [2, 32], strides = [1, 1]} : vector<2x128xf32> to vector<2x32xf32>
    %614 = vector.extract_strided_slice %609 {offsets = [0, 96], sizes = [2, 32], strides = [1, 1]} : vector<2x128xf32> to vector<2x32xf32>
    %615 = arith.mulf %612, %600 : vector<2x32xf32>
    %616 = arith.mulf %611, %613 : vector<2x32xf32>
    %617 = arith.addf %615, %616 : vector<2x32xf32>
    %618 = math.tanh %617 : vector<2x32xf32>
    %619 = arith.mulf %614, %618 : vector<2x32xf32>
    %cst_130 = arith.constant dense<0.000000e+00> : vector<2x128xf32>
    %620 = tpu.matmul %619, %524, %cst_130 {dimension_numbers = #tpu.dot_dimension_numbers<[1], [0], [0], [1], [0, 0, 1, 1], [], []>} : vector<2x32xf32>, vector<32x128xf32>, vector<2x128xf32> -> vector<2x128xf32>
    %621 = arith.addf %540, %620 : vector<2x128xf32>
    %622 = arith.negf %621 : vector<2x128xf32>
    %623 = math.exp %622 : vector<2x128xf32>
    %cst_131 = arith.constant 1.000000e+00 : f32
    %624 = vector.broadcast %cst_131 : f32 to vector<2x128xf32>
    %625 = arith.addf %624, %623 : vector<2x128xf32>
    %626 = arith.divf %624, %625 : vector<2x128xf32>
    %627 = math.tanh %621 : vector<2x128xf32>
    %628 = vector.extract_strided_slice %626 {offsets = [0, 0], sizes = [2, 32], strides = [1, 1]} : vector<2x128xf32> to vector<2x32xf32>
    %629 = vector.extract_strided_slice %626 {offsets = [0, 32], sizes = [2, 32], strides = [1, 1]} : vector<2x128xf32> to vector<2x32xf32>
    %630 = vector.extract_strided_slice %627 {offsets = [0, 64], sizes = [2, 32], strides = [1, 1]} : vector<2x128xf32> to vector<2x32xf32>
    %631 = vector.extract_strided_slice %626 {offsets = [0, 96], sizes = [2, 32], strides = [1, 1]} : vector<2x128xf32> to vector<2x32xf32>
    %632 = arith.mulf %629, %617 : vector<2x32xf32>
    %633 = arith.mulf %628, %630 : vector<2x32xf32>
    %634 = arith.addf %632, %633 : vector<2x32xf32>
    %635 = math.tanh %634 : vector<2x32xf32>
    %636 = arith.mulf %631, %635 : vector<2x32xf32>
    %cst_132 = arith.constant dense<0.000000e+00> : vector<2x128xf32>
    %637 = tpu.matmul %636, %524, %cst_132 {dimension_numbers = #tpu.dot_dimension_numbers<[1], [0], [0], [1], [0, 0, 1, 1], [], []>} : vector<2x32xf32>, vector<32x128xf32>, vector<2x128xf32> -> vector<2x128xf32>
    %638 = arith.addf %543, %637 : vector<2x128xf32>
    %639 = arith.negf %638 : vector<2x128xf32>
    %640 = math.exp %639 : vector<2x128xf32>
    %cst_133 = arith.constant 1.000000e+00 : f32
    %641 = vector.broadcast %cst_133 : f32 to vector<2x128xf32>
    %642 = arith.addf %641, %640 : vector<2x128xf32>
    %643 = arith.divf %641, %642 : vector<2x128xf32>
    %644 = math.tanh %638 : vector<2x128xf32>
    %645 = vector.extract_strided_slice %643 {offsets = [0, 0], sizes = [2, 32], strides = [1, 1]} : vector<2x128xf32> to vector<2x32xf32>
    %646 = vector.extract_strided_slice %643 {offsets = [0, 32], sizes = [2, 32], strides = [1, 1]} : vector<2x128xf32> to vector<2x32xf32>
    %647 = vector.extract_strided_slice %644 {offsets = [0, 64], sizes = [2, 32], strides = [1, 1]} : vector<2x128xf32> to vector<2x32xf32>
    %648 = vector.extract_strided_slice %643 {offsets = [0, 96], sizes = [2, 32], strides = [1, 1]} : vector<2x128xf32> to vector<2x32xf32>
    %649 = arith.mulf %646, %634 : vector<2x32xf32>
    %650 = arith.mulf %645, %647 : vector<2x32xf32>
    %651 = arith.addf %649, %650 : vector<2x32xf32>
    %652 = math.tanh %651 : vector<2x32xf32>
    %653 = arith.mulf %648, %652 : vector<2x32xf32>
    %cst_134 = arith.constant dense<0.000000e+00> : vector<2x128xf32>
    %654 = tpu.matmul %653, %524, %cst_134 {dimension_numbers = #tpu.dot_dimension_numbers<[1], [0], [0], [1], [0, 0, 1, 1], [], []>} : vector<2x32xf32>, vector<32x128xf32>, vector<2x128xf32> -> vector<2x128xf32>
    %655 = arith.addf %546, %654 : vector<2x128xf32>
    %656 = arith.negf %655 : vector<2x128xf32>
    %657 = math.exp %656 : vector<2x128xf32>
    %cst_135 = arith.constant 1.000000e+00 : f32
    %658 = vector.broadcast %cst_135 : f32 to vector<2x128xf32>
    %659 = arith.addf %658, %657 : vector<2x128xf32>
    %660 = arith.divf %658, %659 : vector<2x128xf32>
    %661 = math.tanh %655 : vector<2x128xf32>
    %662 = vector.extract_strided_slice %660 {offsets = [0, 0], sizes = [2, 32], strides = [1, 1]} : vector<2x128xf32> to vector<2x32xf32>
    %663 = vector.extract_strided_slice %660 {offsets = [0, 32], sizes = [2, 32], strides = [1, 1]} : vector<2x128xf32> to vector<2x32xf32>
    %664 = vector.extract_strided_slice %661 {offsets = [0, 64], sizes = [2, 32], strides = [1, 1]} : vector<2x128xf32> to vector<2x32xf32>
    %665 = vector.extract_strided_slice %660 {offsets = [0, 96], sizes = [2, 32], strides = [1, 1]} : vector<2x128xf32> to vector<2x32xf32>
    %666 = arith.mulf %663, %651 : vector<2x32xf32>
    %667 = arith.mulf %662, %664 : vector<2x32xf32>
    %668 = arith.addf %666, %667 : vector<2x32xf32>
    %669 = math.tanh %668 : vector<2x32xf32>
    %670 = arith.mulf %665, %669 : vector<2x32xf32>
    %cst_136 = arith.constant dense<0.000000e+00> : vector<2x128xf32>
    %671 = tpu.matmul %670, %524, %cst_136 {dimension_numbers = #tpu.dot_dimension_numbers<[1], [0], [0], [1], [0, 0, 1, 1], [], []>} : vector<2x32xf32>, vector<32x128xf32>, vector<2x128xf32> -> vector<2x128xf32>
    %672 = arith.addf %549, %671 : vector<2x128xf32>
    %673 = arith.negf %672 : vector<2x128xf32>
    %674 = math.exp %673 : vector<2x128xf32>
    %cst_137 = arith.constant 1.000000e+00 : f32
    %675 = vector.broadcast %cst_137 : f32 to vector<2x128xf32>
    %676 = arith.addf %675, %674 : vector<2x128xf32>
    %677 = arith.divf %675, %676 : vector<2x128xf32>
    %678 = math.tanh %672 : vector<2x128xf32>
    %679 = vector.extract_strided_slice %677 {offsets = [0, 0], sizes = [2, 32], strides = [1, 1]} : vector<2x128xf32> to vector<2x32xf32>
    %680 = vector.extract_strided_slice %677 {offsets = [0, 32], sizes = [2, 32], strides = [1, 1]} : vector<2x128xf32> to vector<2x32xf32>
    %681 = vector.extract_strided_slice %678 {offsets = [0, 64], sizes = [2, 32], strides = [1, 1]} : vector<2x128xf32> to vector<2x32xf32>
    %682 = vector.extract_strided_slice %677 {offsets = [0, 96], sizes = [2, 32], strides = [1, 1]} : vector<2x128xf32> to vector<2x32xf32>
    %683 = arith.mulf %680, %668 : vector<2x32xf32>
    %684 = arith.mulf %679, %681 : vector<2x32xf32>
    %685 = arith.addf %683, %684 : vector<2x32xf32>
    %686 = math.tanh %685 : vector<2x32xf32>
    %687 = arith.mulf %682, %686 : vector<2x32xf32>
    %c0_138 = arith.constant 0 : index
    %c0_139 = arith.constant 0 : index
    %688 = vector.load %arg18[%c0_138, %c0_139] : memref<32x4xf32, #tpu.memory_space<vmem>>, vector<32x4xf32>
    %c0_140 = arith.constant 0 : index
    %c0_141 = arith.constant 0 : index
    %689 = vector.load %arg19[%c0_140, %c0_141] : memref<1x4xf32, #tpu.memory_space<vmem>>, vector<1x4xf32>
    %cst_142 = arith.constant dense<0.000000e+00> : vector<2x4xf32>
    %690 = tpu.matmul %568, %688, %cst_142 {dimension_numbers = #tpu.dot_dimension_numbers<[1], [0], [0], [1], [0, 0, 1, 1], [], []>} : vector<2x32xf32>, vector<32x4xf32>, vector<2x4xf32> -> vector<2x4xf32>
    %691 = vector.broadcast %689 : vector<1x4xf32> to vector<2x4xf32>
    %692 = arith.addf %690, %691 : vector<2x4xf32>
    %cst_143 = arith.constant dense<0.000000e+00> : vector<2x4xf32>
    %693 = tpu.matmul %585, %688, %cst_143 {dimension_numbers = #tpu.dot_dimension_numbers<[1], [0], [0], [1], [0, 0, 1, 1], [], []>} : vector<2x32xf32>, vector<32x4xf32>, vector<2x4xf32> -> vector<2x4xf32>
    %694 = vector.broadcast %689 : vector<1x4xf32> to vector<2x4xf32>
    %695 = arith.addf %693, %694 : vector<2x4xf32>
    %cst_144 = arith.constant dense<0.000000e+00> : vector<2x4xf32>
    %696 = tpu.matmul %602, %688, %cst_144 {dimension_numbers = #tpu.dot_dimension_numbers<[1], [0], [0], [1], [0, 0, 1, 1], [], []>} : vector<2x32xf32>, vector<32x4xf32>, vector<2x4xf32> -> vector<2x4xf32>
    %697 = vector.broadcast %689 : vector<1x4xf32> to vector<2x4xf32>
    %698 = arith.addf %696, %697 : vector<2x4xf32>
    %cst_145 = arith.constant dense<0.000000e+00> : vector<2x4xf32>
    %699 = tpu.matmul %619, %688, %cst_145 {dimension_numbers = #tpu.dot_dimension_numbers<[1], [0], [0], [1], [0, 0, 1, 1], [], []>} : vector<2x32xf32>, vector<32x4xf32>, vector<2x4xf32> -> vector<2x4xf32>
    %700 = vector.broadcast %689 : vector<1x4xf32> to vector<2x4xf32>
    %701 = arith.addf %699, %700 : vector<2x4xf32>
    %cst_146 = arith.constant dense<0.000000e+00> : vector<2x4xf32>
    %702 = tpu.matmul %636, %688, %cst_146 {dimension_numbers = #tpu.dot_dimension_numbers<[1], [0], [0], [1], [0, 0, 1, 1], [], []>} : vector<2x32xf32>, vector<32x4xf32>, vector<2x4xf32> -> vector<2x4xf32>
    %703 = vector.broadcast %689 : vector<1x4xf32> to vector<2x4xf32>
    %704 = arith.addf %702, %703 : vector<2x4xf32>
    %cst_147 = arith.constant dense<0.000000e+00> : vector<2x4xf32>
    %705 = tpu.matmul %653, %688, %cst_147 {dimension_numbers = #tpu.dot_dimension_numbers<[1], [0], [0], [1], [0, 0, 1, 1], [], []>} : vector<2x32xf32>, vector<32x4xf32>, vector<2x4xf32> -> vector<2x4xf32>
    %706 = vector.broadcast %689 : vector<1x4xf32> to vector<2x4xf32>
    %707 = arith.addf %705, %706 : vector<2x4xf32>
    %cst_148 = arith.constant dense<0.000000e+00> : vector<2x4xf32>
    %708 = tpu.matmul %670, %688, %cst_148 {dimension_numbers = #tpu.dot_dimension_numbers<[1], [0], [0], [1], [0, 0, 1, 1], [], []>} : vector<2x32xf32>, vector<32x4xf32>, vector<2x4xf32> -> vector<2x4xf32>
    %709 = vector.broadcast %689 : vector<1x4xf32> to vector<2x4xf32>
    %710 = arith.addf %708, %709 : vector<2x4xf32>
    %cst_149 = arith.constant dense<0.000000e+00> : vector<2x4xf32>
    %711 = tpu.matmul %687, %688, %cst_149 {dimension_numbers = #tpu.dot_dimension_numbers<[1], [0], [0], [1], [0, 0, 1, 1], [], []>} : vector<2x32xf32>, vector<32x4xf32>, vector<2x4xf32> -> vector<2x4xf32>
    %712 = vector.broadcast %689 : vector<1x4xf32> to vector<2x4xf32>
    %713 = arith.addf %711, %712 : vector<2x4xf32>
    %714 = tpu.concatenate %692, %695, %698, %701, %704, %707, %710, %713 in 1 : vector<2x4xf32>, vector<2x4xf32>, vector<2x4xf32>, vector<2x4xf32>, vector<2x4xf32>, vector<2x4xf32>, vector<2x4xf32>, vector<2x4xf32> -> vector<2x32xf32>
    %c0_150 = arith.constant 0 : index
    %c0_151 = arith.constant 0 : index
    %715 = vector.load %arg20[%c0_150, %c0_151] : memref<2x32xf32, #tpu.memory_space<vmem>>, vector<2x32xf32>
    tpu.vector_store %arg20[%c0_150, %c0_151], %714 {strides = array<i32>} : memref<2x32xf32, #tpu.memory_space<vmem>>, vector<2x32xf32>,
    return
  }
  func.func @transform_0(%arg0: i32) -> (i32, i32) {
    %c0_i32 = arith.constant 0 : i32
    %c0_i32_0 = arith.constant 0 : i32
    %c0_i32_1 = arith.constant 0 : i32
    return %c0_i32, %c0_i32_0 : i32, i32
  }
  func.func @transform_1(%arg0: i32) -> (i32, i32) {
    %c0_i32 = arith.constant 0 : i32
    %c0_i32_0 = arith.constant 0 : i32
    %c0_i32_1 = arith.constant 0 : i32
    return %c0_i32, %c0_i32_0 : i32, i32
  }
  func.func @transform_2(%arg0: i32) -> (i32, i32) {
    %c0_i32 = arith.constant 0 : i32
    %c0_i32_0 = arith.constant 0 : i32
    %c0_i32_1 = arith.constant 0 : i32
    return %c0_i32, %c0_i32_0 : i32, i32
  }
  func.func @transform_3(%arg0: i32) -> (i32, i32) {
    %c0_i32 = arith.constant 0 : i32
    %c0_i32_0 = arith.constant 0 : i32
    %c0_i32_1 = arith.constant 0 : i32
    return %c0_i32, %c0_i32_0 : i32, i32
  }
  func.func @transform_4(%arg0: i32) -> (i32, i32) {
    %c0_i32 = arith.constant 0 : i32
    %c0_i32_0 = arith.constant 0 : i32
    %c0_i32_1 = arith.constant 0 : i32
    return %c0_i32, %c0_i32_0 : i32, i32
  }
  func.func @transform_5(%arg0: i32) -> (i32, i32) {
    %c0_i32 = arith.constant 0 : i32
    %c0_i32_0 = arith.constant 0 : i32
    %c0_i32_1 = arith.constant 0 : i32
    return %c0_i32, %c0_i32_0 : i32, i32
  }
  func.func @transform_6(%arg0: i32) -> (i32, i32) {
    %c0_i32 = arith.constant 0 : i32
    %c0_i32_0 = arith.constant 0 : i32
    %c0_i32_1 = arith.constant 0 : i32
    return %c0_i32, %c0_i32_0 : i32, i32
  }
  func.func @transform_7(%arg0: i32) -> (i32, i32) {
    %c0_i32 = arith.constant 0 : i32
    %c0_i32_0 = arith.constant 0 : i32
    %c0_i32_1 = arith.constant 0 : i32
    return %c0_i32, %c0_i32_0 : i32, i32
  }
  func.func @transform_8(%arg0: i32) -> (i32, i32) {
    %c0_i32 = arith.constant 0 : i32
    %c0_i32_0 = arith.constant 0 : i32
    %c0_i32_1 = arith.constant 0 : i32
    return %c0_i32, %c0_i32_0 : i32, i32
  }
  func.func @transform_9(%arg0: i32) -> (i32, i32) {
    %c0_i32 = arith.constant 0 : i32
    %c0_i32_0 = arith.constant 0 : i32
    %c0_i32_1 = arith.constant 0 : i32
    return %c0_i32, %c0_i32_0 : i32, i32
  }
  func.func @transform_10(%arg0: i32) -> (i32, i32) {
    %c0_i32 = arith.constant 0 : i32
    %c0_i32_0 = arith.constant 0 : i32
    %c0_i32_1 = arith.constant 0 : i32
    return %c0_i32, %c0_i32_0 : i32, i32
  }
  func.func @transform_11(%arg0: i32) -> (i32, i32) {
    %c0_i32 = arith.constant 0 : i32
    %c0_i32_0 = arith.constant 0 : i32
    %c0_i32_1 = arith.constant 0 : i32
    return %c0_i32, %c0_i32_0 : i32, i32
  }
  func.func @transform_12(%arg0: i32) -> (i32, i32) {
    %c0_i32 = arith.constant 0 : i32
    %c0_i32_0 = arith.constant 0 : i32
    %c0_i32_1 = arith.constant 0 : i32
    return %c0_i32, %c0_i32_0 : i32, i32
  }
  func.func @transform_13(%arg0: i32) -> (i32, i32) {
    %c0_i32 = arith.constant 0 : i32
    %c0_i32_0 = arith.constant 0 : i32
    %c0_i32_1 = arith.constant 0 : i32
    return %c0_i32, %c0_i32_0 : i32, i32
  }
  func.func @transform_14(%arg0: i32) -> (i32, i32) {
    %c0_i32 = arith.constant 0 : i32
    %c0_i32_0 = arith.constant 0 : i32
    %c0_i32_1 = arith.constant 0 : i32
    return %c0_i32, %c0_i32_0 : i32, i32
  }
  func.func @transform_15(%arg0: i32) -> (i32, i32) {
    %c0_i32 = arith.constant 0 : i32
    %c0_i32_0 = arith.constant 0 : i32
    %c0_i32_1 = arith.constant 0 : i32
    return %c0_i32, %c0_i32_0 : i32, i32
  }
  func.func @transform_16(%arg0: i32) -> (i32, i32) {
    %c0_i32 = arith.constant 0 : i32
    %c0_i32_0 = arith.constant 0 : i32
    %c0_i32_1 = arith.constant 0 : i32
    return %c0_i32, %c0_i32_0 : i32, i32
  }
  func.func @transform_17(%arg0: i32) -> (i32, i32) {
    %c0_i32 = arith.constant 0 : i32
    %c0_i32_0 = arith.constant 0 : i32
    %c0_i32_1 = arith.constant 0 : i32
    return %c0_i32, %c0_i32_0 : i32, i32
  }
  func.func @transform_18(%arg0: i32) -> (i32, i32) {
    %c0_i32 = arith.constant 0 : i32
    %c0_i32_0 = arith.constant 0 : i32
    %c0_i32_1 = arith.constant 0 : i32
    return %c0_i32, %c0_i32_0 : i32, i32
  }
  func.func @transform_19(%arg0: i32) -> (i32, i32) {
    %c0_i32 = arith.constant 0 : i32
    %c0_i32_0 = arith.constant 0 : i32
    %c0_i32_1 = arith.constant 0 : i32
    return %c0_i32, %c0_i32_0 : i32, i32
  }
}

</mosaic_0001>

<bundles_post_ra>
// kernel: rae_forward.1
= control target key start
LH: loop header
LB: loop body
LE: loop exit
PB: predicated region body
PF: predicated region fallthrough
CT: control target
= control target key end

     0   :  { %s9527_s0 = inlined_call_operand.vmem [shape: f32[2,32], index: 0, kind: input, shape index: {}]   ;;  %s9528_s1 = inlined_call_operand.vmem [shape: f32[4,128], index: 1, kind: input, shape index: {}]   ;;  %s9529_s2 = inlined_call_operand.vmem [shape: f32[32,128], index: 2, kind: input, shape index: {}]   ;;  %s9530_s3 = inlined_call_operand.vmem [shape: f32[1,128], index: 3, kind: input, shape index: {}]   ;;  %s9531_s4 = inlined_call_operand.vmem [shape: f32[32,64], index: 4, kind: input, shape index: {}]   ;;  %s9532_s5 = inlined_call_operand.vmem [shape: f32[16,64], index: 5, kind: input, shape index: {}]   ;;  %s9533_s6 = inlined_call_operand.vmem [shape: f32[1,64], index: 6, kind: input, shape index: {}]   ;;  %s9534_s7 = inlined_call_operand.vmem [shape: f32[128,16], index: 7, kind: input, shape index: {}]   ;;  %s9535_s8 = inlined_call_operand.vmem [shape: f32[1,16], index: 8, kind: input, shape index: {}]   ;;  %s9536_s9 = inlined_call_operand.vmem [shape: f32[16,128], index: 9, kind: input, shape index: {}]   ;;  %s9537_s10 = inlined_call_operand.hbm [shape: f32[1,128], index: 10, kind: input, shape index: {}]   ;;  %s9538_s11 = inlined_call_operand.vmem [shape: f32[16,128], index: 11, kind: input, shape index: {}]   ;;  %s9539_s12 = inlined_call_operand.vmem [shape: f32[32,128], index: 12, kind: input, shape index: {}]   ;;  %s9540_s13 = inlined_call_operand.vmem [shape: f32[1,128], index: 13, kind: input, shape index: {}]   ;;  %s9541_s14 = inlined_call_operand.vmem [shape: f32[32,128], index: 14, kind: input, shape index: {}]   ;;  %s9542_s15 = inlined_call_operand.vmem [shape: f32[32,128], index: 15, kind: input, shape index: {}]   ;;  %s9543_s16 = inlined_call_operand.vmem [shape: f32[1,128], index: 16, kind: input, shape index: {}]   ;;  %s9544_s17 = inlined_call_operand.vmem [shape: f32[32,4], index: 17, kind: input, shape index: {}]   ;;  %s9545_s18 = inlined_call_operand.hbm [shape: f32[1,4], index: 18, kind: input, shape index: {}]   ;;  %s9546_s19 = inlined_call_operand.vmem [shape: f32[2,32], index: 19, kind: output, shape index: {}]  }
   0x1   :  { %9548 = sst [smem:[#allocation8_spill]] %s9527_s0 }
   0x2   :  { %9549 = sst [smem:[#allocation9_spill]] %s9528_s1 }
   0x3   :  { %9550 = sst [smem:[#allocation10_spill]] %s9529_s2 }
   0x4   :  { %9551 = sst [smem:[#allocation11_spill]] %s9530_s3 }
   0x5   :  { %24 = vsyncpa [#allocation3], 0 }
   0x6   :  { %25 = vsyncpa [#allocation5], 0  ;;  %s8424_s0 = smov [#allocation2]   ;;  %s8425_s20 = smov [#allocation4]  }
   0x7   :  { %s52_s30 = sshll.u32 %s8424_s0, 4  ;;  %s76_s21 = sshll.u32 %s8425_s20, 4  ;;  %s53_s30 = int_to_ptr.vmem [resolvable:$true] %s52_s30  ;;  %s77_s21 = int_to_ptr.vmem [resolvable:$true] %s76_s21 }
   0x8   :  { %s8376_s2 = scalar_lea.hbm %s9537_s10, 16 }
   0x9   :  { %p8377_p0 = scmp.ne.s32.totalorder %s9537_s10, %s8376_s2  ;;  %p8380_p1 = scmp.lt.u32.totalorder %s8376_s2, %s9537_s10 }
   0xb   :  { %p8382_p2 = pnand %p8380_p1, %p8377_p0 }
   0xd   :  { %8385 = shalt.err (!%p8382_p2)
}
   0xe   :  { %s8386_s26 = scalar_lea.vmem %s53_s30, 16  ;;  %s8390_s27 = scalar_lea.vmem %s53_s30, 32 }
   0xf   :  { %p8387_p3 = scmp.ne.s32.totalorder %s53_s30, %s8386_s26  ;;  %p8391_p4 = scmp.lt.s32.totalorder %s53_s30, %s53_s30 }
  0x10   :  { %p8392_p5 = scmp.lt.s32.totalorder %s8390_s27, %s8386_s26 }
  0x12   :  { %p8393_p6 = por %p8392_p5, %p8391_p4 }
  0x14   :  { %p8394_p7 = pnand %p8393_p6, %p8387_p3 }
  0x16   :  { %8397 = shalt.err (!%p8394_p7)
}
  0x17   :  { %55 = dma.hbm_to_vmem [thread:$0]  %s9537_s10, 16, %s53_s30, [#allocation3]  }
  0x18   :  { %s8398_s1 = scalar_lea.hbm %s9545_s18, 16 }
  0x19   :  { %p8399_p8 = scmp.ne.s32.totalorder %s9545_s18, %s8398_s1  ;;  %p8402_p9 = scmp.lt.u32.totalorder %s8398_s1, %s9545_s18 }
  0x1b   :  { %p8404_p10 = pnand %p8402_p9, %p8399_p8 }
  0x1d   :  { %8407 = shalt.err (!%p8404_p10)
}
  0x1e   :  { %s8408_s25 = scalar_lea.vmem %s77_s21, 16  ;;  %s8412_s3 = scalar_lea.vmem %s77_s21, 32 }
  0x1f   :  { %p8409_p11 = scmp.ne.s32.totalorder %s77_s21, %s8408_s25  ;;  %p8413_p12 = scmp.lt.s32.totalorder %s77_s21, %s77_s21 }
  0x20   :  { %p8414_p13 = scmp.lt.s32.totalorder %s8412_s3, %s8408_s25 }
  0x22   :  { %p8415_p0 = por %p8414_p13, %p8413_p12 }
  0x24   :  { %p8416_p1 = pnand %p8415_p0, %p8409_p11 }
  0x26   :  { %8419 = shalt.err (!%p8416_p1)
}
  0x27   :  { %79 = dma.hbm_to_vmem [thread:$0]  %s9545_s18, 16, %s77_s21, [#allocation5]  }
  0x28   :  { %8420 = dma.done.wait [#allocation3], 16  }
  0x29   :  { %8421 = vsyncadd [#allocation3], 4294967280 }
  0x2a   :  { %8422 = dma.done.wait [#allocation5], 16  }
  0x2b   :  { %8423 = vsyncadd [#allocation5], 4294967280  ;;  %v8426_v0 = vmov 0.0   ;;  %vm8427_vm0 = vmmov 0   ;;  %vm103_vm1 = vcmask 1043456   ;;  %s9552_s18 = sld [smem:[#allocation8_spill]] }
  0x2c   :  { %6915 = vmatprep.subr.mxu0 %v8426_v0  ;;  %6920 = vmatprep.subr.mxu1 %v8426_v0  ;;  %s9553_s29 = sld [smem:[#allocation9_spill]]  ;;  %vm99_vm2 = vcmask 31744   ;;  %s8428_s0 = smov 120   ;;  %v8431_v9 = vmov 0.0|0.0   ;;  %vm695_vm3 = vcmask 261120   ;;  %vm2072_vm4 = vcmask 130048  }
  0x2d   :  { %6917 = vmatprep.mubr.msk.f32.mxu0 %vm8427_vm0, %v8426_v0  ;;  %6922 = vmatprep.mubr.msk.f32.mxu1 %vm8427_vm0, %v8426_v0  ;;  %s8429_s20 = smov 104   ;;  %s8430_s1 = smov 112   ;;  %vm2892_vm5 = vcmask 392192   ;;  %vm2894_vm6 = vcmask 523264   ;;  %vm2896_vm7 = vcmask 654336   ;;  %vm2898_vm8 = vcmask 785408  }
  0x2e   :  { %s9554_s23 = sld [smem:[#allocation10_spill]]  ;;  %s9555_s21 = sld [smem:[#allocation11_spill]]  ;;  %vm2900_vm9 = vcmask 916480   ;;  %vm6456_vm10 = vcmask 64512   ;;  %vm6458_vm11 = vcmask 97280   ;;  %vm6461_vm12 = vcmask 162816  }
  0x2f   :  { %s8432_s28 = smov 64   ;;  %s8436_s22 = smov 116   ;;  %vm6463_vm13 = vcmask 195584   ;;  %vm6465_vm14 = vcmask 228352   ;;  %vm6467_vm15 = vcmask 254976  }
  0x30   :  { %s8437_s2 = smov 100   ;;  %s8444_s30 = smov 20  }
  0x31   :  { %v8581_v1 = vld [vmem:[%s9552_s18] sm:$0x3]  ;;  %s8445_s26 = smov 8   ;;  %s8447_s27 = smov 28  }
  0x32   :  { %v8586_v2 = vld [vmem:[%s9553_s29] sm:$0xf]  ;;  %251 = vrot.lane.b32.xlu0 %v8581_v1, %s8428_s0  ;;  %547 = vrot.lane.b32.xlu1 %v8581_v1, %s8429_s20  ;;  %s8433_s29 = smov 32   ;;  %s8434_s0 = smov 124  }
  0x33   :  { %6916 = vmatpush3.msk.msra.mxu0 %vm103_vm1, %v8586_v2  ;;  %6921 = vmatpush3.msk.msra.mxu1 %vm103_vm1, %v8586_v2  ;;  %s8435_s20 = smov 108  }
  0x34   :  { %6925 = vmatprep.subr.mxu0 %v8426_v0  ;;  %6918 = vmatmul.mubr.msk.f32.vlgmr.msra.gmra.mrb[0].mxu0 %vm99_vm2, %v8581_v1  ;;  %v88_v4 = vld [vmem:[%s9554_s23] sm:$0xff]  ;;  %v89_v5 = vld [vmem:[%s9554_s23 + $0x8] sm:$0xff]  ;;  %v90_v10 = vld [vmem:[%s9554_s23 + $0x10] sm:$0xff] }
  0x35   :  { %6926 = vmatpush3.msk.msra.mxu0 %vm103_vm1, %v8586_v2  ;;  %6927 = vmatprep.mubr.msk.f32.mxu0 %vm8427_vm0, %v8426_v0  ;;  %v8622_v8 = vpack.c.bf16 %v89_v5, %v88_v4  ;;  %v91_v11 = vld [vmem:[%s9554_s23 + $0x18] sm:$0xff]  ;;  %v8650_v13 = vld [vmem:[%s9555_s21] ss:$0 sm:$0xff]  ;;  %s8441_s23 = smov 48  }
  0x36   :  { %399 = vrot.lane.b32.xlu0 %v8581_v1, %s8430_s1  ;;  %6935 = vmatprep.subr.mxu0 %v8426_v0  ;;  %v8633_v12 = vpack.c.bf16 %v91_v11, %v90_v10 }
  0x37   :  { %6930 = vmatprep.subr.mxu1 %v8426_v0 }
  0xa4   :  { %v252_v3 = vpop.permute.xlu0 %251  ;;  %v548_v7 = vpop.permute.xlu1 %547 }
  0xa5   :  { %6928 = vmatmul.mubr.msk.f32.vlgmr.msra.gmra.mrb[2].mxu0 %vm99_vm2, %v252_v3 }
  0xa6   :  { %6936 = vmatpush3.msk.msra.mxu0 %vm103_vm1, %v8586_v2  ;;  %6937 = vmatprep.mubr.msk.f32.mxu0 %vm8427_vm0, %v8426_v0 }
  0xa7   :  { %6945 = vmatprep.subr.mxu0 %v8426_v0 }
  0xa8   :  { %v400_v6 = vpop.permute.xlu0 %399 }
  0xa9   :  { %6938 = vmatmul.mubr.msk.f32.vlgmr.msra.gmra.mrb[4].mxu0 %vm99_vm2, %v400_v6 }
  0xaa   :  { %6946 = vmatpush3.msk.msra.mxu0 %vm103_vm1, %v8586_v2  ;;  %6947 = vmatprep.mubr.msk.f32.mxu0 %vm8427_vm0, %v8426_v0 }
  0xab   :  { %7637 = vmatprep.subr.bf16.mxu0 %v8431_v9 }
  0xad   :  { %6948 = vmatmul.mubr.msk.f32.vlgmr.msra.gmra.mrb[6].mxu0 %vm99_vm2, %v548_v7 }
  0xae   :  { %7639 = vmatpush3.bf16.msra.mxu0 %v8622_v8  ;;  %6963 = vmatprep.mubr.msk.f32.mxu0 %vm8427_vm0, %v8426_v0 }
  0xaf   :  { %7640 = vmatprep.subr.bf16.mxu0 %v8431_v9 }
  0xb2   :  { %7642 = vmatpush3.bf16.msra.mxu0 %v8633_v12 }
  0xb3   :  { %7649 = vmatprep.subr.bf16.mxu0 %v8431_v9 }
  0xb5   :  { %6964 = vmatmul.mubr.f32.vlgmr.msra.gmra.mrb[0].mxu0 %v8426_v0 }
  0xb6   :  { %7651 = vmatpush3.bf16.msra.mxu0 %v8622_v8  ;;  %6985 = vmatprep.mubr.msk.f32.mxu0 %vm8427_vm0, %v8426_v0 }
  0xb7   :  { %7652 = vmatprep.subr.bf16.mxu0 %v8431_v9 }
  0xba   :  { %7654 = vmatpush3.bf16.msra.mxu0 %v8633_v12 }
  0xbb   :  { %7661 = vmatprep.subr.bf16.mxu0 %v8431_v9 }
 0x188   :  { %v765_v14 = vpop.f32.mrb[0].mxu0 }
 0x189   :  { %v8000_v15 = vadd.f32 %v8650_v13, %v765_v14  ;;  %v6965_v16 = vpop.f32.mrb[1].mxu0 }
 0x18b   :  { %8120 = vtanh.f32 %v8000_v15  ;;  %v6492_v18 = vmul.f32 -1.442695, %v8000_v15 }
 0x18d   :  { %8122 = vpow2.f32 %v6492_v18 }
 0x195   :  { %v8121_v17 = vpop.eup %8120 }
 0x196   :  { %779 = vrot.lane.b32.xlu1 %v8121_v17, %s8432_s28 }
 0x197   :  { %v8123_v19 = vpop.eup %8122 }
 0x198   :  { %v773_v20 = vadd.f32 1.0, %v8123_v19 }
 0x19a   :  { %8124 = vrcp.f32 %v773_v20 }
 0x1a4   :  { %v8125_v21 = vpop.eup %8124 }
 0x1a5   :  { %v777_v24 = vmul.f32 0.0, %v8125_v21 }
 0x208   :  { %v780_v22 = vpop.permute.xlu1 %779 }
 0x209   :  { %v782_v23 = vmul.f32 %v8125_v21, %v780_v22 }
 0x20b   :  { %784 = vrot.lane.b32.xlu0 %v782_v23, %s8433_s29 }
 0x20f   :  { %177 = vrot.lane.b32.xlu0 %v8581_v1, %s8434_s0 }
 0x213   :  { %473 = vrot.lane.b32.xlu0 %v8581_v1, %s8435_s20 }
 0x27d   :  { %v785_v25 = vpop.permute.xlu0 %784 }
 0x27e   :  { %v787_v26 = vadd.f32 %v785_v25, %v777_v24 }
 0x280   :  { %8126 = vtanh.f32 %v787_v26 }
 0x281   :  { %v178_v27 = vpop.permute.xlu0 %177 }
 0x282   :  { %6923 = vmatmul.mubr.msk.f32.vlgmr.msra.gmra.mrb[0].mxu1 %vm99_vm2, %v178_v27 }
 0x283   :  { %6931 = vmatpush3.msk.msra.mxu1 %vm103_vm1, %v8586_v2  ;;  %6932 = vmatprep.mubr.msk.f32.mxu1 %vm8427_vm0, %v8426_v0 }
 0x284   :  { %6940 = vmatprep.subr.mxu1 %v8426_v0 }
 0x285   :  { %v474_v32 = vpop.permute.xlu0 %473 }
 0x28a   :  { %v8127_v28 = vpop.eup %8126 }
 0x28b   :  { %790 = vrot.lane.b32.xlu1 %v8127_v28, %s8432_s28 }
 0x28f   :  { %325 = vrot.lane.b32.xlu1 %v8581_v1, %s8436_s22  ;;  %s8438_s22 = smov 96  }
 0x293   :  { %621 = vrot.lane.b32.xlu1 %v8581_v1, %s8437_s2  ;;  %s8440_s2 = smov 80  }
 0x2fd   :  { %v791_v29 = vpop.permute.xlu1 %790 }
 0x2fe   :  { %v793_v30 = vmul.f32 %v8125_v21, %v791_v29 }
 0x300   :  { %795 = vrot.lane.b32.xlu0 %v793_v30, %s8433_s29 }
 0x301   :  { %v326_v31 = vpop.permute.xlu1 %325 }
 0x302   :  { %6933 = vmatmul.mubr.msk.f32.vlgmr.msra.gmra.mrb[2].mxu1 %vm99_vm2, %v326_v31 }
 0x303   :  { %6941 = vmatpush3.msk.msra.mxu1 %vm103_vm1, %v8586_v2  ;;  %6942 = vmatprep.mubr.msk.f32.mxu1 %vm8427_vm0, %v8426_v0 }
 0x304   :  { %6950 = vmatprep.subr.mxu1 %v8426_v0 }
 0x305   :  { %v622_v33 = vpop.permute.xlu1 %621 }
 0x306   :  { %6943 = vmatmul.mubr.msk.f32.vlgmr.msra.gmra.mrb[4].mxu1 %vm99_vm2, %v474_v32 }
 0x307   :  { %6951 = vmatpush3.msk.msra.mxu1 %vm103_vm1, %v8586_v2  ;;  %6952 = vmatprep.mubr.msk.f32.mxu1 %vm8427_vm0, %v8426_v0 }
 0x308   :  { %7643 = vmatprep.subr.bf16.mxu1 %v8431_v9 }
 0x30a   :  { %6953 = vmatmul.mubr.msk.f32.vlgmr.msra.gmra.mrb[6].mxu1 %vm99_vm2, %v622_v33 }
 0x30b   :  { %7645 = vmatpush3.bf16.msra.mxu1 %v8622_v8  ;;  %6974 = vmatprep.mubr.msk.f32.mxu1 %vm8427_vm0, %v8426_v0 }
 0x30c   :  { %7646 = vmatprep.subr.bf16.mxu1 %v8431_v9 }
 0x30f   :  { %7648 = vmatpush3.bf16.msra.mxu1 %v8633_v12 }
 0x310   :  { %7655 = vmatprep.subr.bf16.mxu1 %v8431_v9 }
 0x372   :  { %v8686_v34 = vpop.permute.xlu0 %795 }
 0x373   :  { %6975 = vmatmul.mubr.msk.f32.vlgmr.msra.gmra.mrb[0].mxu1 %vm695_vm3, %v8686_v34 }
 0x374   :  { %7657 = vmatpush3.bf16.msra.mxu1 %v8622_v8  ;;  %6996 = vmatprep.mubr.msk.f32.mxu1 %vm8427_vm0, %v8426_v0 }
 0x375   :  { %7658 = vmatprep.subr.bf16.mxu1 %v8431_v9 }
 0x378   :  { %7660 = vmatpush3.bf16.msra.mxu1 %v8633_v12 }
 0x379   :  { %7667 = vmatprep.subr.bf16.mxu1 %v8431_v9 }
 0x446   :  { %v865_v35 = vpop.f32.mrb[0].mxu1 }
 0x447   :  { %v8001_v36 = vadd.f32 %v8650_v13, %v865_v35  ;;  %v6976_v37 = vpop.f32.mrb[1].mxu1 }
 0x449   :  { %8128 = vtanh.f32 %v8001_v36  ;;  %v6494_v39 = vmul.f32 -1.442695, %v8001_v36 }
 0x44b   :  { %8130 = vpow2.f32 %v6494_v39 }
 0x453   :  { %v8129_v38 = vpop.eup %8128 }
 0x454   :  { %879 = vrot.lane.b32.xlu1 %v8129_v38, %s8432_s28 }
 0x455   :  { %v8131_v40 = vpop.eup %8130 }
 0x456   :  { %v873_v41 = vadd.f32 1.0, %v8131_v40 }
 0x458   :  { %8132 = vrcp.f32 %v873_v41 }
 0x462   :  { %v8133_v42 = vpop.eup %8132 }
 0x463   :  { %v877_v45 = vmul.f32 %v8133_v42, %v787_v26 }
 0x4c6   :  { %v880_v43 = vpop.permute.xlu1 %879 }
 0x4c7   :  { %v882_v44 = vmul.f32 %v8133_v42, %v880_v43 }
 0x4c9   :  { %884 = vrot.lane.b32.xlu0 %v882_v44, %s8433_s29 }
 0x53b   :  { %v885_v46 = vpop.permute.xlu0 %884 }
 0x53c   :  { %v887_v47 = vadd.f32 %v885_v46, %v877_v45 }
 0x53e   :  { %8134 = vtanh.f32 %v887_v47 }
 0x548   :  { %v8135_v48 = vpop.eup %8134 }
 0x549   :  { %890 = vrot.lane.b32.xlu1 %v8135_v48, %s8432_s28 }
 0x5bb   :  { %v891_v49 = vpop.permute.xlu1 %890 }
 0x5bc   :  { %v893_v50 = vmul.f32 %v8133_v42, %v891_v49 }
 0x5be   :  { %895 = vrot.lane.b32.xlu0 %v893_v50, %s8433_s29 }
 0x630   :  { %v8701_v51 = vpop.permute.xlu0 %895 }
 0x631   :  { %6986 = vmatmul.mubr.msk.f32.vlgmr.msra.gmra.mrb[2].mxu0 %vm695_vm3, %v8701_v51 }
 0x632   :  { %7663 = vmatpush3.bf16.msra.mxu0 %v8622_v8  ;;  %7007 = vmatprep.mubr.msk.f32.mxu0 %vm8427_vm0, %v8426_v0 }
 0x633   :  { %7664 = vmatprep.subr.bf16.mxu0 %v8431_v9 }
 0x636   :  { %7666 = vmatpush3.bf16.msra.mxu0 %v8633_v12 }
 0x637   :  { %7673 = vmatprep.subr.bf16.mxu0 %v8431_v9 }
 0x704   :  { %v965_v52 = vpop.f32.mrb[2].mxu0 }
 0x705   :  { %v8002_v53 = vadd.f32 %v8650_v13, %v965_v52  ;;  %v6987_v54 = vpop.f32.mrb[3].mxu0 }
 0x707   :  { %8136 = vtanh.f32 %v8002_v53  ;;  %v6496_v56 = vmul.f32 -1.442695, %v8002_v53 }
 0x709   :  { %8138 = vpow2.f32 %v6496_v56 }
 0x711   :  { %v8137_v55 = vpop.eup %8136 }
 0x712   :  { %979 = vrot.lane.b32.xlu1 %v8137_v55, %s8432_s28 }
 0x713   :  { %v8139_v57 = vpop.eup %8138 }
 0x714   :  { %v973_v58 = vadd.f32 1.0, %v8139_v57 }
 0x716   :  { %8140 = vrcp.f32 %v973_v58 }
 0x720   :  { %v8141_v59 = vpop.eup %8140 }
 0x721   :  { %v977_v62 = vmul.f32 %v8141_v59, %v887_v47 }
 0x784   :  { %v980_v60 = vpop.permute.xlu1 %979 }
 0x785   :  { %v982_v61 = vmul.f32 %v8141_v59, %v980_v60  ;;  %v1494_v60 = vld [vmem:[%s9531_s4] sm:$0xff] }
 0x787   :  { %984 = vrot.lane.b32.xlu0 %v982_v61, %s8433_s29  ;;  %v1495_v61 = vld [vmem:[%s9531_s4 + $0x8] sm:$0xff] }
 0x7f9   :  { %v985_v63 = vpop.permute.xlu0 %984 }
 0x7fa   :  { %v987_v1 = vadd.f32 %v985_v63, %v977_v62  ;;  %v8764_v62 = vpack.c.bf16 %v1495_v61, %v1494_v60  ;;  %v1496_v63 = vld [vmem:[%s9531_s4 + $0x10] sm:$0xff] }
 0x7fc   :  { %8142 = vtanh.f32 %v987_v1 }
 0x806   :  { %v8143_v2 = vpop.eup %8142 }
 0x807   :  { %990 = vrot.lane.b32.xlu1 %v8143_v2, %s8432_s28 }
 0x879   :  { %v991_v3 = vpop.permute.xlu1 %990 }
 0x87a   :  { %v993_v4 = vmul.f32 %v8141_v59, %v991_v3 }
 0x87c   :  { %995 = vrot.lane.b32.xlu0 %v993_v4, %s8433_s29 }
 0x8ee   :  { %v8716_v5 = vpop.permute.xlu0 %995 }
 0x8ef   :  { %6997 = vmatmul.mubr.msk.f32.vlgmr.msra.gmra.mrb[2].mxu1 %vm695_vm3, %v8716_v5 }
 0x8f0   :  { %7669 = vmatpush3.bf16.msra.mxu1 %v8622_v8  ;;  %7018 = vmatprep.mubr.msk.f32.mxu1 %vm8427_vm0, %v8426_v0 }
 0x8f1   :  { %7670 = vmatprep.subr.bf16.mxu1 %v8431_v9 }
 0x8f4   :  { %7672 = vmatpush3.bf16.msra.mxu1 %v8633_v12 }
 0x8f5   :  { %7679 = vmatprep.subr.bf16.mxu1 %v8431_v9 }
 0x9c2   :  { %v1065_v6 = vpop.f32.mrb[2].mxu1 }
 0x9c3   :  { %v8003_v7 = vadd.f32 %v8650_v13, %v1065_v6  ;;  %v6998_v10 = vpop.f32.mrb[3].mxu1 }
 0x9c5   :  { %8144 = vtanh.f32 %v8003_v7  ;;  %v6498_v14 = vmul.f32 -1.442695, %v8003_v7 }
 0x9c7   :  { %8146 = vpow2.f32 %v6498_v14 }
 0x9cf   :  { %v8145_v11 = vpop.eup %8144 }
 0x9d0   :  { %1079 = vrot.lane.b32.xlu1 %v8145_v11, %s8432_s28 }
 0x9d1   :  { %v8147_v15 = vpop.eup %8146 }
 0x9d2   :  { %v1073_v16 = vadd.f32 1.0, %v8147_v15 }
 0x9d4   :  { %8148 = vrcp.f32 %v1073_v16 }
 0x9de   :  { %v8149_v17 = vpop.eup %8148 }
 0x9df   :  { %v1077_v20 = vmul.f32 %v8149_v17, %v987_v1  ;;  %v1497_v1 = vld [vmem:[%s9531_s4 + $0x18] sm:$0xff] }
 0x9e0   :  { %v8777_v3 = vpack.c.bf16 %v1497_v1, %v1496_v63 }
 0xa42   :  { %v1080_v18 = vpop.permute.xlu1 %1079 }
 0xa43   :  { %v1082_v19 = vmul.f32 %v8149_v17, %v1080_v18 }
 0xa45   :  { %1084 = vrot.lane.b32.xlu0 %v1082_v19, %s8433_s29 }
 0xab7   :  { %v1085_v21 = vpop.permute.xlu0 %1084 }
 0xab8   :  { %v1087_v22 = vadd.f32 %v1085_v21, %v1077_v20 }
 0xaba   :  { %8150 = vtanh.f32 %v1087_v22 }
 0xac4   :  { %v8151_v23 = vpop.eup %8150 }
 0xac5   :  { %1090 = vrot.lane.b32.xlu1 %v8151_v23, %s8432_s28  ;;  %v1498_v23 = vld [vmem:[%s9532_s5] sm:$0xff] }
 0xb37   :  { %v1091_v24 = vpop.permute.xlu1 %1090 }
 0xb38   :  { %v1093_v25 = vmul.f32 %v8149_v17, %v1091_v24  ;;  %v1499_v24 = vld [vmem:[%s9532_s5 + $0x8] sm:$0xff] }
 0xb3a   :  { %1095 = vrot.lane.b32.xlu0 %v1093_v25, %s8433_s29  ;;  %v8821_v25 = vpack.c.bf16 %v1499_v24, %v1498_v23 }
 0xbac   :  { %v8731_v26 = vpop.permute.xlu0 %1095 }
 0xbad   :  { %7008 = vmatmul.mubr.msk.f32.vlgmr.msra.gmra.mrb[4].mxu0 %vm695_vm3, %v8731_v26 }
 0xbae   :  { %7675 = vmatpush3.bf16.msra.mxu0 %v8622_v8  ;;  %7029 = vmatprep.mubr.msk.f32.mxu0 %vm8427_vm0, %v8426_v0 }
 0xbaf   :  { %7676 = vmatprep.subr.bf16.mxu0 %v8431_v9 }
 0xbb2   :  { %7678 = vmatpush3.bf16.msra.mxu0 %v8633_v12 }
 0xbb3   :  { %7685 = vmatprep.subr.bf16.mxu0 %v8431_v9 }
 0xc80   :  { %v1165_v27 = vpop.f32.mrb[4].mxu0 }
 0xc81   :  { %v8004_v28 = vadd.f32 %v8650_v13, %v1165_v27  ;;  %v7009_v29 = vpop.f32.mrb[5].mxu0 }
 0xc82   :  { %v8868_v29 = vld [vmem:[%s9533_s6] ss:$0 sm:$0xff]  ;;  %s8439_s6 = smov 16  }
 0xc83   :  { %8152 = vtanh.f32 %v8004_v28  ;;  %v6500_v31 = vmul.f32 -1.442695, %v8004_v28 }
 0xc85   :  { %8154 = vpow2.f32 %v6500_v31 }
 0xc8d   :  { %v8153_v30 = vpop.eup %8152 }
 0xc8e   :  { %1179 = vrot.lane.b32.xlu1 %v8153_v30, %s8432_s28 }
 0xc8f   :  { %v8155_v32 = vpop.eup %8154 }
 0xc90   :  { %v1173_v33 = vadd.f32 1.0, %v8155_v32 }
 0xc92   :  { %8156 = vrcp.f32 %v1173_v33 }
 0xc9c   :  { %v8157_v35 = vpop.eup %8156 }
 0xc9d   :  { %v1177_v38 = vmul.f32 %v8157_v35, %v1087_v22 }
 0xd00   :  { %v1180_v36 = vpop.permute.xlu1 %1179 }
 0xd01   :  { %v1182_v37 = vmul.f32 %v8157_v35, %v1180_v36 }
 0xd03   :  { %1184 = vrot.lane.b32.xlu0 %v1182_v37, %s8433_s29 }
 0xd75   :  { %v1185_v39 = vpop.permute.xlu0 %1184 }
 0xd76   :  { %v1187_v40 = vadd.f32 %v1185_v39, %v1177_v38 }
 0xd78   :  { %8158 = vtanh.f32 %v1187_v40 }
 0xd82   :  { %v8159_v41 = vpop.eup %8158 }
 0xd83   :  { %1190 = vrot.lane.b32.xlu1 %v8159_v41, %s8432_s28 }
 0xdf5   :  { %v1191_v42 = vpop.permute.xlu1 %1190 }
 0xdf6   :  { %v1193_v43 = vmul.f32 %v8157_v35, %v1191_v42 }
 0xdf8   :  { %1195 = vrot.lane.b32.xlu0 %v1193_v43, %s8433_s29 }
 0xe6a   :  { %v1196_v44 = vpop.permute.xlu0 %1195 }
 0xe6b   :  { %7019 = vmatmul.mubr.msk.f32.vlgmr.msra.gmra.mrb[4].mxu1 %vm695_vm3, %v1196_v44 }
 0xe6c   :  { %7681 = vmatpush3.bf16.msra.mxu1 %v8622_v8  ;;  %7040 = vmatprep.mubr.msk.f32.mxu1 %vm8427_vm0, %v8426_v0 }
 0xe6d   :  { %7682 = vmatprep.subr.bf16.mxu1 %v8431_v9 }
 0xe70   :  { %7684 = vmatpush3.bf16.msra.mxu1 %v8633_v12 }
 0xe71   :  { %7691 = vmatprep.subr.bf16.mxu1 %v8431_v9 }
 0xf3e   :  { %v1265_v45 = vpop.f32.mrb[4].mxu1 }
 0xf3f   :  { %v8005_v46 = vadd.f32 %v8650_v13, %v1265_v45  ;;  %v7020_v47 = vpop.f32.mrb[5].mxu1 }
 0xf41   :  { %8160 = vtanh.f32 %v8005_v46  ;;  %v6502_v49 = vmul.f32 -1.442695, %v8005_v46 }
 0xf43   :  { %8162 = vpow2.f32 %v6502_v49 }
 0xf4b   :  { %v8161_v48 = vpop.eup %8160 }
 0xf4c   :  { %1279 = vrot.lane.b32.xlu1 %v8161_v48, %s8432_s28 }
 0xf4d   :  { %v8163_v8 = vpop.eup %8162 }
 0xf4e   :  { %v1273_v50 = vadd.f32 1.0, %v8163_v8 }
 0xf50   :  { %8164 = vrcp.f32 %v1273_v50 }
 0xf5a   :  { %v8165_v52 = vpop.eup %8164 }
 0xf5b   :  { %v1277_v12 = vmul.f32 %v8165_v52, %v1187_v40 }
 0xfbe   :  { %v1280_v53 = vpop.permute.xlu1 %1279 }
 0xfbf   :  { %v1282_v54 = vmul.f32 %v8165_v52, %v1280_v53 }
 0xfc1   :  { %1284 = vrot.lane.b32.xlu0 %v1282_v54, %s8433_s29 }
0x1033   :  { %v1285_v55 = vpop.permute.xlu0 %1284 }
0x1034   :  { %v1287_v56 = vadd.f32 %v1285_v55, %v1277_v12 }
0x1036   :  { %8166 = vtanh.f32 %v1287_v56 }
0x1040   :  { %v8167_v57 = vpop.eup %8166 }
0x1041   :  { %1290 = vrot.lane.b32.xlu1 %v8167_v57, %s8432_s28 }
0x10b3   :  { %v1291_v58 = vpop.permute.xlu1 %1290 }
0x10b4   :  { %v1293_v59 = vmul.f32 %v8165_v52, %v1291_v58 }
0x10b6   :  { %1295 = vrot.lane.b32.xlu0 %v1293_v59, %s8433_s29 }
0x1128   :  { %v8772_v2 = vpop.permute.xlu0 %1295 }
0x1129   :  { %7030 = vmatmul.mubr.msk.f32.vlgmr.msra.gmra.mrb[6].mxu0 %vm695_vm3, %v8772_v2 }
0x112a   :  { %7687 = vmatpush3.bf16.msra.mxu0 %v8764_v62  ;;  %7051 = vmatprep.mubr.msk.f32.mxu0 %vm8427_vm0, %v8426_v0 }
0x112b   :  { %7688 = vmatprep.subr.bf16.mxu0 %v8431_v9 }
0x112e   :  { %7690 = vmatpush3.bf16.msra.mxu0 %v8777_v3 }
0x112f   :  { %7697 = vmatprep.subr.bf16.mxu0 %v8431_v9 }
0x1131   :  { %7052 = vmatmul.mubr.msk.f32.vlgmr.msra.gmra.mrb[8].mxu0 %vm695_vm3, %v8686_v34 }
0x1132   :  { %7699 = vmatpush3.bf16.msra.mxu0 %v8764_v62  ;;  %7073 = vmatprep.mubr.msk.f32.mxu0 %vm8427_vm0, %v8426_v0 }
0x1133   :  { %7700 = vmatprep.subr.bf16.mxu0 %v8431_v9 }
0x1136   :  { %7702 = vmatpush3.bf16.msra.mxu0 %v8777_v3 }
0x1137   :  { %7709 = vmatprep.subr.bf16.mxu0 %v8431_v9 }
0x1139   :  { %7074 = vmatmul.mubr.msk.f32.vlgmr.msra.gmra.mrb[10].mxu0 %vm695_vm3, %v8716_v5 }
0x113a   :  { %7711 = vmatpush3.bf16.msra.mxu0 %v8764_v62  ;;  %7095 = vmatprep.mubr.msk.f32.mxu0 %vm8427_vm0, %v8426_v0 }
0x113b   :  { %7712 = vmatprep.subr.bf16.mxu0 %v8431_v9 }
0x113e   :  { %7714 = vmatpush3.bf16.msra.mxu0 %v8777_v3 }
0x113f   :  { %7721 = vmatprep.subr.bf16.mxu0 %v8431_v9 }
0x1141   :  { %7096 = vmatmul.mubr.msk.f32.vlgmr.msra.gmra.mrb[12].mxu0 %vm695_vm3, %v1196_v44 }
0x1142   :  { %7723 = vmatpush3.bf16.msra.mxu0 %v8764_v62  ;;  %7117 = vmatprep.mubr.msk.f32.mxu0 %vm8427_vm0, %v8426_v0 }
0x1143   :  { %7724 = vmatprep.subr.bf16.mxu0 %v8431_v9 }
0x1146   :  { %7726 = vmatpush3.bf16.msra.mxu0 %v8777_v3 }
0x1147   :  { %7733 = vmatprep.subr.bf16.mxu0 %v8431_v9 }
0x11fc   :  { %v1365_v34 = vpop.f32.mrb[6].mxu0 }
0x11fd   :  { %v8006_v4 = vadd.f32 %v8650_v13, %v1365_v34  ;;  %v7031_v5 = vpop.f32.mrb[7].mxu0 }
0x11ff   :  { %8168 = vtanh.f32 %v8006_v4  ;;  %v6504_v7 = vmul.f32 -1.442695, %v8006_v4 }
0x1201   :  { %8170 = vpow2.f32 %v6504_v7 }
0x1209   :  { %v8169_v6 = vpop.eup %8168 }
0x120a   :  { %1379 = vrot.lane.b32.xlu1 %v8169_v6, %s8432_s28 }
0x120b   :  { %v8171_v10 = vpop.eup %8170 }
0x120c   :  { %v1373_v11 = vadd.f32 1.0, %v8171_v10 }
0x120e   :  { %8172 = vrcp.f32 %v1373_v11 }
0x1218   :  { %v8173_v14 = vpop.eup %8172 }
0x1219   :  { %v1377_v17 = vmul.f32 %v8173_v14, %v1287_v56 }
0x127c   :  { %v1380_v15 = vpop.permute.xlu1 %1379 }
0x127d   :  { %v1382_v16 = vmul.f32 %v8173_v14, %v1380_v15 }
0x127f   :  { %1384 = vrot.lane.b32.xlu0 %v1382_v16, %s8433_s29 }
0x12f1   :  { %v1385_v18 = vpop.permute.xlu0 %1384 }
0x12f2   :  { %v8810_v19 = vadd.f32 %v1385_v18, %v1377_v17 }
0x12f4   :  { %8174 = vtanh.f32 %v8810_v19 }
0x12fe   :  { %v8175_v20 = vpop.eup %8174 }
0x12ff   :  { %1390 = vrot.lane.b32.xlu1 %v8175_v20, %s8432_s28 }
0x1371   :  { %v1391_v21 = vpop.permute.xlu1 %1390 }
0x1372   :  { %v1393_v22 = vmul.f32 %v8173_v14, %v1391_v21 }
0x1374   :  { %1395 = vrot.lane.b32.xlu0 %v1393_v22, %s8433_s29 }
0x13e6   :  { %v1396_v27 = vpop.permute.xlu0 %1395 }
0x13e7   :  { %7041 = vmatmul.mubr.msk.f32.vlgmr.msra.gmra.mrb[6].mxu1 %vm695_vm3, %v1396_v27  ;;  %7118 = vmatmul.mubr.msk.f32.vlgmr.msra.gmra.mrb[14].mxu0 %vm695_vm3, %v1396_v27 }
0x13e8   :  { %7693 = vmatpush3.bf16.msra.mxu1 %v8764_v62  ;;  %7735 = vmatpush3.bf16.msra.mxu0 %v8821_v25 }
0x13e9   :  { %7694 = vmatprep.subr.bf16.mxu1 %v8431_v9  ;;  %7135 = vmatprep.mubr.msk.f32.mxu0 %vm8427_vm0, %v8426_v0 }
0x13ea   :  { %7062 = vmatprep.mubr.msk.f32.mxu1 %vm8427_vm0, %v8426_v0  ;;  %7739 = vmatprep.subr.bf16.mxu0 %v8431_v9 }
0x13eb   :  { %7136 = vmatmul.mubr.f32.vlgmr.msra.gmra.mrb[8].mxu0 %v8426_v0 }
0x13ec   :  { %7696 = vmatpush3.bf16.msra.mxu1 %v8777_v3  ;;  %7741 = vmatpush3.bf16.msra.mxu0 %v8821_v25 }
0x13ed   :  { %7703 = vmatprep.subr.bf16.mxu1 %v8431_v9  ;;  %7149 = vmatprep.mubr.msk.f32.mxu0 %vm8427_vm0, %v8426_v0 }
0x13ee   :  { %7745 = vmatprep.subr.bf16.mxu0 %v8431_v9 }
0x13ef   :  { %7063 = vmatmul.mubr.msk.f32.vlgmr.msra.gmra.mrb[8].mxu1 %vm695_vm3, %v8701_v51 }
0x13f0   :  { %7705 = vmatpush3.bf16.msra.mxu1 %v8764_v62  ;;  %7084 = vmatprep.mubr.msk.f32.mxu1 %vm8427_vm0, %v8426_v0 }
0x13f1   :  { %7706 = vmatprep.subr.bf16.mxu1 %v8431_v9 }
0x13f4   :  { %7708 = vmatpush3.bf16.msra.mxu1 %v8777_v3 }
0x13f5   :  { %7715 = vmatprep.subr.bf16.mxu1 %v8431_v9 }
0x13f7   :  { %7085 = vmatmul.mubr.msk.f32.vlgmr.msra.gmra.mrb[10].mxu1 %vm695_vm3, %v8731_v26 }
0x13f8   :  { %7717 = vmatpush3.bf16.msra.mxu1 %v8764_v62  ;;  %7106 = vmatprep.mubr.msk.f32.mxu1 %vm8427_vm0, %v8426_v0 }
0x13f9   :  { %7718 = vmatprep.subr.bf16.mxu1 %v8431_v9 }
0x13fc   :  { %7720 = vmatpush3.bf16.msra.mxu1 %v8777_v3 }
0x13fd   :  { %7727 = vmatprep.subr.bf16.mxu1 %v8431_v9 }
0x13ff   :  { %7107 = vmatmul.mubr.msk.f32.vlgmr.msra.gmra.mrb[12].mxu1 %vm695_vm3, %v8772_v2 }
0x1400   :  { %7729 = vmatpush3.bf16.msra.mxu1 %v8764_v62  ;;  %7128 = vmatprep.mubr.msk.f32.mxu1 %vm8427_vm0, %v8426_v0 }
0x1401   :  { %7730 = vmatprep.subr.bf16.mxu1 %v8431_v9 }
0x1404   :  { %7732 = vmatpush3.bf16.msra.mxu1 %v8777_v3 }
0x1405   :  { %7736 = vmatprep.subr.bf16.mxu1 %v8431_v9 }
0x14ba   :  { %v1465_v51 = vpop.f32.mrb[6].mxu1 }
0x14bb   :  { %v8007_v26 = vadd.f32 %v8650_v13, %v1465_v51  ;;  %v7042_v28 = vpop.f32.mrb[7].mxu1 }
0x14bd   :  { %8176 = vtanh.f32 %v8007_v26  ;;  %v6506_v13 = vmul.f32 -1.442695, %v8007_v26 }
0x14be   :  { %v2141_v30 = vpop.f32.mrb[8].mxu0 }
0x14bf   :  { %v8008_v31 = vadd.f32 %v8868_v29, %v2141_v30  ;;  %v7137_v32 = vpop.f32.mrb[9].mxu0 }
0x14c1   :  { %8178 = vtanh.f32 %v8008_v31  ;;  %v6516_v36 = vmul.f32 -1.442695, %v8008_v31 }
0x14c2   :  { %8180 = vpow2.f32 %v6506_v13 }
0x14c3   :  { %8182 = vpow2.f32 %v6516_v36 }
0x14c7   :  { %v8177_v33 = vpop.eup %8176 }
0x14c8   :  { %1479 = vrot.lane.b32.xlu1 %v8177_v33, %s8432_s28 }
0x14cb   :  { %v8179_v35 = vpop.eup %8178 }
0x14cc   :  { %2155 = vrot.lane.b32.xlu0 %v8179_v35, %s8438_s22  ;;  %v8181_v37 = vpop.eup %8180 }
0x14cd   :  { %v1473_v38 = vadd.f32 1.0, %v8181_v37  ;;  %v8183_v39 = vpop.eup %8182 }
0x14ce   :  { %v2149_v40 = vadd.f32 1.0, %v8183_v39 }
0x14cf   :  { %8184 = vrcp.f32 %v1473_v38 }
0x14d0   :  { %8186 = vrcp.f32 %v2149_v40 }
0x14d9   :  { %v8185_v41 = vpop.eup %8184 }
0x14da   :  { %v8187_v44 = vpop.eup %8186  ;;  %v1477_v47 = vmul.f32 %v8185_v41, %v8810_v19 }
0x14db   :  { %v2153_v8 = vmul.f32 0.0, %v8187_v44 }
0x153a   :  { %v1480_v42 = vpop.permute.xlu1 %1479 }
0x153b   :  { %v1482_v43 = vmul.f32 %v8185_v41, %v1480_v42 }
0x153d   :  { %1484 = vrot.lane.b32.xlu1 %v1482_v43, %s8433_s29 }
0x153e   :  { %v2156_v45 = vpop.permute.xlu0 %2155 }
0x153f   :  { %v2158_v46 = vmul.f32 %v8187_v44, %v2156_v45 }
0x1541   :  { %2160 = vrot.lane.b32.xlu0 %v2158_v46, %s8439_s6 }
0x15af   :  { %v1485_v48 = vpop.permute.xlu1 %1484 }
0x15b0   :  { %v1487_v49 = vadd.f32 %v1485_v48, %v1477_v47 }
0x15b2   :  { %8188 = vtanh.f32 %v1487_v49 }
0x15b3   :  { %v2161_v50 = vpop.permute.xlu0 %2160 }
0x15b4   :  { %v2163_v52 = vadd.f32 %v2161_v50, %v2153_v8 }
0x15b6   :  { %8190 = vtanh.f32 %v2163_v52 }
0x15bc   :  { %v8189_v53 = vpop.eup %8188 }
0x15bd   :  { %1490 = vrot.lane.b32.xlu1 %v8189_v53, %s8432_s28 }
0x15c0   :  { %v8191_v54 = vpop.eup %8190 }
0x15c1   :  { %2166 = vrot.lane.b32.xlu0 %v8191_v54, %s8433_s29 }
0x162f   :  { %v1491_v12 = vpop.permute.xlu1 %1490 }
0x1630   :  { %v1493_v55 = vmul.f32 %v8185_v41, %v1491_v12 }
0x1632   :  { %1998 = vrot.lane.b32.xlu1 %v1493_v55, %s8433_s29 }
0x1633   :  { %v2167_v56 = vpop.permute.xlu0 %2166 }
0x1634   :  { %v2169_v57 = vmul.f32 %v8187_v44, %v2167_v56 }
0x1636   :  { %2171 = vrot.lane.b32.xlu0 %v2169_v57, %s8440_s2 }
0x16a4   :  { %v1999_v58 = vpop.permute.xlu1 %1998 }
0x16a5   :  { %7129 = vmatmul.mubr.msk.f32.vlgmr.msra.gmra.mrb[14].mxu1 %vm695_vm3, %v1999_v58 }
0x16a6   :  { %7738 = vmatpush3.bf16.msra.mxu1 %v8821_v25  ;;  %7142 = vmatprep.mubr.msk.f32.mxu1 %vm8427_vm0, %v8426_v0 }
0x16a7   :  { %7742 = vmatprep.subr.bf16.mxu1 %v8431_v9 }
0x16a8   :  { %v8885_v59 = vpop.permute.xlu0 %2171 }
0x16a9   :  { %7143 = vmatmul.mubr.msk.f32.vlgmr.msra.gmra.mrb[8].mxu1 %vm2072_vm4, %v8885_v59 }
0x16aa   :  { %7744 = vmatpush3.bf16.msra.mxu1 %v8821_v25  ;;  %7156 = vmatprep.mubr.msk.f32.mxu1 %vm8427_vm0, %v8426_v0 }
0x16ab   :  { %7748 = vmatprep.subr.bf16.mxu1 %v8431_v9 }
0x177c   :  { %v2241_v60 = vpop.f32.mrb[8].mxu1 }
0x177d   :  { %v8009_v61 = vadd.f32 %v8868_v29, %v2241_v60  ;;  %v7144_v62 = vpop.f32.mrb[9].mxu1 }
0x177f   :  { %8192 = vtanh.f32 %v8009_v61  ;;  %v6518_v1 = vmul.f32 -1.442695, %v8009_v61 }
0x1781   :  { %8194 = vpow2.f32 %v6518_v1 }
0x1789   :  { %v8193_v63 = vpop.eup %8192 }
0x178a   :  { %2255 = vrot.lane.b32.xlu1 %v8193_v63, %s8438_s22 }
0x178b   :  { %v8195_v2 = vpop.eup %8194 }
0x178c   :  { %v2249_v3 = vadd.f32 1.0, %v8195_v2 }
0x178e   :  { %8196 = vrcp.f32 %v2249_v3 }
0x1798   :  { %v8197_v34 = vpop.eup %8196 }
0x1799   :  { %v2253_v6 = vmul.f32 %v8197_v34, %v2163_v52 }
0x17fc   :  { %v2256_v4 = vpop.permute.xlu1 %2255 }
0x17fd   :  { %v2258_v5 = vmul.f32 %v8197_v34, %v2256_v4 }
0x17ff   :  { %2260 = vrot.lane.b32.xlu0 %v2258_v5, %s8439_s6 }
0x1871   :  { %v2261_v7 = vpop.permute.xlu0 %2260 }
0x1872   :  { %v2263_v10 = vadd.f32 %v2261_v7, %v2253_v6 }
0x1874   :  { %8198 = vtanh.f32 %v2263_v10 }
0x187e   :  { %v8199_v11 = vpop.eup %8198 }
0x187f   :  { %2266 = vrot.lane.b32.xlu1 %v8199_v11, %s8433_s29 }
0x18f1   :  { %v2267_v14 = vpop.permute.xlu1 %2266 }
0x18f2   :  { %v8897_v15 = vmul.f32 %v8197_v34, %v2267_v14 }
0x18f4   :  { %2271 = vrot.lane.b32.xlu0 %v8897_v15, %s8440_s2 }
0x1966   :  { %v2272_v16 = vpop.permute.xlu0 %2271 }
0x1967   :  { %7150 = vmatmul.mubr.msk.f32.vlgmr.msra.gmra.mrb[10].mxu0 %vm2072_vm4, %v2272_v16 }
0x1968   :  { %7747 = vmatpush3.bf16.msra.mxu0 %v8821_v25  ;;  %7163 = vmatprep.mubr.msk.f32.mxu0 %vm8427_vm0, %v8426_v0 }
0x1969   :  { %7751 = vmatprep.subr.bf16.mxu0 %v8431_v9 }
0x1a3a   :  { %v2341_v17 = vpop.f32.mrb[10].mxu0 }
0x1a3b   :  { %v8010_v18 = vadd.f32 %v8868_v29, %v2341_v17  ;;  %v7151_v19 = vpop.f32.mrb[11].mxu0 }
0x1a3d   :  { %8200 = vtanh.f32 %v8010_v18  ;;  %v6520_v21 = vmul.f32 -1.442695, %v8010_v18 }
0x1a3f   :  { %8202 = vpow2.f32 %v6520_v21 }
0x1a47   :  { %v8201_v20 = vpop.eup %8200 }
0x1a48   :  { %2355 = vrot.lane.b32.xlu1 %v8201_v20, %s8438_s22 }
0x1a49   :  { %v8203_v22 = vpop.eup %8202 }
0x1a4a   :  { %v2349_v23 = vadd.f32 1.0, %v8203_v22 }
0x1a4c   :  { %8204 = vrcp.f32 %v2349_v23 }
0x1a56   :  { %v8205_v24 = vpop.eup %8204 }
0x1a57   :  { %v2353_v26 = vmul.f32 %v8205_v24, %v2263_v10 }
0x1aba   :  { %v2356_v27 = vpop.permute.xlu1 %2355 }
0x1abb   :  { %v2358_v51 = vmul.f32 %v8205_v24, %v2356_v27 }
0x1abd   :  { %2360 = vrot.lane.b32.xlu0 %v2358_v51, %s8439_s6 }
0x1b2f   :  { %v2361_v28 = vpop.permute.xlu0 %2360 }
0x1b30   :  { %v2363_v30 = vadd.f32 %v2361_v28, %v2353_v26 }
0x1b32   :  { %8206 = vtanh.f32 %v2363_v30 }
0x1b3c   :  { %v8207_v31 = vpop.eup %8206 }
0x1b3d   :  { %2366 = vrot.lane.b32.xlu1 %v8207_v31, %s8433_s29 }
0x1baf   :  { %v2367_v32 = vpop.permute.xlu1 %2366 }
0x1bb0   :  { %v8910_v33 = vmul.f32 %v8205_v24, %v2367_v32 }
0x1bb2   :  { %2371 = vrot.lane.b32.xlu0 %v8910_v33, %s8440_s2 }
0x1c24   :  { %v2372_v35 = vpop.permute.xlu0 %2371 }
0x1c25   :  { %7157 = vmatmul.mubr.msk.f32.vlgmr.msra.gmra.mrb[10].mxu1 %vm2072_vm4, %v2372_v35 }
0x1c26   :  { %7750 = vmatpush3.bf16.msra.mxu1 %v8821_v25  ;;  %7170 = vmatprep.mubr.msk.f32.mxu1 %vm8427_vm0, %v8426_v0 }
0x1c27   :  { %7754 = vmatprep.subr.bf16.mxu1 %v8431_v9 }
0x1cf8   :  { %v2441_v13 = vpop.f32.mrb[10].mxu1 }
0x1cf9   :  { %v8011_v36 = vadd.f32 %v8868_v29, %v2441_v13  ;;  %v7158_v37 = vpop.f32.mrb[11].mxu1 }
0x1cfb   :  { %8208 = vtanh.f32 %v8011_v36  ;;  %v6522_v39 = vmul.f32 -1.442695, %v8011_v36 }
0x1cfd   :  { %8210 = vpow2.f32 %v6522_v39 }
0x1d05   :  { %v8209_v38 = vpop.eup %8208 }
0x1d06   :  { %2455 = vrot.lane.b32.xlu1 %v8209_v38, %s8438_s22 }
0x1d07   :  { %v8211_v40 = vpop.eup %8210 }
0x1d08   :  { %v2449_v41 = vadd.f32 1.0, %v8211_v40 }
0x1d0a   :  { %8212 = vrcp.f32 %v2449_v41 }
0x1d14   :  { %v8213_v42 = vpop.eup %8212 }
0x1d15   :  { %v2453_v45 = vmul.f32 %v8213_v42, %v2363_v30 }
0x1d78   :  { %v2456_v43 = vpop.permute.xlu1 %2455 }
0x1d79   :  { %v2458_v44 = vmul.f32 %v8213_v42, %v2456_v43 }
0x1d7b   :  { %2460 = vrot.lane.b32.xlu0 %v2458_v44, %s8439_s6 }
0x1ded   :  { %v2461_v46 = vpop.permute.xlu0 %2460 }
0x1dee   :  { %v2463_v47 = vadd.f32 %v2461_v46, %v2453_v45 }
0x1df0   :  { %8214 = vtanh.f32 %v2463_v47 }
0x1dfa   :  { %v8215_v48 = vpop.eup %8214 }
0x1dfb   :  { %2466 = vrot.lane.b32.xlu1 %v8215_v48, %s8433_s29 }
0x1e6d   :  { %v2467_v49 = vpop.permute.xlu1 %2466 }
0x1e6e   :  { %v8923_v8 = vmul.f32 %v8213_v42, %v2467_v49 }
0x1e70   :  { %2471 = vrot.lane.b32.xlu0 %v8923_v8, %s8440_s2 }
0x1ee2   :  { %v2472_v50 = vpop.permute.xlu0 %2471 }
0x1ee3   :  { %7164 = vmatmul.mubr.msk.f32.vlgmr.msra.gmra.mrb[12].mxu0 %vm2072_vm4, %v2472_v50 }
0x1ee4   :  { %7753 = vmatpush3.bf16.msra.mxu0 %v8821_v25  ;;  %7177 = vmatprep.mubr.msk.f32.mxu0 %vm8427_vm0, %v8426_v0 }
0x1ee5   :  { %7757 = vmatprep.subr.bf16.mxu0 %v8431_v9 }
0x1fb6   :  { %v2541_v52 = vpop.f32.mrb[12].mxu0 }
0x1fb7   :  { %v8012_v53 = vadd.f32 %v8868_v29, %v2541_v52  ;;  %v7165_v54 = vpop.f32.mrb[13].mxu0 }
0x1fb9   :  { %8216 = vtanh.f32 %v8012_v53  ;;  %v6524_v55 = vmul.f32 -1.442695, %v8012_v53 }
0x1fbb   :  { %8218 = vpow2.f32 %v6524_v55 }
0x1fc3   :  { %v8217_v12 = vpop.eup %8216 }
0x1fc4   :  { %2555 = vrot.lane.b32.xlu1 %v8217_v12, %s8438_s22 }
0x1fc5   :  { %v8219_v56 = vpop.eup %8218 }
0x1fc6   :  { %v2549_v57 = vadd.f32 1.0, %v8219_v56 }
0x1fc8   :  { %8220 = vrcp.f32 %v2549_v57  ;;  %v2902_v57 = vld [vmem:[%s9534_s7] sm:$0xff] }
0x1fd2   :  { %v8221_v58 = vpop.eup %8220 }
0x1fd3   :  { %v2553_v62 = vmul.f32 %v8221_v58, %v2463_v47 }
0x2036   :  { %v2556_v60 = vpop.permute.xlu1 %2555 }
0x2037   :  { %v2558_v61 = vmul.f32 %v8221_v58, %v2556_v60 }
0x2039   :  { %2560 = vrot.lane.b32.xlu0 %v2558_v61, %s8439_s6  ;;  %v2905_v61 = vld [vmem:[%s9534_s7 + $0x18] sm:$0xff] }
0x20ab   :  { %v2561_v63 = vpop.permute.xlu0 %2560 }
0x20ac   :  { %v2563_v1 = vadd.f32 %v2561_v63, %v2553_v62 }
0x20ae   :  { %8222 = vtanh.f32 %v2563_v1 }
0x20b8   :  { %v8223_v2 = vpop.eup %8222 }
0x20b9   :  { %2566 = vrot.lane.b32.xlu1 %v8223_v2, %s8433_s29  ;;  %v2907_v2 = vld [vmem:[%s9534_s7 + $0x28] sm:$0xff] }
0x212b   :  { %v2567_v3 = vpop.permute.xlu1 %2566 }
0x212c   :  { %v8936_v34 = vmul.f32 %v8221_v58, %v2567_v3  ;;  %v2903_v58 = vld [vmem:[%s9534_s7 + $0x8] sm:$0xff] }
0x212d   :  { %v7758_v60 = vpack.c.bf16 %v2903_v58, %v2902_v57  ;;  %v3081_v57 = vld [vmem:[%s9539_s12 + $0x10] sm:$0xff]  ;;  %v3082_v58 = vld [vmem:[%s9539_s12 + $0x18] sm:$0xff] }
0x212e   :  { %2571 = vrot.lane.b32.xlu0 %v8936_v34, %s8440_s2 }
0x21a0   :  { %v2572_v4 = vpop.permute.xlu0 %2571 }
0x21a1   :  { %7171 = vmatmul.mubr.msk.f32.vlgmr.msra.gmra.mrb[12].mxu1 %vm2072_vm4, %v2572_v4  ;;  %v2909_v4 = vld [vmem:[%s9534_s7 + $0x38] sm:$0xff] }
0x21a2   :  { %7756 = vmatpush3.bf16.msra.mxu1 %v8821_v25  ;;  %7184 = vmatprep.mubr.msk.f32.mxu1 %vm8427_vm0, %v8426_v0 }
0x21a3   :  { %7781 = vmatprep.subr.bf16.mxu1 %v8431_v9 }
0x2274   :  { %v2641_v5 = vpop.f32.mrb[12].mxu1 }
0x2275   :  { %v8013_v6 = vadd.f32 %v8868_v29, %v2641_v5  ;;  %v7172_v7 = vpop.f32.mrb[13].mxu1 }
0x2276   :  { %v2911_v7 = vld [vmem:[%s9534_s7 + $0x48] sm:$0xff] }
0x2277   :  { %8224 = vtanh.f32 %v8013_v6  ;;  %v6526_v11 = vmul.f32 -1.442695, %v8013_v6  ;;  %v2910_v6 = vld [vmem:[%s9534_s7 + $0x40] sm:$0xff] }
0x2279   :  { %8226 = vpow2.f32 %v6526_v11  ;;  %v2913_v11 = vld [vmem:[%s9534_s7 + $0x58] sm:$0xff] }
0x2281   :  { %v8225_v10 = vpop.eup %8224 }
0x2282   :  { %2655 = vrot.lane.b32.xlu1 %v8225_v10, %s8438_s22  ;;  %v7770_v10 = vpack.c.bf16 %v2911_v7, %v2910_v6 }
0x2283   :  { %v8227_v14 = vpop.eup %8226 }
0x2284   :  { %v2649_v16 = vadd.f32 1.0, %v8227_v14 }
0x2286   :  { %8228 = vrcp.f32 %v2649_v16  ;;  %v2914_v16 = vld [vmem:[%s9534_s7 + $0x60] sm:$0xff] }
0x2290   :  { %v8229_v17 = vpop.eup %8228 }
0x2291   :  { %v2653_v19 = vmul.f32 %v8229_v17, %v2563_v1  ;;  %v2906_v1 = vld [vmem:[%s9534_s7 + $0x20] sm:$0xff] }
0x2292   :  { %v7764_v3 = vpack.c.bf16 %v2907_v2, %v2906_v1 }
0x22f4   :  { %v2656_v25 = vpop.permute.xlu1 %2655 }
0x22f5   :  { %v2658_v18 = vmul.f32 %v8229_v17, %v2656_v25 }
0x22f7   :  { %2660 = vrot.lane.b32.xlu0 %v2658_v18, %s8439_s6  ;;  %v2916_v18 = vld [vmem:[%s9534_s7 + $0x70] sm:$0xff] }
0x2369   :  { %v2661_v20 = vpop.permute.xlu0 %2660 }
0x236a   :  { %v2663_v21 = vadd.f32 %v2661_v20, %v2653_v19  ;;  %v2917_v19 = vld [vmem:[%s9534_s7 + $0x78] sm:$0xff] }
0x236b   :  { %v7779_v20 = vpack.c.bf16 %v2917_v19, %v2916_v18 }
0x236c   :  { %8230 = vtanh.f32 %v2663_v21 }
0x2376   :  { %v8231_v22 = vpop.eup %8230 }
0x2377   :  { %2666 = vrot.lane.b32.xlu1 %v8231_v22, %s8433_s29  ;;  %v2996_v22 = vld [vmem:[%s9536_s9 + $0x8] sm:$0xff] }
0x23e9   :  { %v2667_v23 = vpop.permute.xlu1 %2666 }
0x23ea   :  { %v8949_v24 = vmul.f32 %v8229_v17, %v2667_v23  ;;  %v2915_v17 = vld [vmem:[%s9534_s7 + $0x68] sm:$0xff] }
0x23eb   :  { %v7776_v25 = vpack.c.bf16 %v2915_v17, %v2914_v16 }
0x23ec   :  { %2671 = vrot.lane.b32.xlu0 %v8949_v24, %s8440_s2 }
0x245e   :  { %v2672_v27 = vpop.permute.xlu0 %2671 }
0x245f   :  { %7178 = vmatmul.mubr.msk.f32.vlgmr.msra.gmra.mrb[14].mxu0 %vm2072_vm4, %v2672_v27 }
0x2460   :  { %7219 = vmatprep.mubr.msk.f32.mxu0 %vm8427_vm0, %v8426_v0  ;;  %7759 = vmatpush3.bf16.msra.mxu0 %v7758_v60  ;;  %v9116_v60 = vpack.c.bf16 %v3082_v58, %v3081_v57 }
0x2461   :  { %7760 = vmatprep.subr.bf16.mxu0 %v8431_v9 }
0x2532   :  { %v2741_v51 = vpop.f32.mrb[14].mxu0 }
0x2533   :  { %v8014_v26 = vadd.f32 %v8868_v29, %v2741_v51  ;;  %v7179_v28 = vpop.f32.mrb[15].mxu0 }
0x2535   :  { %8232 = vtanh.f32 %v8014_v26  ;;  %v6528_v31 = vmul.f32 -1.442695, %v8014_v26 }
0x2537   :  { %8234 = vpow2.f32 %v6528_v31 }
0x253f   :  { %v8233_v30 = vpop.eup %8232 }
0x2540   :  { %2755 = vrot.lane.b32.xlu1 %v8233_v30, %s8438_s22 }
0x2541   :  { %v8235_v32 = vpop.eup %8234 }
0x2542   :  { %v2749_v35 = vadd.f32 1.0, %v8235_v32 }
0x2544   :  { %8236 = vrcp.f32 %v2749_v35 }
0x254e   :  { %v8237_v13 = vpop.eup %8236 }
0x254f   :  { %v2753_v38 = vmul.f32 %v8237_v13, %v2663_v21  ;;  %v2995_v21 = vld [vmem:[%s9536_s9] sm:$0xff] }
0x2550   :  { %v7782_v23 = vpack.c.bf16 %v2996_v22, %v2995_v21 }
0x25b2   :  { %v2756_v36 = vpop.permute.xlu1 %2755 }
0x25b3   :  { %v2758_v37 = vmul.f32 %v8237_v13, %v2756_v36 }
0x25b5   :  { %2760 = vrot.lane.b32.xlu0 %v2758_v37, %s8439_s6 }
0x2627   :  { %v2761_v39 = vpop.permute.xlu0 %2760 }
0x2628   :  { %v2763_v40 = vadd.f32 %v2761_v39, %v2753_v38 }
0x262a   :  { %8238 = vtanh.f32 %v2763_v40 }
0x2634   :  { %v8239_v41 = vpop.eup %8238 }
0x2635   :  { %2766 = vrot.lane.b32.xlu1 %v8239_v41, %s8433_s29 }
0x26a7   :  { %v2767_v42 = vpop.permute.xlu1 %2766 }
0x26a8   :  { %v2769_v43 = vmul.f32 %v8237_v13, %v2767_v42 }
0x26aa   :  { %2771 = vrot.lane.b32.xlu0 %v2769_v43, %s8440_s2 }
0x271c   :  { %v2772_v44 = vpop.permute.xlu0 %2771 }
0x271d   :  { %7185 = vmatmul.mubr.msk.f32.vlgmr.msra.gmra.mrb[14].mxu1 %vm2072_vm4, %v2772_v44  ;;  %v3078_v44 = vld [vmem:[%s9538_s11 + $0x8] sm:$0xff] }
0x271e   :  { %7226 = vmatprep.mubr.msk.f32.mxu1 %vm8427_vm0, %v8426_v0  ;;  %7783 = vmatpush3.bf16.msra.mxu1 %v7782_v23 }
0x271f   :  { %7784 = vmatprep.subr.bf16.mxu1 %v8431_v9 }
0x27f0   :  { %v2841_v45 = vpop.f32.mrb[14].mxu1 }
0x27f1   :  { %v8015_v46 = vadd.f32 %v8868_v29, %v2841_v45  ;;  %v7186_v47 = vpop.f32.mrb[15].mxu1 }
0x27f3   :  { %8240 = vtanh.f32 %v8015_v46  ;;  %v6530_v49 = vmul.f32 -1.442695, %v8015_v46  ;;  %v6532_v46 = vld [vmem:[#allocation2] ss:$0 sm:$0xff] }
0x27f5   :  { %8242 = vpow2.f32 %v6530_v49 }
0x27fd   :  { %v8241_v48 = vpop.eup %8240 }
0x27fe   :  { %2855 = vrot.lane.b32.xlu1 %v8241_v48, %s8438_s22 }
0x27ff   :  { %v8243_v50 = vpop.eup %8242 }
0x2800   :  { %v2849_v52 = vadd.f32 1.0, %v8243_v50 }
0x2802   :  { %8244 = vrcp.f32 %v2849_v52 }
0x280c   :  { %v8245_v53 = vpop.eup %8244 }
0x280d   :  { %v2853_v29 = vmul.f32 %v8245_v53, %v2763_v40 }
0x2870   :  { %v2856_v54 = vpop.permute.xlu1 %2855 }
0x2871   :  { %v2858_v12 = vmul.f32 %v8245_v53, %v2856_v54 }
0x2873   :  { %2860 = vrot.lane.b32.xlu0 %v2858_v12, %s8439_s6  ;;  %v3079_v12 = vld [vmem:[%s9539_s12] sm:$0xff] }
0x2877   :  { %2871 = vrot.lane.b32.xlu0 %v8897_v15, %s8438_s22  ;;  %v2904_v15 = vld [vmem:[%s9534_s7 + $0x10] sm:$0xff] }
0x2878   :  { %v7761_v62 = vpack.c.bf16 %v2905_v61, %v2904_v15  ;;  %v9133_v61 = vld [vmem:[%s9540_s13] ss:$0 sm:$0xff]  ;;  %s8443_s13 = smov 12  }
0x287a   :  { %7762 = vmatpush3.bf16.msra.mxu0 %v7761_v62 }
0x287b   :  { %2877 = vrot.lane.b32.xlu0 %v8936_v34, %s8439_s6  ;;  %7763 = vmatprep.subr.bf16.mxu0 %v8431_v9  ;;  %v2908_v34 = vld [vmem:[%s9534_s7 + $0x30] sm:$0xff] }
0x287c   :  { %v7767_v5 = vpack.c.bf16 %v2909_v4, %v2908_v34 }
0x287e   :  { %7765 = vmatpush3.bf16.msra.mxu0 %v7764_v3 }
0x287f   :  { %2883 = vrot.lane.b32.xlu0 %v2769_v43, %s8441_s23  ;;  %7766 = vmatprep.subr.bf16.mxu0 %v8431_v9  ;;  %v3077_v43 = vld [vmem:[%s9538_s11] sm:$0xff] }
0x2880   :  { %v7785_v45 = vpack.c.bf16 %v3078_v44, %v3077_v43 }
0x2882   :  { %7768 = vmatpush3.bf16.msra.mxu0 %v7767_v5 }
0x2883   :  { %7769 = vmatprep.subr.bf16.mxu0 %v8431_v9 }
0x2886   :  { %7771 = vmatpush3.bf16.msra.mxu0 %v7770_v10 }
0x2887   :  { %7772 = vmatprep.subr.bf16.mxu0 %v8431_v9 }
0x28e5   :  { %v2861_v55 = vpop.permute.xlu0 %2860 }
0x28e6   :  { %v2863_v56 = vadd.f32 %v2861_v55, %v2853_v29  ;;  %v3080_v29 = vld [vmem:[%s9539_s12 + $0x8] sm:$0xff] }
0x28e8   :  { %8246 = vtanh.f32 %v2863_v56  ;;  %v9105_v56 = vpack.c.bf16 %v3080_v29, %v3079_v12 }
0x28e9   :  { %v2872_v51 = vpop.permute.xlu0 %2871 }
0x28ea   :  { %v2890_v28 = vsel %vm2072_vm4, %v8885_v59, %v2872_v51  ;;  %v6531_v59 = vld [vmem:[%s9535_s8] ss:$0 sm:$0xff] }
0x28ed   :  { %v2878_v32 = vpop.permute.xlu0 %2877 }
0x28f1   :  { %v2884_v37 = vpop.permute.xlu0 %2883 }
0x28f2   :  { %v8247_v63 = vpop.eup %8246 }
0x28f3   :  { %2866 = vrot.lane.b32.xlu1 %v8247_v63, %s8433_s29 }
0x28f7   :  { %2874 = vrot.lane.b32.xlu1 %v8910_v33, %s8430_s1  ;;  %v2912_v33 = vld [vmem:[%s9534_s7 + $0x50] sm:$0xff] }
0x28f8   :  { %v7773_v14 = vpack.c.bf16 %v2913_v11, %v2912_v33 }
0x28fa   :  { %7774 = vmatpush3.bf16.msra.mxu0 %v7773_v14 }
0x28fb   :  { %2880 = vrot.lane.b32.xlu1 %v8949_v24, %s8433_s29  ;;  %7775 = vmatprep.subr.bf16.mxu0 %v8431_v9 }
0x28fe   :  { %7777 = vmatpush3.bf16.msra.mxu0 %v7776_v25 }
0x28ff   :  { %7778 = vmatprep.subr.bf16.mxu0 %v8431_v9 }
0x2902   :  { %7780 = vmatpush3.bf16.msra.mxu0 %v7779_v20 }
0x2903   :  { %7805 = vmatprep.subr.bf16.mxu0 %v8431_v9 }
0x2965   :  { %v2867_v24 = vpop.permute.xlu1 %2866 }
0x2966   :  { %v2869_v27 = vmul.f32 %v8245_v53, %v2867_v24 }
0x2968   :  { %2887 = vrot.lane.b32.xlu1 %v2869_v27, %s8432_s28 }
0x2969   :  { %v2875_v26 = vpop.permute.xlu1 %2874 }
0x296a   :  { %v2891_v30 = vsel %vm695_vm3, %v2890_v28, %v2875_v26 }
0x296b   :  { %v2893_v31 = vsel %vm2892_vm5, %v2891_v30, %v8923_v8 }
0x296c   :  { %v2895_v35 = vsel %vm2894_vm6, %v2893_v31, %v2878_v32 }
0x296d   :  { %v2881_v13 = vpop.permute.xlu1 %2880 }
0x296e   :  { %v2897_v36 = vsel %vm2896_vm7, %v2895_v35, %v2881_v13 }
0x296f   :  { %v2899_v38 = vsel %vm2898_vm8, %v2897_v36, %v2884_v37 }
0x29da   :  { %v2888_v39 = vpop.permute.xlu1 %2887 }
0x29db   :  { %v2901_v40 = vsel %vm2900_vm9, %v2899_v38, %v2888_v39 }
0x29dc   :  { %7220 = vmatmul.mubr.f32.vlgmr.msra.gmra.mrb[16].mxu0 %v2901_v40 }
0x29dd   :  { %7282 = vmatprep.mubr.msk.f32.mxu0 %vm8427_vm0, %v8426_v0  ;;  %7807 = vmatpush3.bf16.msra.mxu0 %v7785_v45 }
0x29de   :  { %7850 = vmatprep.subr.bf16.mxu0 %v8431_v9 }
0x2aaf   :  { %v2991_v8 = vpop.f32.mrb[16].mxu0 }
0x2ab0   :  { %v2992_v41 = vadd.f32 %v6531_v59, %v2991_v8  ;;  %v7221_v42 = vpop.f32.mrb[17].mxu0 }
0x2ab2   :  { %7227 = vmatmul.mubr.msk.f32.vlgmr.msra.gmra.mrb[16].mxu1 %vm2072_vm4, %v2992_v41 }
0x2ab3   :  { %7233 = vmatprep.mubr.msk.f32.mxu1 %vm8427_vm0, %v8426_v0  ;;  %7786 = vmatpush3.bf16.msra.mxu1 %v7785_v45 }
0x2ab4   :  { %7787 = vmatprep.subr.bf16.mxu1 %v8431_v9 }
0x2b85   :  { %v3073_v47 = vpop.f32.mrb[16].mxu1 }
0x2b86   :  { %v9061_v48 = vadd.f32 %v6532_v46, %v3073_v47  ;;  %v7228_v49 = vpop.f32.mrb[17].mxu1 }
0x2b88   :  { %3237 = vrot.lane.b32.xlu1 %v9061_v48, %s8438_s22  ;;  %3163 = vrot.lane.b32.xlu0 %v9061_v48, %s8430_s1 }
0x2b89   :  { %7234 = vmatmul.mubr.msk.f32.vlgmr.msra.gmra.mrb[18].mxu1 %vm2072_vm4, %v9061_v48 }
0x2b8a   :  { %7789 = vmatpush3.bf16.msra.mxu1 %v7785_v45  ;;  %7240 = vmatprep.mubr.msk.f32.mxu1 %vm8427_vm0, %v8426_v0 }
0x2b8b   :  { %7790 = vmatprep.subr.bf16.mxu1 %v8431_v9 }
0x2b8c   :  { %3385 = vrot.lane.b32.xlu1 %v9061_v48, %s8432_s28  ;;  %3311 = vrot.lane.b32.xlu0 %v9061_v48, %s8440_s2 }
0x2b90   :  { %3533 = vrot.lane.b32.xlu1 %v9061_v48, %s8433_s29  ;;  %3459 = vrot.lane.b32.xlu0 %v9061_v48, %s8441_s23 }
0x2bfa   :  { %v3164_v50 = vpop.permute.xlu0 %3163  ;;  %v3238_v52 = vpop.permute.xlu1 %3237 }
0x2bfb   :  { %7241 = vmatmul.mubr.msk.f32.vlgmr.msra.gmra.mrb[20].mxu1 %vm2072_vm4, %v3164_v50 }
0x2bfc   :  { %7792 = vmatpush3.bf16.msra.mxu1 %v7785_v45  ;;  %7247 = vmatprep.mubr.msk.f32.mxu1 %vm8427_vm0, %v8426_v0 }
0x2bfd   :  { %7793 = vmatprep.subr.bf16.mxu1 %v8431_v9 }
0x2bfe   :  { %v3312_v53 = vpop.permute.xlu0 %3311  ;;  %v3386_v54 = vpop.permute.xlu1 %3385 }
0x2bff   :  { %7248 = vmatmul.mubr.msk.f32.vlgmr.msra.gmra.mrb[22].mxu1 %vm2072_vm4, %v3238_v52 }
0x2c00   :  { %7795 = vmatpush3.bf16.msra.mxu1 %v7785_v45  ;;  %7254 = vmatprep.mubr.msk.f32.mxu1 %vm8427_vm0, %v8426_v0 }
0x2c01   :  { %7796 = vmatprep.subr.bf16.mxu1 %v8431_v9 }
0x2c02   :  { %v3460_v55 = vpop.permute.xlu0 %3459  ;;  %v3534_v15 = vpop.permute.xlu1 %3533 }
0x2c03   :  { %7255 = vmatmul.mubr.msk.f32.vlgmr.msra.gmra.mrb[24].mxu1 %vm2072_vm4, %v3312_v53 }
0x2c04   :  { %7798 = vmatpush3.bf16.msra.mxu1 %v7785_v45  ;;  %7261 = vmatprep.mubr.msk.f32.mxu1 %vm8427_vm0, %v8426_v0 }
0x2c05   :  { %7799 = vmatprep.subr.bf16.mxu1 %v8431_v9 }
0x2c07   :  { %7262 = vmatmul.mubr.msk.f32.vlgmr.msra.gmra.mrb[26].mxu1 %vm2072_vm4, %v3386_v54 }
0x2c08   :  { %7801 = vmatpush3.bf16.msra.mxu1 %v7785_v45  ;;  %7268 = vmatprep.mubr.msk.f32.mxu1 %vm8427_vm0, %v8426_v0 }
0x2c09   :  { %7802 = vmatprep.subr.bf16.mxu1 %v8431_v9 }
0x2c0b   :  { %7269 = vmatmul.mubr.msk.f32.vlgmr.msra.gmra.mrb[28].mxu1 %vm2072_vm4, %v3460_v55 }
0x2c0c   :  { %7804 = vmatpush3.bf16.msra.mxu1 %v7785_v45  ;;  %7275 = vmatprep.mubr.msk.f32.mxu1 %vm8427_vm0, %v8426_v0 }
0x2c0d   :  { %7808 = vmatprep.subr.bf16.mxu1 %v8431_v9 }
0x2c0f   :  { %7276 = vmatmul.mubr.msk.f32.vlgmr.msra.gmra.mrb[30].mxu1 %vm2072_vm4, %v3534_v15 }
0x2c10   :  { %7810 = vmatpush3.bf16.msra.mxu1 %v9105_v56  ;;  %7293 = vmatprep.mubr.msk.f32.mxu1 %vm8427_vm0, %v8426_v0 }
0x2c11   :  { %7811 = vmatprep.subr.bf16.mxu1 %v8431_v9 }
0x2c14   :  { %7813 = vmatpush3.bf16.msra.mxu1 %v9116_v60 }
0x2c15   :  { %7814 = vmatprep.subr.bf16.mxu1 %v8431_v9 }
0x2c17   :  { %7294 = vmatmul.mubr.f32.vlgmr.msra.gmra.mrb[18].mxu1 %v8426_v0 }
0x2c18   :  { %7816 = vmatpush3.bf16.msra.mxu1 %v9105_v56  ;;  %7304 = vmatprep.mubr.msk.f32.mxu1 %vm8427_vm0, %v8426_v0 }
0x2c19   :  { %7817 = vmatprep.subr.bf16.mxu1 %v8431_v9 }
0x2c1c   :  { %7819 = vmatpush3.bf16.msra.mxu1 %v9116_v60 }
0x2c1d   :  { %7820 = vmatprep.subr.bf16.mxu1 %v8431_v9 }
0x2cea   :  { %v3747_v62 = vpop.f32.mrb[18].mxu1 }
0x2ceb   :  { %v8016_v63 = vadd.f32 %v9133_v61, %v3747_v62  ;;  %v7295_v1 = vpop.f32.mrb[19].mxu1 }
0x2ced   :  { %8248 = vtanh.f32 %v8016_v63  ;;  %v6543_v3 = vmul.f32 -1.442695, %v8016_v63 }
0x2cef   :  { %8250 = vpow2.f32 %v6543_v3 }
0x2cf7   :  { %v8249_v2 = vpop.eup %8248 }
0x2cf8   :  { %3761 = vrot.lane.b32.xlu0 %v8249_v2, %s8432_s28 }
0x2cf9   :  { %v8251_v34 = vpop.eup %8250 }
0x2cfa   :  { %v3755_v4 = vadd.f32 1.0, %v8251_v34 }
0x2cfc   :  { %8252 = vrcp.f32 %v3755_v4 }
0x2d06   :  { %v8253_v5 = vpop.eup %8252 }
0x2d07   :  { %v3759_v10 = vmul.f32 0.0, %v8253_v5 }
0x2d6a   :  { %v3762_v6 = vpop.permute.xlu0 %3761 }
0x2d6b   :  { %v3764_v7 = vmul.f32 %v8253_v5, %v3762_v6 }
0x2d6d   :  { %3766 = vrot.lane.b32.xlu1 %v3764_v7, %s8433_s29 }
0x2ddf   :  { %v3767_v33 = vpop.permute.xlu1 %3766 }
0x2de0   :  { %v3769_v11 = vadd.f32 %v3767_v33, %v3759_v10 }
0x2de2   :  { %8254 = vtanh.f32 %v3769_v11 }
0x2dec   :  { %v8255_v14 = vpop.eup %8254 }
0x2ded   :  { %3772 = vrot.lane.b32.xlu0 %v8255_v14, %s8432_s28 }
0x2e5f   :  { %v3773_v16 = vpop.permute.xlu0 %3772 }
0x2e60   :  { %v3775_v17 = vmul.f32 %v8253_v5, %v3773_v16 }
0x2e62   :  { %3777 = vrot.lane.b32.xlu1 %v3775_v17, %s8433_s29 }
0x2ed4   :  { %v9140_v25 = vpop.permute.xlu1 %3777 }
0x2ed5   :  { %7305 = vmatmul.mubr.msk.f32.vlgmr.msra.gmra.mrb[20].mxu1 %vm695_vm3, %v9140_v25 }
0x2ed6   :  { %7822 = vmatpush3.bf16.msra.mxu1 %v9105_v56  ;;  %7315 = vmatprep.mubr.msk.f32.mxu1 %vm8427_vm0, %v8426_v0 }
0x2ed7   :  { %7823 = vmatprep.subr.bf16.mxu1 %v8431_v9 }
0x2eda   :  { %7825 = vmatpush3.bf16.msra.mxu1 %v9116_v60 }
0x2edb   :  { %7826 = vmatprep.subr.bf16.mxu1 %v8431_v9 }
0x2fa8   :  { %v3847_v18 = vpop.f32.mrb[20].mxu1 }
0x2fa9   :  { %v8017_v19 = vadd.f32 %v9133_v61, %v3847_v18  ;;  %v7306_v20 = vpop.f32.mrb[21].mxu1 }
0x2fab   :  { %8256 = vtanh.f32 %v8017_v19  ;;  %v6545_v22 = vmul.f32 -1.442695, %v8017_v19 }
0x2fad   :  { %8258 = vpow2.f32 %v6545_v22 }
0x2fb5   :  { %v8257_v21 = vpop.eup %8256 }
0x2fb6   :  { %3861 = vrot.lane.b32.xlu0 %v8257_v21, %s8432_s28 }
0x2fb7   :  { %v8259_v23 = vpop.eup %8258 }
0x2fb8   :  { %v3855_v24 = vadd.f32 1.0, %v8259_v23 }
0x2fba   :  { %8260 = vrcp.f32 %v3855_v24 }
0x2fc4   :  { %v8261_v27 = vpop.eup %8260 }
0x2fc5   :  { %v3859_v28 = vmul.f32 %v8261_v27, %v3769_v11 }
0x3028   :  { %v3862_v51 = vpop.permute.xlu0 %3861 }
0x3029   :  { %v3864_v26 = vmul.f32 %v8261_v27, %v3862_v51 }
0x302b   :  { %3866 = vrot.lane.b32.xlu1 %v3864_v26, %s8433_s29 }
0x309d   :  { %v3867_v30 = vpop.permute.xlu1 %3866 }
0x309e   :  { %v3869_v31 = vadd.f32 %v3867_v30, %v3859_v28 }
0x30a0   :  { %8262 = vtanh.f32 %v3869_v31 }
0x30aa   :  { %v8263_v32 = vpop.eup %8262 }
0x30ab   :  { %3872 = vrot.lane.b32.xlu0 %v8263_v32, %s8432_s28 }
0x311d   :  { %v3873_v35 = vpop.permute.xlu0 %3872 }
0x311e   :  { %v3875_v13 = vmul.f32 %v8261_v27, %v3873_v35 }
0x3120   :  { %3877 = vrot.lane.b32.xlu1 %v3875_v13, %s8433_s29 }
0x3192   :  { %v9155_v36 = vpop.permute.xlu1 %3877 }
0x3193   :  { %7316 = vmatmul.mubr.msk.f32.vlgmr.msra.gmra.mrb[22].mxu1 %vm695_vm3, %v9155_v36 }
0x3194   :  { %7828 = vmatpush3.bf16.msra.mxu1 %v9105_v56  ;;  %7326 = vmatprep.mubr.msk.f32.mxu1 %vm8427_vm0, %v8426_v0 }
0x3195   :  { %7829 = vmatprep.subr.bf16.mxu1 %v8431_v9 }
0x3198   :  { %7831 = vmatpush3.bf16.msra.mxu1 %v9116_v60 }
0x3199   :  { %7832 = vmatprep.subr.bf16.mxu1 %v8431_v9 }
0x3266   :  { %v3947_v37 = vpop.f32.mrb[22].mxu1 }
0x3267   :  { %v8018_v38 = vadd.f32 %v9133_v61, %v3947_v37  ;;  %v7317_v39 = vpop.f32.mrb[23].mxu1 }
0x3269   :  { %8264 = vtanh.f32 %v8018_v38  ;;  %v6547_v59 = vmul.f32 -1.442695, %v8018_v38 }
0x326b   :  { %8266 = vpow2.f32 %v6547_v59 }
0x3273   :  { %v8265_v40 = vpop.eup %8264 }
0x3274   :  { %3961 = vrot.lane.b32.xlu0 %v8265_v40, %s8432_s28 }
0x3275   :  { %v8267_v8 = vpop.eup %8266 }
0x3276   :  { %v3955_v41 = vadd.f32 1.0, %v8267_v8 }
0x3278   :  { %8268 = vrcp.f32 %v3955_v41 }
0x3282   :  { %v8269_v42 = vpop.eup %8268 }
0x3283   :  { %v3959_v45 = vmul.f32 %v8269_v42, %v3869_v31 }
0x32e6   :  { %v3962_v43 = vpop.permute.xlu0 %3961 }
0x32e7   :  { %v3964_v44 = vmul.f32 %v8269_v42, %v3962_v43 }
0x32e9   :  { %3966 = vrot.lane.b32.xlu1 %v3964_v44, %s8433_s29 }
0x335b   :  { %v3967_v46 = vpop.permute.xlu1 %3966 }
0x335c   :  { %v3969_v47 = vadd.f32 %v3967_v46, %v3959_v45 }
0x335e   :  { %8270 = vtanh.f32 %v3969_v47 }
0x3368   :  { %v8271_v49 = vpop.eup %8270 }
0x3369   :  { %3972 = vrot.lane.b32.xlu0 %v8271_v49, %s8432_s28 }
0x33db   :  { %v3973_v50 = vpop.permute.xlu0 %3972 }
0x33dc   :  { %v3975_v52 = vmul.f32 %v8269_v42, %v3973_v50 }
0x33de   :  { %3977 = vrot.lane.b32.xlu1 %v3975_v52, %s8433_s29 }
0x3450   :  { %v9170_v53 = vpop.permute.xlu1 %3977 }
0x3451   :  { %7327 = vmatmul.mubr.msk.f32.vlgmr.msra.gmra.mrb[24].mxu1 %vm695_vm3, %v9170_v53 }
0x3452   :  { %7834 = vmatpush3.bf16.msra.mxu1 %v9105_v56  ;;  %7337 = vmatprep.mubr.msk.f32.mxu1 %vm8427_vm0, %v8426_v0 }
0x3453   :  { %7835 = vmatprep.subr.bf16.mxu1 %v8431_v9 }
0x3456   :  { %7837 = vmatpush3.bf16.msra.mxu1 %v9116_v60 }
0x3457   :  { %7838 = vmatprep.subr.bf16.mxu1 %v8431_v9 }
0x3524   :  { %v4047_v54 = vpop.f32.mrb[24].mxu1 }
0x3525   :  { %v8019_v12 = vadd.f32 %v9133_v61, %v4047_v54  ;;  %v7328_v29 = vpop.f32.mrb[25].mxu1 }
0x3527   :  { %8272 = vtanh.f32 %v8019_v12  ;;  %v6549_v57 = vmul.f32 -1.442695, %v8019_v12 }
0x3529   :  { %8274 = vpow2.f32 %v6549_v57 }
0x3531   :  { %v8273_v55 = vpop.eup %8272 }
0x3532   :  { %4061 = vrot.lane.b32.xlu0 %v8273_v55, %s8432_s28 }
0x3533   :  { %v8275_v58 = vpop.eup %8274 }
0x3534   :  { %v4055_v15 = vadd.f32 1.0, %v8275_v58 }
0x3536   :  { %8276 = vrcp.f32 %v4055_v15 }
0x3540   :  { %v8277_v62 = vpop.eup %8276 }
0x3541   :  { %v4059_v2 = vmul.f32 %v8277_v62, %v3969_v47 }
0x35a4   :  { %v4062_v63 = vpop.permute.xlu0 %4061 }
0x35a5   :  { %v4064_v1 = vmul.f32 %v8277_v62, %v4062_v63 }
0x35a7   :  { %4066 = vrot.lane.b32.xlu1 %v4064_v1, %s8433_s29  ;;  %v4476_v1 = vld [vmem:[%s9541_s14] sm:$0xff] }
0x3619   :  { %v4067_v3 = vpop.permute.xlu1 %4066 }
0x361a   :  { %v4069_v34 = vadd.f32 %v4067_v3, %v4059_v2  ;;  %v4477_v2 = vld [vmem:[%s9541_s14 + $0x8] sm:$0xff]  ;;  %v4478_v3 = vld [vmem:[%s9541_s14 + $0x10] sm:$0xff] }
0x361c   :  { %8278 = vtanh.f32 %v4069_v34 }
0x3626   :  { %v8279_v4 = vpop.eup %8278 }
0x3627   :  { %4072 = vrot.lane.b32.xlu0 %v8279_v4, %s8432_s28  ;;  %v4479_v4 = vld [vmem:[%s9541_s14 + $0x18] sm:$0xff] }
0x3699   :  { %v4073_v5 = vpop.permute.xlu0 %4072 }
0x369a   :  { %v4075_v6 = vmul.f32 %v8277_v62, %v4073_v5  ;;  %v7860_v5 = vpack.c.bf16 %v4479_v4, %v4478_v3 }
0x369c   :  { %4077 = vrot.lane.b32.xlu1 %v4075_v6, %s8433_s29 }
0x370e   :  { %v9185_v7 = vpop.permute.xlu1 %4077 }
0x370f   :  { %7338 = vmatmul.mubr.msk.f32.vlgmr.msra.gmra.mrb[26].mxu1 %vm695_vm3, %v9185_v7 }
0x3710   :  { %7840 = vmatpush3.bf16.msra.mxu1 %v9105_v56  ;;  %7348 = vmatprep.mubr.msk.f32.mxu1 %vm8427_vm0, %v8426_v0 }
0x3711   :  { %7841 = vmatprep.subr.bf16.mxu1 %v8431_v9 }
0x3714   :  { %7843 = vmatpush3.bf16.msra.mxu1 %v9116_v60 }
0x3715   :  { %7844 = vmatprep.subr.bf16.mxu1 %v8431_v9 }
0x37e2   :  { %v4147_v10 = vpop.f32.mrb[26].mxu1 }
0x37e3   :  { %v8020_v33 = vadd.f32 %v9133_v61, %v4147_v10  ;;  %v7339_v11 = vpop.f32.mrb[27].mxu1 }
0x37e5   :  { %8280 = vtanh.f32 %v8020_v33  ;;  %v6551_v16 = vmul.f32 -1.442695, %v8020_v33 }
0x37e7   :  { %8282 = vpow2.f32 %v6551_v16 }
0x37ef   :  { %v8281_v14 = vpop.eup %8280 }
0x37f0   :  { %4161 = vrot.lane.b32.xlu0 %v8281_v14, %s8432_s28 }
0x37f1   :  { %v8283_v17 = vpop.eup %8282 }
0x37f2   :  { %v4155_v18 = vadd.f32 1.0, %v8283_v17 }
0x37f4   :  { %8284 = vrcp.f32 %v4155_v18 }
0x37fe   :  { %v8285_v19 = vpop.eup %8284 }
0x37ff   :  { %v4159_v22 = vmul.f32 %v8285_v19, %v4069_v34 }
0x3862   :  { %v4162_v20 = vpop.permute.xlu0 %4161 }
0x3863   :  { %v4164_v21 = vmul.f32 %v8285_v19, %v4162_v20 }
0x3865   :  { %4166 = vrot.lane.b32.xlu1 %v4164_v21, %s8433_s29 }
0x38d7   :  { %v4167_v23 = vpop.permute.xlu1 %4166 }
0x38d8   :  { %v4169_v24 = vadd.f32 %v4167_v23, %v4159_v22  ;;  %v4480_v22 = vld [vmem:[%s9542_s15] sm:$0xff]  ;;  %v4481_v23 = vld [vmem:[%s9542_s15 + $0x8] sm:$0xff] }
0x38da   :  { %8286 = vtanh.f32 %v4169_v24 }
0x38e4   :  { %v8287_v27 = vpop.eup %8286 }
0x38e5   :  { %4172 = vrot.lane.b32.xlu0 %v8287_v27, %s8432_s28  ;;  %v4482_v27 = vld [vmem:[%s9542_s15 + $0x10] sm:$0xff] }
0x3957   :  { %v4173_v51 = vpop.permute.xlu0 %4172 }
0x3958   :  { %v4175_v26 = vmul.f32 %v8285_v19, %v4173_v51  ;;  %v4483_v51 = vld [vmem:[%s9542_s15 + $0x18] sm:$0xff] }
0x395a   :  { %4177 = vrot.lane.b32.xlu1 %v4175_v26, %s8433_s29  ;;  %v9317_v26 = vpack.c.bf16 %v4483_v51, %v4482_v27 }
0x39cc   :  { %v9200_v28 = vpop.permute.xlu1 %4177 }
0x39cd   :  { %7349 = vmatmul.mubr.msk.f32.vlgmr.msra.gmra.mrb[28].mxu1 %vm695_vm3, %v9200_v28 }
0x39ce   :  { %7846 = vmatpush3.bf16.msra.mxu1 %v9105_v56  ;;  %7359 = vmatprep.mubr.msk.f32.mxu1 %vm8427_vm0, %v8426_v0 }
0x39cf   :  { %7847 = vmatprep.subr.bf16.mxu1 %v8431_v9 }
0x39d2   :  { %7849 = vmatpush3.bf16.msra.mxu1 %v9116_v60 }
0x39d3   :  { %7892 = vmatprep.subr.bf16.mxu1 %v8431_v9 }
0x3aa0   :  { %v4247_v30 = vpop.f32.mrb[28].mxu1 }
0x3aa1   :  { %v8021_v31 = vadd.f32 %v9133_v61, %v4247_v30  ;;  %v7350_v32 = vpop.f32.mrb[29].mxu1 }
0x3aa2   :  { %v9339_v32 = vld [vmem:[%s9543_s16] ss:$0 sm:$0xff] }
0x3aa3   :  { %8288 = vtanh.f32 %v8021_v31  ;;  %v6553_v13 = vmul.f32 -1.442695, %v8021_v31 }
0x3aa5   :  { %8290 = vpow2.f32 %v6553_v13 }
0x3aad   :  { %v8289_v35 = vpop.eup %8288 }
0x3aae   :  { %4261 = vrot.lane.b32.xlu0 %v8289_v35, %s8432_s28 }
0x3aaf   :  { %v8291_v37 = vpop.eup %8290 }
0x3ab0   :  { %v4255_v38 = vadd.f32 1.0, %v8291_v37 }
0x3ab2   :  { %8292 = vrcp.f32 %v4255_v38 }
0x3abc   :  { %v8293_v39 = vpop.eup %8292 }
0x3abd   :  { %v4259_v8 = vmul.f32 %v8293_v39, %v4169_v24  ;;  %v9307_v24 = vpack.c.bf16 %v4481_v23, %v4480_v22 }
0x3b20   :  { %v4262_v40 = vpop.permute.xlu0 %4261 }
0x3b21   :  { %v4264_v59 = vmul.f32 %v8293_v39, %v4262_v40 }
0x3b23   :  { %4266 = vrot.lane.b32.xlu1 %v4264_v59, %s8433_s29 }
0x3b95   :  { %v4267_v41 = vpop.permute.xlu1 %4266 }
0x3b96   :  { %v4269_v42 = vadd.f32 %v4267_v41, %v4259_v8 }
0x3b98   :  { %8294 = vtanh.f32 %v4269_v42 }
0x3ba2   :  { %v8295_v43 = vpop.eup %8294 }
0x3ba3   :  { %4272 = vrot.lane.b32.xlu0 %v8295_v43, %s8432_s28 }
0x3c15   :  { %v4273_v44 = vpop.permute.xlu0 %4272 }
0x3c16   :  { %v4275_v45 = vmul.f32 %v8293_v39, %v4273_v44 }
0x3c18   :  { %4277 = vrot.lane.b32.xlu1 %v4275_v45, %s8433_s29 }
0x3c8a   :  { %v9215_v46 = vpop.permute.xlu1 %4277 }
0x3c8b   :  { %7360 = vmatmul.mubr.msk.f32.vlgmr.msra.gmra.mrb[30].mxu1 %vm695_vm3, %v9215_v46 }
0x3c8c   :  { %7447 = vmatprep.mubr.msk.f32.mxu1 %vm8427_vm0, %v8426_v0 }
0x3d5e   :  { %v4347_v47 = vpop.f32.mrb[30].mxu1 }
0x3d5f   :  { %v8022_v49 = vadd.f32 %v9133_v61, %v4347_v47  ;;  %v7361_v50 = vpop.f32.mrb[31].mxu1 }
0x3d61   :  { %8296 = vtanh.f32 %v8022_v49  ;;  %v6555_v54 = vmul.f32 -1.442695, %v8022_v49 }
0x3d63   :  { %8298 = vpow2.f32 %v6555_v54 }
0x3d6b   :  { %v8297_v52 = vpop.eup %8296 }
0x3d6c   :  { %4361 = vrot.lane.b32.xlu0 %v8297_v52, %s8432_s28 }
0x3d6d   :  { %v8299_v12 = vpop.eup %8298 }
0x3d6e   :  { %v4355_v29 = vadd.f32 1.0, %v8299_v12 }
0x3d70   :  { %8300 = vrcp.f32 %v4355_v29 }
0x3d7a   :  { %v8301_v55 = vpop.eup %8300 }
0x3d7b   :  { %v4359_v15 = vmul.f32 %v8301_v55, %v4269_v42 }
0x3dde   :  { %v4362_v57 = vpop.permute.xlu0 %4361 }
0x3ddf   :  { %v4364_v58 = vmul.f32 %v8301_v55, %v4362_v57 }
0x3de1   :  { %4366 = vrot.lane.b32.xlu1 %v4364_v58, %s8433_s29 }
0x3de5   :  { %3607 = vrot.lane.b32.xlu1 %v9061_v48, %s8439_s6  ;;  %v7857_v48 = vpack.c.bf16 %v4477_v2, %v4476_v1 }
0x3de7   :  { %7894 = vmatpush3.bf16.msra.mxu1 %v7857_v48 }
0x3de8   :  { %7895 = vmatprep.subr.bf16.mxu1 %v8431_v9 }
0x3deb   :  { %7897 = vmatpush3.bf16.msra.mxu1 %v7860_v5 }
0x3dec   :  { %7940 = vmatprep.subr.bf16.mxu1 %v8431_v9 }
0x3e53   :  { %v4367_v62 = vpop.permute.xlu1 %4366 }
0x3e54   :  { %v9226_v63 = vadd.f32 %v4367_v62, %v4359_v15 }
0x3e56   :  { %8302 = vtanh.f32 %v9226_v63 }
0x3e57   :  { %v3608_v34 = vpop.permute.xlu1 %3607 }
0x3e58   :  { %7283 = vmatmul.mubr.msk.f32.vlgmr.msra.gmra.mrb[18].mxu0 %vm2072_vm4, %v3608_v34 }
0x3e59   :  { %7852 = vmatpush3.bf16.msra.mxu0 %v9105_v56  ;;  %7370 = vmatprep.mubr.msk.f32.mxu0 %vm8427_vm0, %v8426_v0 }
0x3e5a   :  { %7853 = vmatprep.subr.bf16.mxu0 %v8431_v9 }
0x3e5d   :  { %7855 = vmatpush3.bf16.msra.mxu0 %v9116_v60 }
0x3e5e   :  { %7856 = vmatprep.subr.bf16.mxu0 %v8431_v9 }
0x3e60   :  { %v8303_v6 = vpop.eup %8302 }
0x3e61   :  { %4372 = vrot.lane.b32.xlu0 %v8303_v6, %s8432_s28 }
0x3ed3   :  { %v4373_v56 = vpop.permute.xlu0 %4372 }
0x3ed4   :  { %v4375_v10 = vmul.f32 %v8301_v55, %v4373_v56 }
0x3ed6   :  { %4377 = vrot.lane.b32.xlu0 %v4375_v10, %s8433_s29 }
0x3f48   :  { %v4378_v33 = vpop.permute.xlu0 %4377 }
0x3f49   :  { %7371 = vmatmul.mubr.msk.f32.vlgmr.msra.gmra.mrb[18].mxu0 %vm695_vm3, %v4378_v33  ;;  %7448 = vmatmul.mubr.msk.f32.vlgmr.msra.gmra.mrb[32].mxu1 %vm695_vm3, %v4378_v33 }
0x3f4a   :  { %7858 = vmatpush3.bf16.msra.mxu0 %v7857_v48  ;;  %7381 = vmatprep.mubr.msk.f32.mxu0 %vm8427_vm0, %v8426_v0 }
0x3f4b   :  { %7859 = vmatprep.subr.bf16.mxu0 %v8431_v9  ;;  %7535 = vmatprep.mubr.msk.f32.mxu1 %vm8427_vm0, %v8426_v0 }
0x3f4c   :  { %7942 = vmatpush3.bf16.msra.mxu1 %v9307_v24 }
0x3f4d   :  { %7943 = vmatprep.subr.bf16.mxu1 %v8431_v9 }
0x3f4e   :  { %7861 = vmatpush3.bf16.msra.mxu0 %v7860_v5 }
0x3f4f   :  { %7862 = vmatprep.subr.bf16.mxu0 %v8431_v9 }
0x3f50   :  { %7945 = vmatpush3.bf16.msra.mxu1 %v9317_v26 }
0x3f51   :  { %7382 = vmatmul.mubr.msk.f32.vlgmr.msra.gmra.mrb[20].mxu0 %vm695_vm3, %v9140_v25  ;;  %7952 = vmatprep.subr.bf16.mxu1 %v8431_v9 }
0x3f52   :  { %7864 = vmatpush3.bf16.msra.mxu0 %v7857_v48  ;;  %7392 = vmatprep.mubr.msk.f32.mxu0 %vm8427_vm0, %v8426_v0 }
0x3f53   :  { %7865 = vmatprep.subr.bf16.mxu0 %v8431_v9 }
0x3f56   :  { %7867 = vmatpush3.bf16.msra.mxu0 %v7860_v5 }
0x3f57   :  { %7868 = vmatprep.subr.bf16.mxu0 %v8431_v9 }
0x3f59   :  { %7393 = vmatmul.mubr.msk.f32.vlgmr.msra.gmra.mrb[22].mxu0 %vm695_vm3, %v9155_v36 }
0x3f5a   :  { %7870 = vmatpush3.bf16.msra.mxu0 %v7857_v48  ;;  %7403 = vmatprep.mubr.msk.f32.mxu0 %vm8427_vm0, %v8426_v0 }
0x3f5b   :  { %7871 = vmatprep.subr.bf16.mxu0 %v8431_v9 }
0x3f5e   :  { %7873 = vmatpush3.bf16.msra.mxu0 %v7860_v5 }
0x3f5f   :  { %7874 = vmatprep.subr.bf16.mxu0 %v8431_v9 }
0x3f61   :  { %7404 = vmatmul.mubr.msk.f32.vlgmr.msra.gmra.mrb[24].mxu0 %vm695_vm3, %v9170_v53 }
0x3f62   :  { %7876 = vmatpush3.bf16.msra.mxu0 %v7857_v48  ;;  %7414 = vmatprep.mubr.msk.f32.mxu0 %vm8427_vm0, %v8426_v0 }
0x3f63   :  { %7877 = vmatprep.subr.bf16.mxu0 %v8431_v9 }
0x3f66   :  { %7879 = vmatpush3.bf16.msra.mxu0 %v7860_v5 }
0x3f67   :  { %7880 = vmatprep.subr.bf16.mxu0 %v8431_v9 }
0x3f69   :  { %7415 = vmatmul.mubr.msk.f32.vlgmr.msra.gmra.mrb[26].mxu0 %vm695_vm3, %v9185_v7 }
0x3f6a   :  { %7882 = vmatpush3.bf16.msra.mxu0 %v7857_v48  ;;  %7425 = vmatprep.mubr.msk.f32.mxu0 %vm8427_vm0, %v8426_v0 }
0x3f6b   :  { %7883 = vmatprep.subr.bf16.mxu0 %v8431_v9 }
0x3f6e   :  { %7885 = vmatpush3.bf16.msra.mxu0 %v7860_v5 }
0x3f6f   :  { %7886 = vmatprep.subr.bf16.mxu0 %v8431_v9 }
0x3f71   :  { %7426 = vmatmul.mubr.msk.f32.vlgmr.msra.gmra.mrb[28].mxu0 %vm695_vm3, %v9200_v28 }
0x3f72   :  { %7888 = vmatpush3.bf16.msra.mxu0 %v7857_v48  ;;  %7436 = vmatprep.mubr.msk.f32.mxu0 %vm8427_vm0, %v8426_v0 }
0x3f73   :  { %7889 = vmatprep.subr.bf16.mxu0 %v8431_v9 }
0x3f76   :  { %7891 = vmatpush3.bf16.msra.mxu0 %v7860_v5 }
0x3f77   :  { %7898 = vmatprep.subr.bf16.mxu0 %v8431_v9 }
0x3f79   :  { %7437 = vmatmul.mubr.msk.f32.vlgmr.msra.gmra.mrb[30].mxu0 %vm695_vm3, %v9215_v46 }
0x3f7a   :  { %7900 = vmatpush3.bf16.msra.mxu0 %v7857_v48  ;;  %7458 = vmatprep.mubr.msk.f32.mxu0 %vm8427_vm0, %v8426_v0 }
0x3f7b   :  { %7901 = vmatprep.subr.bf16.mxu0 %v8431_v9 }
0x3f7e   :  { %7903 = vmatpush3.bf16.msra.mxu0 %v7860_v5 }
0x3f7f   :  { %7904 = vmatprep.subr.bf16.mxu0 %v8431_v9 }
0x401c   :  { %v4447_v60 = vpop.f32.mrb[18].mxu0 }
0x401d   :  { %v8023_v25 = vadd.f32 %v9133_v61, %v4447_v60  ;;  %v7372_v36 = vpop.f32.mrb[19].mxu0 }
0x401f   :  { %8304 = vtanh.f32 %v8023_v25  ;;  %v6557_v7 = vmul.f32 -1.442695, %v8023_v25 }
0x4021   :  { %8306 = vpow2.f32 %v6557_v7 }
0x4029   :  { %v8305_v53 = vpop.eup %8304 }
0x402a   :  { %4461 = vrot.lane.b32.xlu1 %v8305_v53, %s8432_s28 }
0x402b   :  { %v8307_v11 = vpop.eup %8306 }
0x402c   :  { %v4455_v14 = vadd.f32 1.0, %v8307_v11 }
0x402e   :  { %8308 = vrcp.f32 %v4455_v14 }
0x4038   :  { %v8309_v16 = vpop.eup %8308 }
0x4039   :  { %v4459_v19 = vmul.f32 %v8309_v16, %v9226_v63 }
0x409c   :  { %v4462_v17 = vpop.permute.xlu1 %4461 }
0x409d   :  { %v4464_v18 = vmul.f32 %v8309_v16, %v4462_v17 }
0x409f   :  { %4466 = vrot.lane.b32.xlu0 %v4464_v18, %s8433_s29 }
0x4111   :  { %v4467_v20 = vpop.permute.xlu0 %4466 }
0x4112   :  { %v4469_v21 = vadd.f32 %v4467_v20, %v4459_v19 }
0x4114   :  { %8310 = vtanh.f32 %v4469_v21 }
0x411e   :  { %v8311_v61 = vpop.eup %8310 }
0x411f   :  { %4472 = vrot.lane.b32.xlu1 %v8311_v61, %s8432_s28 }
0x4191   :  { %v4473_v28 = vpop.permute.xlu1 %4472 }
0x4192   :  { %v4475_v30 = vmul.f32 %v8309_v16, %v4473_v28 }
0x4194   :  { %4982 = vrot.lane.b32.xlu0 %v4475_v30, %s8433_s29 }
0x4206   :  { %v4983_v31 = vpop.permute.xlu0 %4982 }
0x4207   :  { %7459 = vmatmul.mubr.msk.f32.vlgmr.msra.gmra.mrb[32].mxu0 %vm695_vm3, %v4983_v31 }
0x4208   :  { %7906 = vmatpush3.bf16.msra.mxu0 %v9307_v24  ;;  %7469 = vmatprep.mubr.msk.f32.mxu0 %vm8427_vm0, %v8426_v0 }
0x4209   :  { %7907 = vmatprep.subr.bf16.mxu0 %v8431_v9 }
0x420c   :  { %7909 = vmatpush3.bf16.msra.mxu0 %v9317_v26 }
0x420d   :  { %7910 = vmatprep.subr.bf16.mxu0 %v8431_v9 }
0x420f   :  { %7470 = vmatmul.mubr.f32.vlgmr.msra.gmra.mrb[20].mxu0 %v8426_v0 }
0x4210   :  { %7912 = vmatpush3.bf16.msra.mxu0 %v9307_v24  ;;  %7480 = vmatprep.mubr.msk.f32.mxu0 %vm8427_vm0, %v8426_v0 }
0x4211   :  { %7913 = vmatprep.subr.bf16.mxu0 %v8431_v9 }
0x4214   :  { %7915 = vmatpush3.bf16.msra.mxu0 %v9317_v26 }
0x4215   :  { %7916 = vmatprep.subr.bf16.mxu0 %v8431_v9 }
0x42e2   :  { %v5122_v35 = vpop.f32.mrb[20].mxu0 }
0x42e3   :  { %v8024_v13 = vadd.f32 %v9339_v32, %v5122_v35  ;;  %v7471_v37 = vpop.f32.mrb[21].mxu0 }
0x42e5   :  { %8312 = vtanh.f32 %v8024_v13  ;;  %v6567_v39 = vmul.f32 -1.442695, %v8024_v13 }
0x42e7   :  { %8314 = vpow2.f32 %v6567_v39 }
0x42ef   :  { %v8313_v38 = vpop.eup %8312 }
0x42f0   :  { %5136 = vrot.lane.b32.xlu1 %v8313_v38, %s8432_s28 }
0x42f1   :  { %v8315_v40 = vpop.eup %8314 }
0x42f2   :  { %v5130_v59 = vadd.f32 1.0, %v8315_v40 }
0x42f4   :  { %8316 = vrcp.f32 %v5130_v59 }
0x42fe   :  { %v8317_v8 = vpop.eup %8316 }
0x42ff   :  { %v5134_v43 = vmul.f32 0.0, %v8317_v8 }
0x4362   :  { %v5137_v41 = vpop.permute.xlu1 %5136 }
0x4363   :  { %v5139_v42 = vmul.f32 %v8317_v8, %v5137_v41 }
0x4365   :  { %5141 = vrot.lane.b32.xlu0 %v5139_v42, %s8433_s29 }
0x43d7   :  { %v5142_v44 = vpop.permute.xlu0 %5141 }
0x43d8   :  { %v5144_v45 = vadd.f32 %v5142_v44, %v5134_v43 }
0x43da   :  { %8318 = vtanh.f32 %v5144_v45 }
0x43e4   :  { %v8319_v46 = vpop.eup %8318 }
0x43e5   :  { %5147 = vrot.lane.b32.xlu1 %v8319_v46, %s8432_s28 }
0x4457   :  { %v5148_v47 = vpop.permute.xlu1 %5147 }
0x4458   :  { %v5150_v49 = vmul.f32 %v8317_v8, %v5148_v47 }
0x445a   :  { %5152 = vrot.lane.b32.xlu0 %v5150_v49, %s8433_s29 }
0x44cc   :  { %v9346_v50 = vpop.permute.xlu0 %5152 }
0x44cd   :  { %7481 = vmatmul.mubr.msk.f32.vlgmr.msra.gmra.mrb[22].mxu0 %vm695_vm3, %v9346_v50 }
0x44ce   :  { %7918 = vmatpush3.bf16.msra.mxu0 %v9307_v24  ;;  %7491 = vmatprep.mubr.msk.f32.mxu0 %vm8427_vm0, %v8426_v0 }
0x44cf   :  { %7919 = vmatprep.subr.bf16.mxu0 %v8431_v9 }
0x44d2   :  { %7921 = vmatpush3.bf16.msra.mxu0 %v9317_v26 }
0x44d3   :  { %7922 = vmatprep.subr.bf16.mxu0 %v8431_v9 }
0x45a0   :  { %v5222_v52 = vpop.f32.mrb[22].mxu0 }
0x45a1   :  { %v8025_v54 = vadd.f32 %v9339_v32, %v5222_v52  ;;  %v7482_v12 = vpop.f32.mrb[23].mxu0 }
0x45a3   :  { %8320 = vtanh.f32 %v8025_v54  ;;  %v6569_v55 = vmul.f32 -1.442695, %v8025_v54 }
0x45a5   :  { %8322 = vpow2.f32 %v6569_v55 }
0x45ad   :  { %v8321_v29 = vpop.eup %8320 }
0x45ae   :  { %5236 = vrot.lane.b32.xlu1 %v8321_v29, %s8432_s28 }
0x45af   :  { %v8323_v57 = vpop.eup %8322 }
0x45b0   :  { %v5230_v58 = vadd.f32 1.0, %v8323_v57 }
0x45b2   :  { %8324 = vrcp.f32 %v5230_v58 }
0x45bc   :  { %v8325_v15 = vpop.eup %8324 }
0x45bd   :  { %v5234_v1 = vmul.f32 %v8325_v15, %v5144_v45 }
0x4620   :  { %v5237_v62 = vpop.permute.xlu1 %5236 }
0x4621   :  { %v5239_v63 = vmul.f32 %v8325_v15, %v5237_v62 }
0x4623   :  { %5241 = vrot.lane.b32.xlu0 %v5239_v63, %s8433_s29 }
0x4695   :  { %v5242_v2 = vpop.permute.xlu0 %5241 }
0x4696   :  { %v5244_v3 = vadd.f32 %v5242_v2, %v5234_v1 }
0x4698   :  { %8326 = vtanh.f32 %v5244_v3 }
0x46a2   :  { %v8327_v34 = vpop.eup %8326 }
0x46a3   :  { %5247 = vrot.lane.b32.xlu1 %v8327_v34, %s8432_s28 }
0x4715   :  { %v5248_v48 = vpop.permute.xlu1 %5247 }
0x4716   :  { %v5250_v4 = vmul.f32 %v8325_v15, %v5248_v48 }
0x4718   :  { %5252 = vrot.lane.b32.xlu0 %v5250_v4, %s8433_s29 }
0x478a   :  { %v9361_v5 = vpop.permute.xlu0 %5252 }
0x478b   :  { %7492 = vmatmul.mubr.msk.f32.vlgmr.msra.gmra.mrb[24].mxu0 %vm695_vm3, %v9361_v5 }
0x478c   :  { %7924 = vmatpush3.bf16.msra.mxu0 %v9307_v24  ;;  %7502 = vmatprep.mubr.msk.f32.mxu0 %vm8427_vm0, %v8426_v0 }
0x478d   :  { %7925 = vmatprep.subr.bf16.mxu0 %v8431_v9 }
0x4790   :  { %7927 = vmatpush3.bf16.msra.mxu0 %v9317_v26 }
0x4791   :  { %7928 = vmatprep.subr.bf16.mxu0 %v8431_v9 }
0x485e   :  { %v5322_v6 = vpop.f32.mrb[24].mxu0 }
0x485f   :  { %v8026_v56 = vadd.f32 %v9339_v32, %v5322_v6  ;;  %v7493_v10 = vpop.f32.mrb[25].mxu0 }
0x4861   :  { %8328 = vtanh.f32 %v8026_v56  ;;  %v6571_v60 = vmul.f32 -1.442695, %v8026_v56 }
0x4863   :  { %8330 = vpow2.f32 %v6571_v60 }
0x486b   :  { %v8329_v33 = vpop.eup %8328 }
0x486c   :  { %5336 = vrot.lane.b32.xlu1 %v8329_v33, %s8432_s28 }
0x486d   :  { %v8331_v25 = vpop.eup %8330 }
0x486e   :  { %v5330_v36 = vadd.f32 1.0, %v8331_v25 }
0x4870   :  { %8332 = vrcp.f32 %v5330_v36 }
0x487a   :  { %v8333_v53 = vpop.eup %8332 }
0x487b   :  { %v5334_v14 = vmul.f32 %v8333_v53, %v5244_v3 }
0x48de   :  { %v5337_v7 = vpop.permute.xlu1 %5336 }
0x48df   :  { %v5339_v11 = vmul.f32 %v8333_v53, %v5337_v7  ;;  %v5851_v7 = vld [vmem:[%s9544_s17] sm:$0xff] }
0x48e1   :  { %5341 = vrot.lane.b32.xlu0 %v5339_v11, %s8433_s29  ;;  %v5852_v11 = vld [vmem:[%s9544_s17 + $0x8] sm:$0xff] }
0x4953   :  { %v5342_v16 = vpop.permute.xlu0 %5341 }
0x4954   :  { %v5344_v17 = vadd.f32 %v5342_v16, %v5334_v14  ;;  %v9430_v14 = vpack.c.bf16 %v5852_v11, %v5851_v7  ;;  %v5853_v16 = vld [vmem:[%s9544_s17 + $0x10] sm:$0xff] }
0x4956   :  { %8334 = vtanh.f32 %v5344_v17 }
0x4960   :  { %v8335_v18 = vpop.eup %8334 }
0x4961   :  { %5347 = vrot.lane.b32.xlu1 %v8335_v18, %s8432_s28 }
0x49d3   :  { %v5348_v19 = vpop.permute.xlu1 %5347 }
0x49d4   :  { %v5350_v20 = vmul.f32 %v8333_v53, %v5348_v19 }
0x49d6   :  { %5352 = vrot.lane.b32.xlu0 %v5350_v20, %s8433_s29 }
0x4a48   :  { %v9376_v21 = vpop.permute.xlu0 %5352 }
0x4a49   :  { %7503 = vmatmul.mubr.msk.f32.vlgmr.msra.gmra.mrb[26].mxu0 %vm695_vm3, %v9376_v21 }
0x4a4a   :  { %7930 = vmatpush3.bf16.msra.mxu0 %v9307_v24  ;;  %7513 = vmatprep.mubr.msk.f32.mxu0 %vm8427_vm0, %v8426_v0 }
0x4a4b   :  { %7931 = vmatprep.subr.bf16.mxu0 %v8431_v9 }
0x4a4e   :  { %7933 = vmatpush3.bf16.msra.mxu0 %v9317_v26 }
0x4a4f   :  { %7934 = vmatprep.subr.bf16.mxu0 %v8431_v9 }
0x4b1c   :  { %v5422_v61 = vpop.f32.mrb[26].mxu0 }
0x4b1d   :  { %v8027_v22 = vadd.f32 %v9339_v32, %v5422_v61  ;;  %v7504_v23 = vpop.f32.mrb[27].mxu0 }
0x4b1f   :  { %8336 = vtanh.f32 %v8027_v22  ;;  %v6573_v51 = vmul.f32 -1.442695, %v8027_v22 }
0x4b21   :  { %8338 = vpow2.f32 %v6573_v51 }
0x4b29   :  { %v8337_v27 = vpop.eup %8336 }
0x4b2a   :  { %5436 = vrot.lane.b32.xlu1 %v8337_v27, %s8432_s28 }
0x4b2b   :  { %v8339_v28 = vpop.eup %8338 }
0x4b2c   :  { %v5430_v30 = vadd.f32 1.0, %v8339_v28 }
0x4b2e   :  { %8340 = vrcp.f32 %v5430_v30 }
0x4b38   :  { %v8341_v31 = vpop.eup %8340 }
0x4b39   :  { %v5434_v37 = vmul.f32 %v8341_v31, %v5344_v17  ;;  %v5854_v17 = vld [vmem:[%s9544_s17 + $0x18] sm:$0xff]  ;;  %s8442_s17 = smov 4  }
0x4b3a   :  { %v9440_v19 = vpack.c.bf16 %v5854_v17, %v5853_v16 }
0x4b9c   :  { %v5437_v35 = vpop.permute.xlu1 %5436 }
0x4b9d   :  { %v5439_v13 = vmul.f32 %v8341_v31, %v5437_v35 }
0x4b9f   :  { %5441 = vrot.lane.b32.xlu0 %v5439_v13, %s8433_s29 }
0x4c11   :  { %v5442_v38 = vpop.permute.xlu0 %5441 }
0x4c12   :  { %v5444_v39 = vadd.f32 %v5442_v38, %v5434_v37 }
0x4c14   :  { %8342 = vtanh.f32 %v5444_v39 }
0x4c1e   :  { %v8343_v40 = vpop.eup %8342 }
0x4c1f   :  { %5447 = vrot.lane.b32.xlu1 %v8343_v40, %s8432_s28 }
0x4c91   :  { %v5448_v59 = vpop.permute.xlu1 %5447 }
0x4c92   :  { %v5450_v8 = vmul.f32 %v8341_v31, %v5448_v59 }
0x4c94   :  { %5452 = vrot.lane.b32.xlu0 %v5450_v8, %s8433_s29 }
0x4d06   :  { %v9391_v41 = vpop.permute.xlu0 %5452 }
0x4d07   :  { %7514 = vmatmul.mubr.msk.f32.vlgmr.msra.gmra.mrb[28].mxu0 %vm695_vm3, %v9391_v41 }
0x4d08   :  { %7936 = vmatpush3.bf16.msra.mxu0 %v9307_v24  ;;  %7524 = vmatprep.mubr.msk.f32.mxu0 %vm8427_vm0, %v8426_v0 }
0x4d09   :  { %7937 = vmatprep.subr.bf16.mxu0 %v8431_v9 }
0x4d0c   :  { %7939 = vmatpush3.bf16.msra.mxu0 %v9317_v26 }
0x4d0d   :  { %7946 = vmatprep.subr.bf16.mxu0 %v8431_v9 }
0x4dda   :  { %v5522_v42 = vpop.f32.mrb[28].mxu0 }
0x4ddb   :  { %v8028_v43 = vadd.f32 %v9339_v32, %v5522_v42  ;;  %v7515_v44 = vpop.f32.mrb[29].mxu0 }
0x4ddd   :  { %8344 = vtanh.f32 %v8028_v43  ;;  %v6575_v46 = vmul.f32 -1.442695, %v8028_v43 }
0x4ddf   :  { %8346 = vpow2.f32 %v6575_v46 }
0x4de7   :  { %v8345_v45 = vpop.eup %8344 }
0x4de8   :  { %5536 = vrot.lane.b32.xlu1 %v8345_v45, %s8432_s28 }
0x4de9   :  { %v8347_v47 = vpop.eup %8346 }
0x4dea   :  { %v5530_v49 = vadd.f32 1.0, %v8347_v47 }
0x4dec   :  { %8348 = vrcp.f32 %v5530_v49 }
0x4df6   :  { %v8349_v52 = vpop.eup %8348 }
0x4df7   :  { %v5534_v29 = vmul.f32 %v8349_v52, %v5444_v39 }
0x4e5a   :  { %v5537_v54 = vpop.permute.xlu1 %5536 }
0x4e5b   :  { %v5539_v12 = vmul.f32 %v8349_v52, %v5537_v54 }
0x4e5d   :  { %5541 = vrot.lane.b32.xlu0 %v5539_v12, %s8433_s29 }
0x4ecf   :  { %v5542_v55 = vpop.permute.xlu0 %5541 }
0x4ed0   :  { %v5544_v57 = vadd.f32 %v5542_v55, %v5534_v29 }
0x4ed2   :  { %8350 = vtanh.f32 %v5544_v57 }
0x4edc   :  { %v8351_v58 = vpop.eup %8350 }
0x4edd   :  { %5547 = vrot.lane.b32.xlu1 %v8351_v58, %s8432_s28 }
0x4f4f   :  { %v5548_v15 = vpop.permute.xlu1 %5547 }
0x4f50   :  { %v5550_v62 = vmul.f32 %v8349_v52, %v5548_v15 }
0x4f52   :  { %5552 = vrot.lane.b32.xlu0 %v5550_v62, %s8433_s29 }
0x4fc4   :  { %v9406_v63 = vpop.permute.xlu0 %5552 }
0x4fc5   :  { %7525 = vmatmul.mubr.msk.f32.vlgmr.msra.gmra.mrb[30].mxu0 %vm695_vm3, %v9406_v63 }
0x4fc6   :  { %7948 = vmatpush3.bf16.msra.mxu0 %v9307_v24  ;;  %7546 = vmatprep.mubr.msk.f32.mxu0 %vm8427_vm0, %v8426_v0 }
0x4fc7   :  { %7949 = vmatprep.subr.bf16.mxu0 %v8431_v9 }
0x4fca   :  { %7951 = vmatpush3.bf16.msra.mxu0 %v9317_v26 }
0x4fcb   :  { %7994 = vmatprep.subr.bf16.mxu0 %v8431_v9 }
0x5098   :  { %v5622_v1 = vpop.f32.mrb[30].mxu0 }
0x5099   :  { %v8029_v2 = vadd.f32 %v9339_v32, %v5622_v1  ;;  %v7526_v3 = vpop.f32.mrb[31].mxu0 }
0x509b   :  { %8352 = vtanh.f32 %v8029_v2  ;;  %v6577_v48 = vmul.f32 -1.442695, %v8029_v2 }
0x509d   :  { %8354 = vpow2.f32 %v6577_v48  ;;  %v6582_v48 = vld [vmem:[#allocation4] ss:$0 sm:$0xff] }
0x50a5   :  { %v8353_v34 = vpop.eup %8352 }
0x50a6   :  { %5636 = vrot.lane.b32.xlu1 %v8353_v34, %s8432_s28 }
0x50a7   :  { %v8355_v24 = vpop.eup %8354 }
0x50a8   :  { %v5630_v4 = vadd.f32 1.0, %v8355_v24 }
0x50aa   :  { %8356 = vrcp.f32 %v5630_v4 }
0x50b4   :  { %v8357_v6 = vpop.eup %8356 }
0x50b5   :  { %v5634_v26 = vmul.f32 %v8357_v6, %v5544_v57 }
0x5118   :  { %v5637_v56 = vpop.permute.xlu1 %5636 }
0x5119   :  { %v5639_v10 = vmul.f32 %v8357_v6, %v5637_v56 }
0x511b   :  { %5641 = vrot.lane.b32.xlu0 %v5639_v10, %s8433_s29 }
0x518d   :  { %v5642_v33 = vpop.permute.xlu0 %5641 }
0x518e   :  { %v9419_v60 = vadd.f32 %v5642_v33, %v5634_v26 }
0x5190   :  { %8358 = vtanh.f32 %v9419_v60 }
0x519a   :  { %v8359_v25 = vpop.eup %8358 }
0x519b   :  { %5647 = vrot.lane.b32.xlu1 %v8359_v25, %s8432_s28 }
0x520d   :  { %v5648_v36 = vpop.permute.xlu1 %5647 }
0x520e   :  { %v5650_v53 = vmul.f32 %v8357_v6, %v5648_v36 }
0x5210   :  { %5652 = vrot.lane.b32.xlu0 %v5650_v53, %s8433_s29 }
0x5282   :  { %v5653_v18 = vpop.permute.xlu0 %5652 }
0x5283   :  { %7536 = vmatmul.mubr.msk.f32.vlgmr.msra.gmra.mrb[32].mxu1 %vm695_vm3, %v5653_v18 }
0x5284   :  { %7954 = vmatpush3.bf16.msra.mxu1 %v9430_v14  ;;  %7557 = vmatprep.mubr.msk.f32.mxu1 %vm8427_vm0, %v8426_v0 }
0x5285   :  { %7955 = vmatprep.subr.bf16.mxu1 %v8431_v9 }
0x5288   :  { %7957 = vmatpush3.bf16.msra.mxu1 %v9440_v19 }
0x5289   :  { %7958 = vmatprep.subr.bf16.mxu1 %v8431_v9 }
0x528b   :  { %7558 = vmatmul.mubr.msk.f32.vlgmr.msra.gmra.mrb[34].mxu1 %vm695_vm3, %v9346_v50 }
0x528c   :  { %7960 = vmatpush3.bf16.msra.mxu1 %v9430_v14  ;;  %7568 = vmatprep.mubr.msk.f32.mxu1 %vm8427_vm0, %v8426_v0 }
0x528d   :  { %7961 = vmatprep.subr.bf16.mxu1 %v8431_v9 }
0x5290   :  { %7963 = vmatpush3.bf16.msra.mxu1 %v9440_v19 }
0x5291   :  { %7964 = vmatprep.subr.bf16.mxu1 %v8431_v9 }
0x5293   :  { %7569 = vmatmul.mubr.msk.f32.vlgmr.msra.gmra.mrb[36].mxu1 %vm695_vm3, %v9361_v5 }
0x5294   :  { %7966 = vmatpush3.bf16.msra.mxu1 %v9430_v14  ;;  %7579 = vmatprep.mubr.msk.f32.mxu1 %vm8427_vm0, %v8426_v0 }
0x5295   :  { %7967 = vmatprep.subr.bf16.mxu1 %v8431_v9 }
0x5298   :  { %7969 = vmatpush3.bf16.msra.mxu1 %v9440_v19 }
0x5299   :  { %7970 = vmatprep.subr.bf16.mxu1 %v8431_v9 }
0x529b   :  { %7580 = vmatmul.mubr.msk.f32.vlgmr.msra.gmra.mrb[38].mxu1 %vm695_vm3, %v9376_v21 }
0x529c   :  { %7972 = vmatpush3.bf16.msra.mxu1 %v9430_v14  ;;  %7590 = vmatprep.mubr.msk.f32.mxu1 %vm8427_vm0, %v8426_v0 }
0x529d   :  { %7973 = vmatprep.subr.bf16.mxu1 %v8431_v9 }
0x52a0   :  { %7975 = vmatpush3.bf16.msra.mxu1 %v9440_v19 }
0x52a1   :  { %7976 = vmatprep.subr.bf16.mxu1 %v8431_v9 }
0x52a3   :  { %7591 = vmatmul.mubr.msk.f32.vlgmr.msra.gmra.mrb[40].mxu1 %vm695_vm3, %v9391_v41 }
0x52a4   :  { %7978 = vmatpush3.bf16.msra.mxu1 %v9430_v14  ;;  %7601 = vmatprep.mubr.msk.f32.mxu1 %vm8427_vm0, %v8426_v0 }
0x52a5   :  { %7979 = vmatprep.subr.bf16.mxu1 %v8431_v9 }
0x52a8   :  { %7981 = vmatpush3.bf16.msra.mxu1 %v9440_v19 }
0x52a9   :  { %7982 = vmatprep.subr.bf16.mxu1 %v8431_v9 }
0x52ab   :  { %7602 = vmatmul.mubr.msk.f32.vlgmr.msra.gmra.mrb[42].mxu1 %vm695_vm3, %v9406_v63 }
0x52ac   :  { %7984 = vmatpush3.bf16.msra.mxu1 %v9430_v14  ;;  %7612 = vmatprep.mubr.msk.f32.mxu1 %vm8427_vm0, %v8426_v0 }
0x52ad   :  { %7985 = vmatprep.subr.bf16.mxu1 %v8431_v9 }
0x52b0   :  { %7987 = vmatpush3.bf16.msra.mxu1 %v9440_v19 }
0x52b1   :  { %7988 = vmatprep.subr.bf16.mxu1 %v8431_v9 }
0x52b3   :  { %7613 = vmatmul.mubr.msk.f32.vlgmr.msra.gmra.mrb[44].mxu1 %vm695_vm3, %v5653_v18 }
0x52b4   :  { %7990 = vmatpush3.bf16.msra.mxu1 %v9430_v14  ;;  %7623 = vmatprep.mubr.msk.f32.mxu1 %vm8427_vm0, %v8426_v0 }
0x52b5   :  { %7991 = vmatprep.subr.bf16.mxu1 %v8431_v9 }
0x52b8   :  { %7993 = vmatpush3.bf16.msra.mxu1 %v9440_v19 }
0x5356   :  { %v5722_v50 = vpop.f32.mrb[32].mxu1 }
0x5357   :  { %v8030_v5 = vadd.f32 %v9339_v32, %v5722_v50  ;;  %v7537_v20 = vpop.f32.mrb[33].mxu1 }
0x5359   :  { %8360 = vtanh.f32 %v8030_v5  ;;  %v6579_v39 = vmul.f32 -1.442695, %v8030_v5 }
0x535b   :  { %8362 = vpow2.f32 %v6579_v39 }
0x535e   :  { %v9494_v21 = vpop.f32.mrb[34].mxu1 }
0x535f   :  { %v7559_v61 = vpop.f32.mrb[35].mxu1  ;;  %v5929_v16 = vadd.f32 %v6582_v48, %v9494_v21 }
0x5363   :  { %v8361_v22 = vpop.eup %8360 }
0x5364   :  { %5736 = vrot.lane.b32.xlu1 %v8361_v22, %s8432_s28 }
0x5365   :  { %v8363_v40 = vpop.eup %8362 }
0x5366   :  { %v5998_v23 = vpop.f32.mrb[36].mxu1  ;;  %v5730_v59 = vadd.f32 1.0, %v8363_v40 }
0x5367   :  { %v7570_v27 = vpop.f32.mrb[37].mxu1  ;;  %v5999_v24 = vadd.f32 %v6582_v48, %v5998_v23 }
0x5368   :  { %8364 = vrcp.f32 %v5730_v59 }
0x536e   :  { %v9497_v51 = vpop.f32.mrb[38].mxu1 }
0x536f   :  { %v7581_v28 = vpop.f32.mrb[39].mxu1  ;;  %v6069_v26 = vadd.f32 %v6582_v48, %v9497_v51 }
0x5372   :  { %v8365_v8 = vpop.eup %8364 }
0x5373   :  { %v5734_v43 = vmul.f32 %v8365_v8, %v9419_v60 }
0x5376   :  { %v6138_v30 = vpop.f32.mrb[40].mxu1 }
0x5377   :  { %v7592_v31 = vpop.f32.mrb[41].mxu1  ;;  %v6139_v4 = vadd.f32 %v6582_v48, %v6138_v30 }
0x537e   :  { %v9499_v35 = vpop.f32.mrb[42].mxu1 }
0x537f   :  { %v7603_v13 = vpop.f32.mrb[43].mxu1  ;;  %v6209_v33 = vadd.f32 %v6582_v48, %v9499_v35 }
0x5386   :  { %v6278_v37 = vpop.f32.mrb[44].mxu1 }
0x5387   :  { %v7614_v38 = vpop.f32.mrb[45].mxu1  ;;  %v6279_v6 = vadd.f32 %v6582_v48, %v6278_v37 }
0x53d6   :  { %v5737_v41 = vpop.permute.xlu1 %5736 }
0x53d7   :  { %v5739_v42 = vmul.f32 %v8365_v8, %v5737_v41 }
0x53d9   :  { %5741 = vrot.lane.b32.xlu0 %v5739_v42, %s8433_s29 }
0x544b   :  { %v5742_v44 = vpop.permute.xlu0 %5741 }
0x544c   :  { %v5744_v45 = vadd.f32 %v5742_v44, %v5734_v43 }
0x544e   :  { %8366 = vtanh.f32 %v5744_v45 }
0x5458   :  { %v8367_v46 = vpop.eup %8366 }
0x5459   :  { %5747 = vrot.lane.b32.xlu1 %v8367_v46, %s8432_s28 }
0x54cb   :  { %v5748_v47 = vpop.permute.xlu1 %5747 }
0x54cc   :  { %v5750_v49 = vmul.f32 %v8365_v8, %v5748_v47 }
0x54ce   :  { %5752 = vrot.lane.b32.xlu0 %v5750_v49, %s8433_s29 }
0x5540   :  { %v5753_v52 = vpop.permute.xlu0 %5752 }
0x5541   :  { %7547 = vmatmul.mubr.msk.f32.vlgmr.msra.gmra.mrb[32].mxu0 %vm695_vm3, %v5753_v52  ;;  %7624 = vmatmul.mubr.msk.f32.vlgmr.msra.gmra.mrb[46].mxu1 %vm695_vm3, %v5753_v52 }
0x5542   :  { %7996 = vmatpush3.bf16.msra.mxu0 %v9430_v14  ;;  %7634 = vmatprep.mubr.msk.f32.mxu0 %vm8427_vm0, %v8426_v0 }
0x5543   :  { %7997 = vmatprep.subr.bf16.mxu0 %v8431_v9 }
0x5546   :  { %7999 = vmatpush3.bf16.msra.mxu0 %v9440_v19 }
0x5614   :  { %v5822_v54 = vpop.f32.mrb[32].mxu0  ;;  %v6348_v12 = vpop.f32.mrb[46].mxu1 }
0x5615   :  { %v8031_v29 = vadd.f32 %v9339_v32, %v5822_v54  ;;  %v7548_v55 = vpop.f32.mrb[33].mxu0  ;;  %v7625_v57 = vpop.f32.mrb[47].mxu1  ;;  %v6349_v60 = vadd.f32 %v6582_v48, %v6348_v12 }
0x5617   :  { %8368 = vtanh.f32 %v8031_v29  ;;  %v6581_v15 = vmul.f32 -1.442695, %v8031_v29 }
0x5619   :  { %8370 = vpow2.f32 %v6581_v15 }
0x5621   :  { %v8369_v58 = vpop.eup %8368 }
0x5622   :  { %5836 = vrot.lane.b32.xlu1 %v8369_v58, %s8432_s28 }
0x5623   :  { %v8371_v62 = vpop.eup %8370 }
0x5624   :  { %v5830_v63 = vadd.f32 1.0, %v8371_v62 }
0x5626   :  { %8372 = vrcp.f32 %v5830_v63 }
0x5630   :  { %v8373_v0 = vpop.eup %8372 }
0x5631   :  { %v5834_v2 = vmul.f32 %v8373_v0, %v5744_v45 }
0x5694   :  { %v5837_v1 = vpop.permute.xlu1 %5836 }
0x5695   :  { %v5839_v9 = vmul.f32 %v8373_v0, %v5837_v1 }
0x5697   :  { %5841 = vrot.lane.b32.xlu0 %v5839_v9, %s8433_s29 }
0x5709   :  { %v5842_v3 = vpop.permute.xlu0 %5841 }
0x570a   :  { %v5844_v34 = vadd.f32 %v5842_v3, %v5834_v2 }
0x570c   :  { %8374 = vtanh.f32 %v5844_v34 }
0x5716   :  { %v8375_v32 = vpop.eup %8374 }
0x5717   :  { %5847 = vrot.lane.b32.xlu1 %v8375_v32, %s8432_s28  ;;  %s8446_s28 = smov 24  }
0x571b   :  { %6428 = vrot.lane.b32.xlu1 %v5999_v24, %s8442_s17 }
0x571f   :  { %6436 = vrot.lane.b32.xlu1 %v6139_v4, %s8443_s13 }
0x5723   :  { %6444 = vrot.lane.b32.xlu1 %v6279_v6, %s8444_s30 }
0x5789   :  { %v5848_v56 = vpop.permute.xlu1 %5847 }
0x578a   :  { %v5850_v10 = vmul.f32 %v8373_v0, %v5848_v56 }
0x578c   :  { %6353 = vrot.lane.b32.xlu0 %v5850_v10, %s8433_s29 }
0x578d   :  { %v6429_v11 = vpop.permute.xlu1 %6428 }
0x578e   :  { %v6455_v18 = vsel %vm99_vm2, %v5929_v16, %v6429_v11 }
0x5790   :  { %6432 = vrot.lane.b32.xlu0 %v6069_v26, %s8445_s26 }
0x5791   :  { %v6437_v17 = vpop.permute.xlu1 %6436 }
0x5794   :  { %6440 = vrot.lane.b32.xlu0 %v6209_v33, %s8439_s6 }
0x5795   :  { %v6445_v20 = vpop.permute.xlu1 %6444 }
0x5798   :  { %6448 = vrot.lane.b32.xlu0 %v6349_v60, %s8446_s28 }
0x57fe   :  { %v6354_v25 = vpop.permute.xlu0 %6353 }
0x57ff   :  { %7635 = vmatmul.mubr.msk.f32.vlgmr.msra.gmra.mrb[34].mxu0 %vm695_vm3, %v6354_v25 }
0x5802   :  { %v6433_v14 = vpop.permute.xlu0 %6432 }
0x5803   :  { %v6457_v50 = vsel %vm6456_vm10, %v6455_v18, %v6433_v14 }
0x5804   :  { %v6459_v5 = vsel %vm6458_vm11, %v6457_v50, %v6437_v17 }
0x5806   :  { %v6441_v19 = vpop.permute.xlu0 %6440 }
0x5807   :  { %v6460_v61 = vsel %vm2072_vm4, %v6459_v5, %v6441_v19 }
0x5808   :  { %v6462_v23 = vsel %vm6461_vm12, %v6460_v61, %v6445_v20 }
0x580a   :  { %v6449_v22 = vpop.permute.xlu0 %6448 }
0x580b   :  { %v6464_v27 = vsel %vm6463_vm13, %v6462_v23, %v6449_v22 }
0x58d2   :  { %v6423_v36 = vpop.f32.mrb[34].mxu0 }
0x58d3   :  { %v6424_v53 = vadd.f32 %v6582_v48, %v6423_v36  ;;  %v7636_v7 = vpop.f32.mrb[35].mxu0 }
0x58d5   :  { %6452 = vrot.lane.b32.xlu1 %v6424_v53, %s8447_s27 }
0x5947   :  { %v6453_v51 = vpop.permute.xlu1 %6452 }
0x5948   :  { %v6466_v21 = vsel %vm6465_vm14, %v6464_v27, %v6453_v51 }
0x5949   :  { %6468 = vst.msk [vmem:[%s9546_s19] sm:$0x3] %vm6467_vm15, %v6466_v21 }
0x594a   :  { %6473 = vsyncpa [#allocation3], 1 }
0x594b   :  { %6474 = vsyncpa [#allocation5], 1 }

</bundles_post_ra>
